<compile_context>
chip_gen: v6e
topology: v6e:2x2x1
jax: 0.10.0
libtpu: 0.0.40
codegen_flags: <defaults>
</compile_context>

<pallas_src>
import math
import functools

import jax
import jax.numpy as jnp
from jax.experimental import pallas as pl
from jax.experimental.pallas import tpu as pltpu


def _layernorm(z, g, be):
    mu = jnp.mean(z, axis=-1, keepdims=True)
    var = jnp.mean((z - mu) ** 2, axis=-1, keepdims=True)
    return (z - mu) * jax.lax.rsqrt(var + 1e-5) * g + be


# ---------------------------------------------------------------------------
# Fused kernel.  x_ref / o_ref blocks are [batch_tile*S, H] (batch-major rows).
# Scratches h1_scr/h2_scr hold the per-layer LSTM outputs, VMEM resident.
# ---------------------------------------------------------------------------
def fused_history_kernel(
        x_ref,
        w_ih1_ref, w_hh1_ref, b1_ref,
        w_ih2_ref, w_hh2_ref, b2_ref,
        w_in_ref, b_in_ref, w_out_ref, b_out_ref,
        g1_ref, be1_ref,
        w1_ref, bf1_ref, w2_ref, bf2_ref,
        g2_ref, be2_ref,
        o_ref,
        h1_scr, h2_scr,
        *, seq_len, num_heads):
    f32, bf16 = jnp.float32, jnp.bfloat16
    S = seq_len
    tb = x_ref.shape[0] // S
    H = x_ref.shape[1]
    dh = H // num_heads
    scale = 1.0 / math.sqrt(dh)

    def mm(a, w_ref, bias=None):
        # bf16 operands, f32 accumulation on the MXU.
        out = jnp.dot(a.astype(bf16), w_ref[...], preferred_element_type=f32)
        return out if bias is None else out + bias

    def lstm_layer(xw, w_hh_ref, out_scr, row0):
        # xw: [S, 4H] = hoisted input projection (+ combined bias) of one sequence.
        w_hh = w_hh_ref[...]                     # bf16 [H, 4H], loaded once
        h = jnp.zeros((1, H), f32)
        c = jnp.zeros((1, H), f32)
        # Fully unrolled: S is small and compile-time static here.
        # TODO(synk): switch to lax.fori_loop for large S to bound compile time.
        for t in range(S):
            gates = xw[t:t + 1, :] + jnp.dot(h.astype(bf16), w_hh,
                                             preferred_element_type=f32)
            sig = jax.nn.sigmoid(gates)          # full-width EUP op
            tnh = jnp.tanh(gates)                # full-width EUP op
            i_g = sig[:, 0 * H:1 * H]            # gate order i, f, g, o (PyTorch)
            f_g = sig[:, 1 * H:2 * H]
            g_g = tnh[:, 2 * H:3 * H]
            o_g = sig[:, 3 * H:4 * H]
            c = f_g * c + i_g * g_g
            h = o_g * jnp.tanh(c)
            out_scr[row0 + t:row0 + t + 1, :] = h

    # Lane-index map used to build per-head masks (no per-head lane slicing).
    lane = jax.lax.broadcasted_iota(jnp.int32, (S, H), 1)

    for b in range(tb):          # independent sequences -> straight-line ILP
        r0 = b * S
        xb = x_ref[r0:r0 + S, :]                         # [S, H]

        # ----- LSTM layer 1 -----
        xw1 = mm(xb, w_ih1_ref, b1_ref[...])             # [S, 4H] hoisted proj
        lstm_layer(xw1, w_hh1_ref, h1_scr, r0)
        h1b = h1_scr[r0:r0 + S, :]
        # TODO(synk): inter-layer LSTM dropout (p=0.1) omitted (inference mode).

        # ----- LSTM layer 2 -----
        xw2 = mm(h1b, w_ih2_ref, b2_ref[...])
        lstm_layer(xw2, w_hh2_ref, h2_scr, r0)
        h2b = h2_scr[r0:r0 + S, :]                       # [S, H] lstm_out

        # ----- Multi-head self attention (masked-head formulation) -----
        qkv = mm(h2b, w_in_ref, b_in_ref[...])           # [S, 3H]
        q = qkv[:, 0 * H:1 * H]
        k = qkv[:, 1 * H:2 * H]
        v = qkv[:, 2 * H:3 * H]
        q16 = q.astype(bf16)
        attn = jnp.zeros((S, H), f32)
        for hh in range(num_heads):
            head_mask = (lane >= hh * dh) & (lane < (hh + 1) * dh)
            k_h = jnp.where(head_mask, k, 0.0).astype(bf16)
            v_h = jnp.where(head_mask, v, 0.0).astype(bf16)
            # Zeroed columns outside the head make this exactly q_h @ k_h^T.
            s = jax.lax.dot_general(q16, k_h, (((1,), (1,)), ((), ())),
                                    preferred_element_type=f32) * scale   # [S,S]
            s = s - jnp.max(s, axis=-1, keepdims=True)
            p = jnp.exp(s)
            p = p * pl.reciprocal(jnp.sum(p, axis=-1, keepdims=True), approx=True)
            # p @ v_h fills only this head's columns; summing heads == concat.
            attn = attn + jnp.dot(p.astype(bf16), v_h, preferred_element_type=f32)
        attn = mm(attn, w_out_ref, b_out_ref[...])       # [S, H]

        # ----- residual + LN1 + FFN + residual + LN2 -----
        attended = _layernorm(h2b + attn, g1_ref[...], be1_ref[...])
        hid = jnp.maximum(mm(attended, w1_ref, bf1_ref[...]), 0.0)
        ffn = mm(hid, w2_ref, bf2_ref[...])
        out_b = _layernorm(attended + ffn, g2_ref[...], be2_ref[...])

        # TODO(synk): with H=32 this is a 32/128-lane masked store; at the
        # production H=128 the store becomes lane-dense automatically.
        o_ref[r0:r0 + S, :] = out_b.astype(o_ref.dtype)


# ---------------------------------------------------------------------------
# Wrapper: single pallas_call, grid over batch ("parallel" -> megacore on v7x).
# ---------------------------------------------------------------------------
@functools.partial(jax.jit, static_argnames=("num_heads", "batch_tile"))
def history_processor(x, params, num_heads=4, batch_tile=1):
    B, S, H = x.shape
    assert H % num_heads == 0, "hidden_size must be divisible by num_heads"
    assert B % batch_tile == 0, "batch must be divisible by batch_tile"
    p = params
    weights = [
        p["w_ih1_t"], p["w_hh1_t"], p["b1"],
        p["w_ih2_t"], p["w_hh2_t"], p["b2"],
        p["w_in_t"], p["b_in"], p["w_out_t"], p["b_out"],
        p["g1"], p["be1"],
        p["w1_t"], p["bf1"], p["w2_t"], p["bf2"],
        p["g2"], p["be2"],
    ]
    rows = batch_tile * S
    x2d = x.reshape(B * S, H)                    # free metadata reshape (row-major)

    in_specs = [pl.BlockSpec((rows, H), lambda i: (i, 0))]
    for w in weights:
        in_specs.append(pl.BlockSpec(w.shape, lambda i: (0, 0)))

    out2d = pl.pallas_call(
        functools.partial(fused_history_kernel, seq_len=S, num_heads=num_heads),
        out_shape=jax.ShapeDtypeStruct((B * S, H), jnp.float32),
        grid=(B // batch_tile,),
        in_specs=in_specs,
        out_specs=pl.BlockSpec((rows, H), lambda i: (i, 0)),
        scratch_shapes=[pltpu.VMEM((rows, H), jnp.float32),
                        pltpu.VMEM((rows, H), jnp.float32)],
        compiler_params=pltpu.CompilerParams(
            dimension_semantics=("parallel",)),
    )(x2d, *weights)
    return out2d.reshape(B, S, H)


# ---------------------------------------------------------------------------
# Parameter init (deterministic, PyTorch-like uniform fan-in init).
# Matmul weights stored pre-transposed ([in, out]) in bf16; biases / LN in f32.
# ---------------------------------------------------------------------------
def init_params(key, H):
    keys = iter(jax.random.split(key, 32))

    def u(shape, scale):
        return jax.random.uniform(next(keys), shape, jnp.float32, -scale, scale)

    s = 1.0 / math.sqrt(H)
    bf16 = jnp.bfloat16
    params = {}
    for layer in (1, 2):                                  # 2-layer LSTM, input size H
        params[f"w_ih{layer}_t"] = u((4 * H, H), s).T.astype(bf16)     # [H, 4H]
        params[f"w_hh{layer}_t"] = u((4 * H, H), s).T.astype(bf16)     # [H, 4H]
        params[f"b{layer}"] = (u((4 * H,), s) + u((4 * H,), s)).reshape(1, 4 * H)
    params.update(
        w_in_t=u((3 * H, H), s).T.astype(bf16),            # [H, 3H]
        b_in=u((3 * H,), s).reshape(1, 3 * H),
        w_out_t=u((H, H), s).T.astype(bf16),               # [H, H]
        b_out=u((H,), s).reshape(1, H),
        g1=jnp.ones((1, H), jnp.float32),
        be1=jnp.zeros((1, H), jnp.float32),
        w1_t=u((4 * H, H), s).T.astype(bf16),              # [H, 4H]
        bf1=u((4 * H,), s).reshape(1, 4 * H),
        w2_t=u((H, 4 * H), 1.0 / math.sqrt(4 * H)).T.astype(bf16),  # [4H, H]
        bf2=u((H,), 1.0 / math.sqrt(4 * H)).reshape(1, H),
        g2=jnp.ones((1, H), jnp.float32),
        be2=jnp.zeros((1, H), jnp.float32),
    )
    return params


if __name__ == "__main__":
    B, S, H = 2, 8, 32
    key = jax.random.PRNGKey(0)
    kx, kp = jax.random.split(key)
    x = jax.random.normal(kx, (B, S, H), jnp.float32)
    params = init_params(kp, H)

    out = history_processor(x, params, num_heads=4, batch_tile=1)
    jax.block_until_ready(out)
    assert out.shape == (B, S, H), out.shape
    assert bool(jnp.all(jnp.isfinite(out)))
    print("KERNEL_OK")
</pallas_src>

<mosaic_0001>
module attributes {stable_mosaic.version = 11 : i64} {
  func.func @fused_history_kernel(%arg0: i32, %arg1: memref<8x32xf32, #tpu.memory_space<vmem>>, %arg2: memref<32x128xbf16, #tpu.memory_space<vmem>>, %arg3: memref<32x128xbf16, #tpu.memory_space<vmem>>, %arg4: memref<1x128xf32, #tpu.memory_space<vmem>>, %arg5: memref<32x128xbf16, #tpu.memory_space<vmem>>, %arg6: memref<32x128xbf16, #tpu.memory_space<vmem>>, %arg7: memref<1x128xf32, #tpu.memory_space<vmem>>, %arg8: memref<32x96xbf16, #tpu.memory_space<vmem>>, %arg9: memref<1x96xf32, #tpu.memory_space<vmem>>, %arg10: memref<32x32xbf16, #tpu.memory_space<vmem>>, %arg11: memref<1x32xf32, #tpu.memory_space<vmem>>, %arg12: memref<1x32xf32, #tpu.memory_space<vmem>>, %arg13: memref<1x32xf32, #tpu.memory_space<vmem>>, %arg14: memref<32x128xbf16, #tpu.memory_space<vmem>>, %arg15: memref<1x128xf32, #tpu.memory_space<vmem>>, %arg16: memref<128x32xbf16, #tpu.memory_space<vmem>>, %arg17: memref<1x32xf32, #tpu.memory_space<vmem>>, %arg18: memref<1x32xf32, #tpu.memory_space<vmem>>, %arg19: memref<1x32xf32, #tpu.memory_space<vmem>>, %arg20: memref<8x32xf32, #tpu.memory_space<vmem>>, %arg21: memref<8x32xf32, #tpu.memory_space<vmem>>, %arg22: memref<8x32xf32, #tpu.memory_space<vmem>>) attributes {dimension_semantics = [#tpu.dimension_semantics<parallel>], iteration_bounds = array<i64: 2>, scalar_prefetch = 0 : i64, scratch_operands = 2 : i64, tpu.core_type = #tpu.core_type<tc>, window_params = [{transform_indices = @transform_0, window_bounds = array<i64: 8, 32>}, {pipeline_mode = #tpu.pipeline_mode<synchronous>, transform_indices = @transform_1, window_bounds = array<i64: 32, 128>}, {pipeline_mode = #tpu.pipeline_mode<synchronous>, transform_indices = @transform_2, window_bounds = array<i64: 32, 128>}, {pipeline_mode = #tpu.pipeline_mode<synchronous>, transform_indices = @transform_3, window_bounds = array<i64: 1, 128>}, {pipeline_mode = #tpu.pipeline_mode<synchronous>, transform_indices = @transform_4, window_bounds = array<i64: 32, 128>}, {pipeline_mode = #tpu.pipeline_mode<synchronous>, transform_indices = @transform_5, window_bounds = array<i64: 32, 128>}, {pipeline_mode = #tpu.pipeline_mode<synchronous>, transform_indices = @transform_6, window_bounds = array<i64: 1, 128>}, {pipeline_mode = #tpu.pipeline_mode<synchronous>, transform_indices = @transform_7, window_bounds = array<i64: 32, 96>}, {pipeline_mode = #tpu.pipeline_mode<synchronous>, transform_indices = @transform_8, window_bounds = array<i64: 1, 96>}, {pipeline_mode = #tpu.pipeline_mode<synchronous>, transform_indices = @transform_9, window_bounds = array<i64: 32, 32>}, {pipeline_mode = #tpu.pipeline_mode<synchronous>, transform_indices = @transform_10, window_bounds = array<i64: 1, 32>}, {pipeline_mode = #tpu.pipeline_mode<synchronous>, transform_indices = @transform_11, window_bounds = array<i64: 1, 32>}, {pipeline_mode = #tpu.pipeline_mode<synchronous>, transform_indices = @transform_12, window_bounds = array<i64: 1, 32>}, {pipeline_mode = #tpu.pipeline_mode<synchronous>, transform_indices = @transform_13, window_bounds = array<i64: 32, 128>}, {pipeline_mode = #tpu.pipeline_mode<synchronous>, transform_indices = @transform_14, window_bounds = array<i64: 1, 128>}, {pipeline_mode = #tpu.pipeline_mode<synchronous>, transform_indices = @transform_15, window_bounds = array<i64: 128, 32>}, {pipeline_mode = #tpu.pipeline_mode<synchronous>, transform_indices = @transform_16, window_bounds = array<i64: 1, 32>}, {pipeline_mode = #tpu.pipeline_mode<synchronous>, transform_indices = @transform_17, window_bounds = array<i64: 1, 32>}, {pipeline_mode = #tpu.pipeline_mode<synchronous>, transform_indices = @transform_18, window_bounds = array<i64: 1, 32>}, {transform_indices = @transform_19, window_bounds = array<i64: 8, 32>}]} {
    %0 = tpu.iota {dimensions = array<i32: 1>} : vector<8x32xi32>
    %c0 = arith.constant 0 : index
    %c0_0 = arith.constant 0 : index
    %1 = vector.load %arg1[%c0, %c0_0] : memref<8x32xf32, #tpu.memory_space<vmem>>, vector<8x32xf32>
    %c0_1 = arith.constant 0 : index
    %c0_2 = arith.constant 0 : index
    %2 = vector.load %arg4[%c0_1, %c0_2] : memref<1x128xf32, #tpu.memory_space<vmem>>, vector<1x128xf32>
    %3 = arith.truncf %1 : vector<8x32xf32> to vector<8x32xbf16>
    %c0_3 = arith.constant 0 : index
    %c0_4 = arith.constant 0 : index
    %4 = vector.load %arg2[%c0_3, %c0_4] : memref<32x128xbf16, #tpu.memory_space<vmem>>, vector<32x128xbf16>
    %cst = arith.constant dense<0.000000e+00> : vector<8x128xf32>
    %5 = tpu.matmul %3, %4, %cst {dimension_numbers = #tpu.dot_dimension_numbers<[1], [0], [0], [1], [0, 0, 1, 1], [], []>} : vector<8x32xbf16>, vector<32x128xbf16>, vector<8x128xf32> -> vector<8x128xf32>
    %6 = vector.broadcast %2 : vector<1x128xf32> to vector<8x128xf32>
    %7 = arith.addf %5, %6 : vector<8x128xf32>
    %c0_5 = arith.constant 0 : index
    %c0_6 = arith.constant 0 : index
    %8 = vector.load %arg3[%c0_5, %c0_6] : memref<32x128xbf16, #tpu.memory_space<vmem>>, vector<32x128xbf16>
    %cst_7 = arith.constant 0.000000e+00 : f32
    %9 = vector.broadcast %cst_7 : f32 to vector<1x32xf32>
    %cst_8 = arith.constant 0.000000e+00 : f32
    %10 = vector.broadcast %cst_8 : f32 to vector<1x32xf32>
    %11 = vector.extract_strided_slice %7 {offsets = [0, 0], sizes = [1, 128], strides = [1, 1]} : vector<8x128xf32> to vector<1x128xf32>
    %12 = arith.truncf %9 : vector<1x32xf32> to vector<1x32xbf16>
    %cst_9 = arith.constant dense<0.000000e+00> : vector<1x128xf32>
    %13 = tpu.matmul %12, %8, %cst_9 {dimension_numbers = #tpu.dot_dimension_numbers<[1], [0], [0], [1], [0, 0, 1, 1], [], []>} : vector<1x32xbf16>, vector<32x128xbf16>, vector<1x128xf32> -> vector<1x128xf32>
    %14 = arith.addf %11, %13 : vector<1x128xf32>
    %15 = arith.negf %14 : vector<1x128xf32>
    %16 = math.exp %15 : vector<1x128xf32>
    %cst_10 = arith.constant 1.000000e+00 : f32
    %17 = vector.broadcast %cst_10 : f32 to vector<1x128xf32>
    %18 = arith.addf %17, %16 : vector<1x128xf32>
    %19 = arith.divf %17, %18 : vector<1x128xf32>
    %20 = math.tanh %14 : vector<1x128xf32>
    %21 = vector.extract_strided_slice %19 {offsets = [0, 0], sizes = [1, 32], strides = [1, 1]} : vector<1x128xf32> to vector<1x32xf32>
    %22 = vector.extract_strided_slice %19 {offsets = [0, 32], sizes = [1, 32], strides = [1, 1]} : vector<1x128xf32> to vector<1x32xf32>
    %23 = vector.extract_strided_slice %20 {offsets = [0, 64], sizes = [1, 32], strides = [1, 1]} : vector<1x128xf32> to vector<1x32xf32>
    %24 = vector.extract_strided_slice %19 {offsets = [0, 96], sizes = [1, 32], strides = [1, 1]} : vector<1x128xf32> to vector<1x32xf32>
    %25 = arith.mulf %22, %10 : vector<1x32xf32>
    %26 = arith.mulf %21, %23 : vector<1x32xf32>
    %27 = arith.addf %25, %26 : vector<1x32xf32>
    %28 = math.tanh %27 : vector<1x32xf32>
    %29 = arith.mulf %24, %28 : vector<1x32xf32>
    %c0_11 = arith.constant 0 : index
    %c0_12 = arith.constant 0 : index
    %30 = vector.load %arg21[%c0_11, %c0_12] : memref<8x32xf32, #tpu.memory_space<vmem>>, vector<1x32xf32>
    tpu.vector_store %arg21[%c0_11, %c0_12], %29 {strides = array<i32>} : memref<8x32xf32, #tpu.memory_space<vmem>>, vector<1x32xf32>,
    %31 = vector.extract_strided_slice %7 {offsets = [1, 0], sizes = [1, 128], strides = [1, 1]} : vector<8x128xf32> to vector<1x128xf32>
    %32 = arith.truncf %29 : vector<1x32xf32> to vector<1x32xbf16>
    %cst_13 = arith.constant dense<0.000000e+00> : vector<1x128xf32>
    %33 = tpu.matmul %32, %8, %cst_13 {dimension_numbers = #tpu.dot_dimension_numbers<[1], [0], [0], [1], [0, 0, 1, 1], [], []>} : vector<1x32xbf16>, vector<32x128xbf16>, vector<1x128xf32> -> vector<1x128xf32>
    %34 = arith.addf %31, %33 : vector<1x128xf32>
    %35 = arith.negf %34 : vector<1x128xf32>
    %36 = math.exp %35 : vector<1x128xf32>
    %cst_14 = arith.constant 1.000000e+00 : f32
    %37 = vector.broadcast %cst_14 : f32 to vector<1x128xf32>
    %38 = arith.addf %37, %36 : vector<1x128xf32>
    %39 = arith.divf %37, %38 : vector<1x128xf32>
    %40 = math.tanh %34 : vector<1x128xf32>
    %41 = vector.extract_strided_slice %39 {offsets = [0, 0], sizes = [1, 32], strides = [1, 1]} : vector<1x128xf32> to vector<1x32xf32>
    %42 = vector.extract_strided_slice %39 {offsets = [0, 32], sizes = [1, 32], strides = [1, 1]} : vector<1x128xf32> to vector<1x32xf32>
    %43 = vector.extract_strided_slice %40 {offsets = [0, 64], sizes = [1, 32], strides = [1, 1]} : vector<1x128xf32> to vector<1x32xf32>
    %44 = vector.extract_strided_slice %39 {offsets = [0, 96], sizes = [1, 32], strides = [1, 1]} : vector<1x128xf32> to vector<1x32xf32>
    %45 = arith.mulf %42, %27 : vector<1x32xf32>
    %46 = arith.mulf %41, %43 : vector<1x32xf32>
    %47 = arith.addf %45, %46 : vector<1x32xf32>
    %48 = math.tanh %47 : vector<1x32xf32>
    %49 = arith.mulf %44, %48 : vector<1x32xf32>
    %c1 = arith.constant 1 : index
    %c0_15 = arith.constant 0 : index
    %50 = vector.load %arg21[%c1, %c0_15] : memref<8x32xf32, #tpu.memory_space<vmem>>, vector<1x32xf32>
    tpu.vector_store %arg21[%c1, %c0_15], %49 {strides = array<i32>} : memref<8x32xf32, #tpu.memory_space<vmem>>, vector<1x32xf32>,
    %51 = vector.extract_strided_slice %7 {offsets = [2, 0], sizes = [1, 128], strides = [1, 1]} : vector<8x128xf32> to vector<1x128xf32>
    %52 = arith.truncf %49 : vector<1x32xf32> to vector<1x32xbf16>
    %cst_16 = arith.constant dense<0.000000e+00> : vector<1x128xf32>
    %53 = tpu.matmul %52, %8, %cst_16 {dimension_numbers = #tpu.dot_dimension_numbers<[1], [0], [0], [1], [0, 0, 1, 1], [], []>} : vector<1x32xbf16>, vector<32x128xbf16>, vector<1x128xf32> -> vector<1x128xf32>
    %54 = arith.addf %51, %53 : vector<1x128xf32>
    %55 = arith.negf %54 : vector<1x128xf32>
    %56 = math.exp %55 : vector<1x128xf32>
    %cst_17 = arith.constant 1.000000e+00 : f32
    %57 = vector.broadcast %cst_17 : f32 to vector<1x128xf32>
    %58 = arith.addf %57, %56 : vector<1x128xf32>
    %59 = arith.divf %57, %58 : vector<1x128xf32>
    %60 = math.tanh %54 : vector<1x128xf32>
    %61 = vector.extract_strided_slice %59 {offsets = [0, 0], sizes = [1, 32], strides = [1, 1]} : vector<1x128xf32> to vector<1x32xf32>
    %62 = vector.extract_strided_slice %59 {offsets = [0, 32], sizes = [1, 32], strides = [1, 1]} : vector<1x128xf32> to vector<1x32xf32>
    %63 = vector.extract_strided_slice %60 {offsets = [0, 64], sizes = [1, 32], strides = [1, 1]} : vector<1x128xf32> to vector<1x32xf32>
    %64 = vector.extract_strided_slice %59 {offsets = [0, 96], sizes = [1, 32], strides = [1, 1]} : vector<1x128xf32> to vector<1x32xf32>
    %65 = arith.mulf %62, %47 : vector<1x32xf32>
    %66 = arith.mulf %61, %63 : vector<1x32xf32>
    %67 = arith.addf %65, %66 : vector<1x32xf32>
    %68 = math.tanh %67 : vector<1x32xf32>
    %69 = arith.mulf %64, %68 : vector<1x32xf32>
    %c2 = arith.constant 2 : index
    %c0_18 = arith.constant 0 : index
    %70 = vector.load %arg21[%c2, %c0_18] : memref<8x32xf32, #tpu.memory_space<vmem>>, vector<1x32xf32>
    tpu.vector_store %arg21[%c2, %c0_18], %69 {strides = array<i32>} : memref<8x32xf32, #tpu.memory_space<vmem>>, vector<1x32xf32>,
    %71 = vector.extract_strided_slice %7 {offsets = [3, 0], sizes = [1, 128], strides = [1, 1]} : vector<8x128xf32> to vector<1x128xf32>
    %72 = arith.truncf %69 : vector<1x32xf32> to vector<1x32xbf16>
    %cst_19 = arith.constant dense<0.000000e+00> : vector<1x128xf32>
    %73 = tpu.matmul %72, %8, %cst_19 {dimension_numbers = #tpu.dot_dimension_numbers<[1], [0], [0], [1], [0, 0, 1, 1], [], []>} : vector<1x32xbf16>, vector<32x128xbf16>, vector<1x128xf32> -> vector<1x128xf32>
    %74 = arith.addf %71, %73 : vector<1x128xf32>
    %75 = arith.negf %74 : vector<1x128xf32>
    %76 = math.exp %75 : vector<1x128xf32>
    %cst_20 = arith.constant 1.000000e+00 : f32
    %77 = vector.broadcast %cst_20 : f32 to vector<1x128xf32>
    %78 = arith.addf %77, %76 : vector<1x128xf32>
    %79 = arith.divf %77, %78 : vector<1x128xf32>
    %80 = math.tanh %74 : vector<1x128xf32>
    %81 = vector.extract_strided_slice %79 {offsets = [0, 0], sizes = [1, 32], strides = [1, 1]} : vector<1x128xf32> to vector<1x32xf32>
    %82 = vector.extract_strided_slice %79 {offsets = [0, 32], sizes = [1, 32], strides = [1, 1]} : vector<1x128xf32> to vector<1x32xf32>
    %83 = vector.extract_strided_slice %80 {offsets = [0, 64], sizes = [1, 32], strides = [1, 1]} : vector<1x128xf32> to vector<1x32xf32>
    %84 = vector.extract_strided_slice %79 {offsets = [0, 96], sizes = [1, 32], strides = [1, 1]} : vector<1x128xf32> to vector<1x32xf32>
    %85 = arith.mulf %82, %67 : vector<1x32xf32>
    %86 = arith.mulf %81, %83 : vector<1x32xf32>
    %87 = arith.addf %85, %86 : vector<1x32xf32>
    %88 = math.tanh %87 : vector<1x32xf32>
    %89 = arith.mulf %84, %88 : vector<1x32xf32>
    %c3 = arith.constant 3 : index
    %c0_21 = arith.constant 0 : index
    %90 = vector.load %arg21[%c3, %c0_21] : memref<8x32xf32, #tpu.memory_space<vmem>>, vector<1x32xf32>
    tpu.vector_store %arg21[%c3, %c0_21], %89 {strides = array<i32>} : memref<8x32xf32, #tpu.memory_space<vmem>>, vector<1x32xf32>,
    %91 = vector.extract_strided_slice %7 {offsets = [4, 0], sizes = [1, 128], strides = [1, 1]} : vector<8x128xf32> to vector<1x128xf32>
    %92 = arith.truncf %89 : vector<1x32xf32> to vector<1x32xbf16>
    %cst_22 = arith.constant dense<0.000000e+00> : vector<1x128xf32>
    %93 = tpu.matmul %92, %8, %cst_22 {dimension_numbers = #tpu.dot_dimension_numbers<[1], [0], [0], [1], [0, 0, 1, 1], [], []>} : vector<1x32xbf16>, vector<32x128xbf16>, vector<1x128xf32> -> vector<1x128xf32>
    %94 = arith.addf %91, %93 : vector<1x128xf32>
    %95 = arith.negf %94 : vector<1x128xf32>
    %96 = math.exp %95 : vector<1x128xf32>
    %cst_23 = arith.constant 1.000000e+00 : f32
    %97 = vector.broadcast %cst_23 : f32 to vector<1x128xf32>
    %98 = arith.addf %97, %96 : vector<1x128xf32>
    %99 = arith.divf %97, %98 : vector<1x128xf32>
    %100 = math.tanh %94 : vector<1x128xf32>
    %101 = vector.extract_strided_slice %99 {offsets = [0, 0], sizes = [1, 32], strides = [1, 1]} : vector<1x128xf32> to vector<1x32xf32>
    %102 = vector.extract_strided_slice %99 {offsets = [0, 32], sizes = [1, 32], strides = [1, 1]} : vector<1x128xf32> to vector<1x32xf32>
    %103 = vector.extract_strided_slice %100 {offsets = [0, 64], sizes = [1, 32], strides = [1, 1]} : vector<1x128xf32> to vector<1x32xf32>
    %104 = vector.extract_strided_slice %99 {offsets = [0, 96], sizes = [1, 32], strides = [1, 1]} : vector<1x128xf32> to vector<1x32xf32>
    %105 = arith.mulf %102, %87 : vector<1x32xf32>
    %106 = arith.mulf %101, %103 : vector<1x32xf32>
    %107 = arith.addf %105, %106 : vector<1x32xf32>
    %108 = math.tanh %107 : vector<1x32xf32>
    %109 = arith.mulf %104, %108 : vector<1x32xf32>
    %c4 = arith.constant 4 : index
    %c0_24 = arith.constant 0 : index
    %110 = vector.load %arg21[%c4, %c0_24] : memref<8x32xf32, #tpu.memory_space<vmem>>, vector<1x32xf32>
    tpu.vector_store %arg21[%c4, %c0_24], %109 {strides = array<i32>} : memref<8x32xf32, #tpu.memory_space<vmem>>, vector<1x32xf32>,
    %111 = vector.extract_strided_slice %7 {offsets = [5, 0], sizes = [1, 128], strides = [1, 1]} : vector<8x128xf32> to vector<1x128xf32>
    %112 = arith.truncf %109 : vector<1x32xf32> to vector<1x32xbf16>
    %cst_25 = arith.constant dense<0.000000e+00> : vector<1x128xf32>
    %113 = tpu.matmul %112, %8, %cst_25 {dimension_numbers = #tpu.dot_dimension_numbers<[1], [0], [0], [1], [0, 0, 1, 1], [], []>} : vector<1x32xbf16>, vector<32x128xbf16>, vector<1x128xf32> -> vector<1x128xf32>
    %114 = arith.addf %111, %113 : vector<1x128xf32>
    %115 = arith.negf %114 : vector<1x128xf32>
    %116 = math.exp %115 : vector<1x128xf32>
    %cst_26 = arith.constant 1.000000e+00 : f32
    %117 = vector.broadcast %cst_26 : f32 to vector<1x128xf32>
    %118 = arith.addf %117, %116 : vector<1x128xf32>
    %119 = arith.divf %117, %118 : vector<1x128xf32>
    %120 = math.tanh %114 : vector<1x128xf32>
    %121 = vector.extract_strided_slice %119 {offsets = [0, 0], sizes = [1, 32], strides = [1, 1]} : vector<1x128xf32> to vector<1x32xf32>
    %122 = vector.extract_strided_slice %119 {offsets = [0, 32], sizes = [1, 32], strides = [1, 1]} : vector<1x128xf32> to vector<1x32xf32>
    %123 = vector.extract_strided_slice %120 {offsets = [0, 64], sizes = [1, 32], strides = [1, 1]} : vector<1x128xf32> to vector<1x32xf32>
    %124 = vector.extract_strided_slice %119 {offsets = [0, 96], sizes = [1, 32], strides = [1, 1]} : vector<1x128xf32> to vector<1x32xf32>
    %125 = arith.mulf %122, %107 : vector<1x32xf32>
    %126 = arith.mulf %121, %123 : vector<1x32xf32>
    %127 = arith.addf %125, %126 : vector<1x32xf32>
    %128 = math.tanh %127 : vector<1x32xf32>
    %129 = arith.mulf %124, %128 : vector<1x32xf32>
    %c5 = arith.constant 5 : index
    %c0_27 = arith.constant 0 : index
    %130 = vector.load %arg21[%c5, %c0_27] : memref<8x32xf32, #tpu.memory_space<vmem>>, vector<1x32xf32>
    tpu.vector_store %arg21[%c5, %c0_27], %129 {strides = array<i32>} : memref<8x32xf32, #tpu.memory_space<vmem>>, vector<1x32xf32>,
    %131 = vector.extract_strided_slice %7 {offsets = [6, 0], sizes = [1, 128], strides = [1, 1]} : vector<8x128xf32> to vector<1x128xf32>
    %132 = arith.truncf %129 : vector<1x32xf32> to vector<1x32xbf16>
    %cst_28 = arith.constant dense<0.000000e+00> : vector<1x128xf32>
    %133 = tpu.matmul %132, %8, %cst_28 {dimension_numbers = #tpu.dot_dimension_numbers<[1], [0], [0], [1], [0, 0, 1, 1], [], []>} : vector<1x32xbf16>, vector<32x128xbf16>, vector<1x128xf32> -> vector<1x128xf32>
    %134 = arith.addf %131, %133 : vector<1x128xf32>
    %135 = arith.negf %134 : vector<1x128xf32>
    %136 = math.exp %135 : vector<1x128xf32>
    %cst_29 = arith.constant 1.000000e+00 : f32
    %137 = vector.broadcast %cst_29 : f32 to vector<1x128xf32>
    %138 = arith.addf %137, %136 : vector<1x128xf32>
    %139 = arith.divf %137, %138 : vector<1x128xf32>
    %140 = math.tanh %134 : vector<1x128xf32>
    %141 = vector.extract_strided_slice %139 {offsets = [0, 0], sizes = [1, 32], strides = [1, 1]} : vector<1x128xf32> to vector<1x32xf32>
    %142 = vector.extract_strided_slice %139 {offsets = [0, 32], sizes = [1, 32], strides = [1, 1]} : vector<1x128xf32> to vector<1x32xf32>
    %143 = vector.extract_strided_slice %140 {offsets = [0, 64], sizes = [1, 32], strides = [1, 1]} : vector<1x128xf32> to vector<1x32xf32>
    %144 = vector.extract_strided_slice %139 {offsets = [0, 96], sizes = [1, 32], strides = [1, 1]} : vector<1x128xf32> to vector<1x32xf32>
    %145 = arith.mulf %142, %127 : vector<1x32xf32>
    %146 = arith.mulf %141, %143 : vector<1x32xf32>
    %147 = arith.addf %145, %146 : vector<1x32xf32>
    %148 = math.tanh %147 : vector<1x32xf32>
    %149 = arith.mulf %144, %148 : vector<1x32xf32>
    %c6 = arith.constant 6 : index
    %c0_30 = arith.constant 0 : index
    %150 = vector.load %arg21[%c6, %c0_30] : memref<8x32xf32, #tpu.memory_space<vmem>>, vector<1x32xf32>
    tpu.vector_store %arg21[%c6, %c0_30], %149 {strides = array<i32>} : memref<8x32xf32, #tpu.memory_space<vmem>>, vector<1x32xf32>,
    %151 = vector.extract_strided_slice %7 {offsets = [7, 0], sizes = [1, 128], strides = [1, 1]} : vector<8x128xf32> to vector<1x128xf32>
    %152 = arith.truncf %149 : vector<1x32xf32> to vector<1x32xbf16>
    %cst_31 = arith.constant dense<0.000000e+00> : vector<1x128xf32>
    %153 = tpu.matmul %152, %8, %cst_31 {dimension_numbers = #tpu.dot_dimension_numbers<[1], [0], [0], [1], [0, 0, 1, 1], [], []>} : vector<1x32xbf16>, vector<32x128xbf16>, vector<1x128xf32> -> vector<1x128xf32>
    %154 = arith.addf %151, %153 : vector<1x128xf32>
    %155 = arith.negf %154 : vector<1x128xf32>
    %156 = math.exp %155 : vector<1x128xf32>
    %cst_32 = arith.constant 1.000000e+00 : f32
    %157 = vector.broadcast %cst_32 : f32 to vector<1x128xf32>
    %158 = arith.addf %157, %156 : vector<1x128xf32>
    %159 = arith.divf %157, %158 : vector<1x128xf32>
    %160 = math.tanh %154 : vector<1x128xf32>
    %161 = vector.extract_strided_slice %159 {offsets = [0, 0], sizes = [1, 32], strides = [1, 1]} : vector<1x128xf32> to vector<1x32xf32>
    %162 = vector.extract_strided_slice %159 {offsets = [0, 32], sizes = [1, 32], strides = [1, 1]} : vector<1x128xf32> to vector<1x32xf32>
    %163 = vector.extract_strided_slice %160 {offsets = [0, 64], sizes = [1, 32], strides = [1, 1]} : vector<1x128xf32> to vector<1x32xf32>
    %164 = vector.extract_strided_slice %159 {offsets = [0, 96], sizes = [1, 32], strides = [1, 1]} : vector<1x128xf32> to vector<1x32xf32>
    %165 = arith.mulf %162, %147 : vector<1x32xf32>
    %166 = arith.mulf %161, %163 : vector<1x32xf32>
    %167 = arith.addf %165, %166 : vector<1x32xf32>
    %168 = math.tanh %167 : vector<1x32xf32>
    %169 = arith.mulf %164, %168 : vector<1x32xf32>
    %c7 = arith.constant 7 : index
    %c0_33 = arith.constant 0 : index
    %170 = vector.load %arg21[%c7, %c0_33] : memref<8x32xf32, #tpu.memory_space<vmem>>, vector<1x32xf32>
    tpu.vector_store %arg21[%c7, %c0_33], %169 {strides = array<i32>} : memref<8x32xf32, #tpu.memory_space<vmem>>, vector<1x32xf32>,
    %c0_34 = arith.constant 0 : index
    %c0_35 = arith.constant 0 : index
    %171 = vector.load %arg21[%c0_34, %c0_35] : memref<8x32xf32, #tpu.memory_space<vmem>>, vector<8x32xf32>
    %c0_36 = arith.constant 0 : index
    %c0_37 = arith.constant 0 : index
    %172 = vector.load %arg7[%c0_36, %c0_37] : memref<1x128xf32, #tpu.memory_space<vmem>>, vector<1x128xf32>
    %173 = arith.truncf %171 : vector<8x32xf32> to vector<8x32xbf16>
    %c0_38 = arith.constant 0 : index
    %c0_39 = arith.constant 0 : index
    %174 = vector.load %arg5[%c0_38, %c0_39] : memref<32x128xbf16, #tpu.memory_space<vmem>>, vector<32x128xbf16>
    %cst_40 = arith.constant dense<0.000000e+00> : vector<8x128xf32>
    %175 = tpu.matmul %173, %174, %cst_40 {dimension_numbers = #tpu.dot_dimension_numbers<[1], [0], [0], [1], [0, 0, 1, 1], [], []>} : vector<8x32xbf16>, vector<32x128xbf16>, vector<8x128xf32> -> vector<8x128xf32>
    %176 = vector.broadcast %172 : vector<1x128xf32> to vector<8x128xf32>
    %177 = arith.addf %175, %176 : vector<8x128xf32>
    %c0_41 = arith.constant 0 : index
    %c0_42 = arith.constant 0 : index
    %178 = vector.load %arg6[%c0_41, %c0_42] : memref<32x128xbf16, #tpu.memory_space<vmem>>, vector<32x128xbf16>
    %cst_43 = arith.constant 0.000000e+00 : f32
    %179 = vector.broadcast %cst_43 : f32 to vector<1x32xf32>
    %cst_44 = arith.constant 0.000000e+00 : f32
    %180 = vector.broadcast %cst_44 : f32 to vector<1x32xf32>
    %181 = vector.extract_strided_slice %177 {offsets = [0, 0], sizes = [1, 128], strides = [1, 1]} : vector<8x128xf32> to vector<1x128xf32>
    %182 = arith.truncf %179 : vector<1x32xf32> to vector<1x32xbf16>
    %cst_45 = arith.constant dense<0.000000e+00> : vector<1x128xf32>
    %183 = tpu.matmul %182, %178, %cst_45 {dimension_numbers = #tpu.dot_dimension_numbers<[1], [0], [0], [1], [0, 0, 1, 1], [], []>} : vector<1x32xbf16>, vector<32x128xbf16>, vector<1x128xf32> -> vector<1x128xf32>
    %184 = arith.addf %181, %183 : vector<1x128xf32>
    %185 = arith.negf %184 : vector<1x128xf32>
    %186 = math.exp %185 : vector<1x128xf32>
    %cst_46 = arith.constant 1.000000e+00 : f32
    %187 = vector.broadcast %cst_46 : f32 to vector<1x128xf32>
    %188 = arith.addf %187, %186 : vector<1x128xf32>
    %189 = arith.divf %187, %188 : vector<1x128xf32>
    %190 = math.tanh %184 : vector<1x128xf32>
    %191 = vector.extract_strided_slice %189 {offsets = [0, 0], sizes = [1, 32], strides = [1, 1]} : vector<1x128xf32> to vector<1x32xf32>
    %192 = vector.extract_strided_slice %189 {offsets = [0, 32], sizes = [1, 32], strides = [1, 1]} : vector<1x128xf32> to vector<1x32xf32>
    %193 = vector.extract_strided_slice %190 {offsets = [0, 64], sizes = [1, 32], strides = [1, 1]} : vector<1x128xf32> to vector<1x32xf32>
    %194 = vector.extract_strided_slice %189 {offsets = [0, 96], sizes = [1, 32], strides = [1, 1]} : vector<1x128xf32> to vector<1x32xf32>
    %195 = arith.mulf %192, %180 : vector<1x32xf32>
    %196 = arith.mulf %191, %193 : vector<1x32xf32>
    %197 = arith.addf %195, %196 : vector<1x32xf32>
    %198 = math.tanh %197 : vector<1x32xf32>
    %199 = arith.mulf %194, %198 : vector<1x32xf32>
    %c0_47 = arith.constant 0 : index
    %c0_48 = arith.constant 0 : index
    %200 = vector.load %arg22[%c0_47, %c0_48] : memref<8x32xf32, #tpu.memory_space<vmem>>, vector<1x32xf32>
    tpu.vector_store %arg22[%c0_47, %c0_48], %199 {strides = array<i32>} : memref<8x32xf32, #tpu.memory_space<vmem>>, vector<1x32xf32>,
    %201 = vector.extract_strided_slice %177 {offsets = [1, 0], sizes = [1, 128], strides = [1, 1]} : vector<8x128xf32> to vector<1x128xf32>
    %202 = arith.truncf %199 : vector<1x32xf32> to vector<1x32xbf16>
    %cst_49 = arith.constant dense<0.000000e+00> : vector<1x128xf32>
    %203 = tpu.matmul %202, %178, %cst_49 {dimension_numbers = #tpu.dot_dimension_numbers<[1], [0], [0], [1], [0, 0, 1, 1], [], []>} : vector<1x32xbf16>, vector<32x128xbf16>, vector<1x128xf32> -> vector<1x128xf32>
    %204 = arith.addf %201, %203 : vector<1x128xf32>
    %205 = arith.negf %204 : vector<1x128xf32>
    %206 = math.exp %205 : vector<1x128xf32>
    %cst_50 = arith.constant 1.000000e+00 : f32
    %207 = vector.broadcast %cst_50 : f32 to vector<1x128xf32>
    %208 = arith.addf %207, %206 : vector<1x128xf32>
    %209 = arith.divf %207, %208 : vector<1x128xf32>
    %210 = math.tanh %204 : vector<1x128xf32>
    %211 = vector.extract_strided_slice %209 {offsets = [0, 0], sizes = [1, 32], strides = [1, 1]} : vector<1x128xf32> to vector<1x32xf32>
    %212 = vector.extract_strided_slice %209 {offsets = [0, 32], sizes = [1, 32], strides = [1, 1]} : vector<1x128xf32> to vector<1x32xf32>
    %213 = vector.extract_strided_slice %210 {offsets = [0, 64], sizes = [1, 32], strides = [1, 1]} : vector<1x128xf32> to vector<1x32xf32>
    %214 = vector.extract_strided_slice %209 {offsets = [0, 96], sizes = [1, 32], strides = [1, 1]} : vector<1x128xf32> to vector<1x32xf32>
    %215 = arith.mulf %212, %197 : vector<1x32xf32>
    %216 = arith.mulf %211, %213 : vector<1x32xf32>
    %217 = arith.addf %215, %216 : vector<1x32xf32>
    %218 = math.tanh %217 : vector<1x32xf32>
    %219 = arith.mulf %214, %218 : vector<1x32xf32>
    %c1_51 = arith.constant 1 : index
    %c0_52 = arith.constant 0 : index
    %220 = vector.load %arg22[%c1_51, %c0_52] : memref<8x32xf32, #tpu.memory_space<vmem>>, vector<1x32xf32>
    tpu.vector_store %arg22[%c1_51, %c0_52], %219 {strides = array<i32>} : memref<8x32xf32, #tpu.memory_space<vmem>>, vector<1x32xf32>,
    %221 = vector.extract_strided_slice %177 {offsets = [2, 0], sizes = [1, 128], strides = [1, 1]} : vector<8x128xf32> to vector<1x128xf32>
    %222 = arith.truncf %219 : vector<1x32xf32> to vector<1x32xbf16>
    %cst_53 = arith.constant dense<0.000000e+00> : vector<1x128xf32>
    %223 = tpu.matmul %222, %178, %cst_53 {dimension_numbers = #tpu.dot_dimension_numbers<[1], [0], [0], [1], [0, 0, 1, 1], [], []>} : vector<1x32xbf16>, vector<32x128xbf16>, vector<1x128xf32> -> vector<1x128xf32>
    %224 = arith.addf %221, %223 : vector<1x128xf32>
    %225 = arith.negf %224 : vector<1x128xf32>
    %226 = math.exp %225 : vector<1x128xf32>
    %cst_54 = arith.constant 1.000000e+00 : f32
    %227 = vector.broadcast %cst_54 : f32 to vector<1x128xf32>
    %228 = arith.addf %227, %226 : vector<1x128xf32>
    %229 = arith.divf %227, %228 : vector<1x128xf32>
    %230 = math.tanh %224 : vector<1x128xf32>
    %231 = vector.extract_strided_slice %229 {offsets = [0, 0], sizes = [1, 32], strides = [1, 1]} : vector<1x128xf32> to vector<1x32xf32>
    %232 = vector.extract_strided_slice %229 {offsets = [0, 32], sizes = [1, 32], strides = [1, 1]} : vector<1x128xf32> to vector<1x32xf32>
    %233 = vector.extract_strided_slice %230 {offsets = [0, 64], sizes = [1, 32], strides = [1, 1]} : vector<1x128xf32> to vector<1x32xf32>
    %234 = vector.extract_strided_slice %229 {offsets = [0, 96], sizes = [1, 32], strides = [1, 1]} : vector<1x128xf32> to vector<1x32xf32>
    %235 = arith.mulf %232, %217 : vector<1x32xf32>
    %236 = arith.mulf %231, %233 : vector<1x32xf32>
    %237 = arith.addf %235, %236 : vector<1x32xf32>
    %238 = math.tanh %237 : vector<1x32xf32>
    %239 = arith.mulf %234, %238 : vector<1x32xf32>
    %c2_55 = arith.constant 2 : index
    %c0_56 = arith.constant 0 : index
    %240 = vector.load %arg22[%c2_55, %c0_56] : memref<8x32xf32, #tpu.memory_space<vmem>>, vector<1x32xf32>
    tpu.vector_store %arg22[%c2_55, %c0_56], %239 {strides = array<i32>} : memref<8x32xf32, #tpu.memory_space<vmem>>, vector<1x32xf32>,
    %241 = vector.extract_strided_slice %177 {offsets = [3, 0], sizes = [1, 128], strides = [1, 1]} : vector<8x128xf32> to vector<1x128xf32>
    %242 = arith.truncf %239 : vector<1x32xf32> to vector<1x32xbf16>
    %cst_57 = arith.constant dense<0.000000e+00> : vector<1x128xf32>
    %243 = tpu.matmul %242, %178, %cst_57 {dimension_numbers = #tpu.dot_dimension_numbers<[1], [0], [0], [1], [0, 0, 1, 1], [], []>} : vector<1x32xbf16>, vector<32x128xbf16>, vector<1x128xf32> -> vector<1x128xf32>
    %244 = arith.addf %241, %243 : vector<1x128xf32>
    %245 = arith.negf %244 : vector<1x128xf32>
    %246 = math.exp %245 : vector<1x128xf32>
    %cst_58 = arith.constant 1.000000e+00 : f32
    %247 = vector.broadcast %cst_58 : f32 to vector<1x128xf32>
    %248 = arith.addf %247, %246 : vector<1x128xf32>
    %249 = arith.divf %247, %248 : vector<1x128xf32>
    %250 = math.tanh %244 : vector<1x128xf32>
    %251 = vector.extract_strided_slice %249 {offsets = [0, 0], sizes = [1, 32], strides = [1, 1]} : vector<1x128xf32> to vector<1x32xf32>
    %252 = vector.extract_strided_slice %249 {offsets = [0, 32], sizes = [1, 32], strides = [1, 1]} : vector<1x128xf32> to vector<1x32xf32>
    %253 = vector.extract_strided_slice %250 {offsets = [0, 64], sizes = [1, 32], strides = [1, 1]} : vector<1x128xf32> to vector<1x32xf32>
    %254 = vector.extract_strided_slice %249 {offsets = [0, 96], sizes = [1, 32], strides = [1, 1]} : vector<1x128xf32> to vector<1x32xf32>
    %255 = arith.mulf %252, %237 : vector<1x32xf32>
    %256 = arith.mulf %251, %253 : vector<1x32xf32>
    %257 = arith.addf %255, %256 : vector<1x32xf32>
    %258 = math.tanh %257 : vector<1x32xf32>
    %259 = arith.mulf %254, %258 : vector<1x32xf32>
    %c3_59 = arith.constant 3 : index
    %c0_60 = arith.constant 0 : index
    %260 = vector.load %arg22[%c3_59, %c0_60] : memref<8x32xf32, #tpu.memory_space<vmem>>, vector<1x32xf32>
    tpu.vector_store %arg22[%c3_59, %c0_60], %259 {strides = array<i32>} : memref<8x32xf32, #tpu.memory_space<vmem>>, vector<1x32xf32>,
    %261 = vector.extract_strided_slice %177 {offsets = [4, 0], sizes = [1, 128], strides = [1, 1]} : vector<8x128xf32> to vector<1x128xf32>
    %262 = arith.truncf %259 : vector<1x32xf32> to vector<1x32xbf16>
    %cst_61 = arith.constant dense<0.000000e+00> : vector<1x128xf32>
    %263 = tpu.matmul %262, %178, %cst_61 {dimension_numbers = #tpu.dot_dimension_numbers<[1], [0], [0], [1], [0, 0, 1, 1], [], []>} : vector<1x32xbf16>, vector<32x128xbf16>, vector<1x128xf32> -> vector<1x128xf32>
    %264 = arith.addf %261, %263 : vector<1x128xf32>
    %265 = arith.negf %264 : vector<1x128xf32>
    %266 = math.exp %265 : vector<1x128xf32>
    %cst_62 = arith.constant 1.000000e+00 : f32
    %267 = vector.broadcast %cst_62 : f32 to vector<1x128xf32>
    %268 = arith.addf %267, %266 : vector<1x128xf32>
    %269 = arith.divf %267, %268 : vector<1x128xf32>
    %270 = math.tanh %264 : vector<1x128xf32>
    %271 = vector.extract_strided_slice %269 {offsets = [0, 0], sizes = [1, 32], strides = [1, 1]} : vector<1x128xf32> to vector<1x32xf32>
    %272 = vector.extract_strided_slice %269 {offsets = [0, 32], sizes = [1, 32], strides = [1, 1]} : vector<1x128xf32> to vector<1x32xf32>
    %273 = vector.extract_strided_slice %270 {offsets = [0, 64], sizes = [1, 32], strides = [1, 1]} : vector<1x128xf32> to vector<1x32xf32>
    %274 = vector.extract_strided_slice %269 {offsets = [0, 96], sizes = [1, 32], strides = [1, 1]} : vector<1x128xf32> to vector<1x32xf32>
    %275 = arith.mulf %272, %257 : vector<1x32xf32>
    %276 = arith.mulf %271, %273 : vector<1x32xf32>
    %277 = arith.addf %275, %276 : vector<1x32xf32>
    %278 = math.tanh %277 : vector<1x32xf32>
    %279 = arith.mulf %274, %278 : vector<1x32xf32>
    %c4_63 = arith.constant 4 : index
    %c0_64 = arith.constant 0 : index
    %280 = vector.load %arg22[%c4_63, %c0_64] : memref<8x32xf32, #tpu.memory_space<vmem>>, vector<1x32xf32>
    tpu.vector_store %arg22[%c4_63, %c0_64], %279 {strides = array<i32>} : memref<8x32xf32, #tpu.memory_space<vmem>>, vector<1x32xf32>,
    %281 = vector.extract_strided_slice %177 {offsets = [5, 0], sizes = [1, 128], strides = [1, 1]} : vector<8x128xf32> to vector<1x128xf32>
    %282 = arith.truncf %279 : vector<1x32xf32> to vector<1x32xbf16>
    %cst_65 = arith.constant dense<0.000000e+00> : vector<1x128xf32>
    %283 = tpu.matmul %282, %178, %cst_65 {dimension_numbers = #tpu.dot_dimension_numbers<[1], [0], [0], [1], [0, 0, 1, 1], [], []>} : vector<1x32xbf16>, vector<32x128xbf16>, vector<1x128xf32> -> vector<1x128xf32>
    %284 = arith.addf %281, %283 : vector<1x128xf32>
    %285 = arith.negf %284 : vector<1x128xf32>
    %286 = math.exp %285 : vector<1x128xf32>
    %cst_66 = arith.constant 1.000000e+00 : f32
    %287 = vector.broadcast %cst_66 : f32 to vector<1x128xf32>
    %288 = arith.addf %287, %286 : vector<1x128xf32>
    %289 = arith.divf %287, %288 : vector<1x128xf32>
    %290 = math.tanh %284 : vector<1x128xf32>
    %291 = vector.extract_strided_slice %289 {offsets = [0, 0], sizes = [1, 32], strides = [1, 1]} : vector<1x128xf32> to vector<1x32xf32>
    %292 = vector.extract_strided_slice %289 {offsets = [0, 32], sizes = [1, 32], strides = [1, 1]} : vector<1x128xf32> to vector<1x32xf32>
    %293 = vector.extract_strided_slice %290 {offsets = [0, 64], sizes = [1, 32], strides = [1, 1]} : vector<1x128xf32> to vector<1x32xf32>
    %294 = vector.extract_strided_slice %289 {offsets = [0, 96], sizes = [1, 32], strides = [1, 1]} : vector<1x128xf32> to vector<1x32xf32>
    %295 = arith.mulf %292, %277 : vector<1x32xf32>
    %296 = arith.mulf %291, %293 : vector<1x32xf32>
    %297 = arith.addf %295, %296 : vector<1x32xf32>
    %298 = math.tanh %297 : vector<1x32xf32>
    %299 = arith.mulf %294, %298 : vector<1x32xf32>
    %c5_67 = arith.constant 5 : index
    %c0_68 = arith.constant 0 : index
    %300 = vector.load %arg22[%c5_67, %c0_68] : memref<8x32xf32, #tpu.memory_space<vmem>>, vector<1x32xf32>
    tpu.vector_store %arg22[%c5_67, %c0_68], %299 {strides = array<i32>} : memref<8x32xf32, #tpu.memory_space<vmem>>, vector<1x32xf32>,
    %301 = vector.extract_strided_slice %177 {offsets = [6, 0], sizes = [1, 128], strides = [1, 1]} : vector<8x128xf32> to vector<1x128xf32>
    %302 = arith.truncf %299 : vector<1x32xf32> to vector<1x32xbf16>
    %cst_69 = arith.constant dense<0.000000e+00> : vector<1x128xf32>
    %303 = tpu.matmul %302, %178, %cst_69 {dimension_numbers = #tpu.dot_dimension_numbers<[1], [0], [0], [1], [0, 0, 1, 1], [], []>} : vector<1x32xbf16>, vector<32x128xbf16>, vector<1x128xf32> -> vector<1x128xf32>
    %304 = arith.addf %301, %303 : vector<1x128xf32>
    %305 = arith.negf %304 : vector<1x128xf32>
    %306 = math.exp %305 : vector<1x128xf32>
    %cst_70 = arith.constant 1.000000e+00 : f32
    %307 = vector.broadcast %cst_70 : f32 to vector<1x128xf32>
    %308 = arith.addf %307, %306 : vector<1x128xf32>
    %309 = arith.divf %307, %308 : vector<1x128xf32>
    %310 = math.tanh %304 : vector<1x128xf32>
    %311 = vector.extract_strided_slice %309 {offsets = [0, 0], sizes = [1, 32], strides = [1, 1]} : vector<1x128xf32> to vector<1x32xf32>
    %312 = vector.extract_strided_slice %309 {offsets = [0, 32], sizes = [1, 32], strides = [1, 1]} : vector<1x128xf32> to vector<1x32xf32>
    %313 = vector.extract_strided_slice %310 {offsets = [0, 64], sizes = [1, 32], strides = [1, 1]} : vector<1x128xf32> to vector<1x32xf32>
    %314 = vector.extract_strided_slice %309 {offsets = [0, 96], sizes = [1, 32], strides = [1, 1]} : vector<1x128xf32> to vector<1x32xf32>
    %315 = arith.mulf %312, %297 : vector<1x32xf32>
    %316 = arith.mulf %311, %313 : vector<1x32xf32>
    %317 = arith.addf %315, %316 : vector<1x32xf32>
    %318 = math.tanh %317 : vector<1x32xf32>
    %319 = arith.mulf %314, %318 : vector<1x32xf32>
    %c6_71 = arith.constant 6 : index
    %c0_72 = arith.constant 0 : index
    %320 = vector.load %arg22[%c6_71, %c0_72] : memref<8x32xf32, #tpu.memory_space<vmem>>, vector<1x32xf32>
    tpu.vector_store %arg22[%c6_71, %c0_72], %319 {strides = array<i32>} : memref<8x32xf32, #tpu.memory_space<vmem>>, vector<1x32xf32>,
    %321 = vector.extract_strided_slice %177 {offsets = [7, 0], sizes = [1, 128], strides = [1, 1]} : vector<8x128xf32> to vector<1x128xf32>
    %322 = arith.truncf %319 : vector<1x32xf32> to vector<1x32xbf16>
    %cst_73 = arith.constant dense<0.000000e+00> : vector<1x128xf32>
    %323 = tpu.matmul %322, %178, %cst_73 {dimension_numbers = #tpu.dot_dimension_numbers<[1], [0], [0], [1], [0, 0, 1, 1], [], []>} : vector<1x32xbf16>, vector<32x128xbf16>, vector<1x128xf32> -> vector<1x128xf32>
    %324 = arith.addf %321, %323 : vector<1x128xf32>
    %325 = arith.negf %324 : vector<1x128xf32>
    %326 = math.exp %325 : vector<1x128xf32>
    %cst_74 = arith.constant 1.000000e+00 : f32
    %327 = vector.broadcast %cst_74 : f32 to vector<1x128xf32>
    %328 = arith.addf %327, %326 : vector<1x128xf32>
    %329 = arith.divf %327, %328 : vector<1x128xf32>
    %330 = math.tanh %324 : vector<1x128xf32>
    %331 = vector.extract_strided_slice %329 {offsets = [0, 0], sizes = [1, 32], strides = [1, 1]} : vector<1x128xf32> to vector<1x32xf32>
    %332 = vector.extract_strided_slice %329 {offsets = [0, 32], sizes = [1, 32], strides = [1, 1]} : vector<1x128xf32> to vector<1x32xf32>
    %333 = vector.extract_strided_slice %330 {offsets = [0, 64], sizes = [1, 32], strides = [1, 1]} : vector<1x128xf32> to vector<1x32xf32>
    %334 = vector.extract_strided_slice %329 {offsets = [0, 96], sizes = [1, 32], strides = [1, 1]} : vector<1x128xf32> to vector<1x32xf32>
    %335 = arith.mulf %332, %317 : vector<1x32xf32>
    %336 = arith.mulf %331, %333 : vector<1x32xf32>
    %337 = arith.addf %335, %336 : vector<1x32xf32>
    %338 = math.tanh %337 : vector<1x32xf32>
    %339 = arith.mulf %334, %338 : vector<1x32xf32>
    %c7_75 = arith.constant 7 : index
    %c0_76 = arith.constant 0 : index
    %340 = vector.load %arg22[%c7_75, %c0_76] : memref<8x32xf32, #tpu.memory_space<vmem>>, vector<1x32xf32>
    tpu.vector_store %arg22[%c7_75, %c0_76], %339 {strides = array<i32>} : memref<8x32xf32, #tpu.memory_space<vmem>>, vector<1x32xf32>,
    %c0_77 = arith.constant 0 : index
    %c0_78 = arith.constant 0 : index
    %341 = vector.load %arg22[%c0_77, %c0_78] : memref<8x32xf32, #tpu.memory_space<vmem>>, vector<8x32xf32>
    %c0_79 = arith.constant 0 : index
    %c0_80 = arith.constant 0 : index
    %342 = vector.load %arg9[%c0_79, %c0_80] : memref<1x96xf32, #tpu.memory_space<vmem>>, vector<1x96xf32>
    %343 = arith.truncf %341 : vector<8x32xf32> to vector<8x32xbf16>
    %c0_81 = arith.constant 0 : index
    %c0_82 = arith.constant 0 : index
    %344 = vector.load %arg8[%c0_81, %c0_82] : memref<32x96xbf16, #tpu.memory_space<vmem>>, vector<32x96xbf16>
    %cst_83 = arith.constant dense<0.000000e+00> : vector<8x96xf32>
    %345 = tpu.matmul %343, %344, %cst_83 {dimension_numbers = #tpu.dot_dimension_numbers<[1], [0], [0], [1], [0, 0, 1, 1], [], []>} : vector<8x32xbf16>, vector<32x96xbf16>, vector<8x96xf32> -> vector<8x96xf32>
    %346 = vector.broadcast %342 : vector<1x96xf32> to vector<8x96xf32>
    %347 = arith.addf %345, %346 : vector<8x96xf32>
    %348 = vector.extract_strided_slice %347 {offsets = [0, 0], sizes = [8, 32], strides = [1, 1]} : vector<8x96xf32> to vector<8x32xf32>
    %349 = vector.extract_strided_slice %347 {offsets = [0, 32], sizes = [8, 32], strides = [1, 1]} : vector<8x96xf32> to vector<8x32xf32>
    %350 = vector.extract_strided_slice %347 {offsets = [0, 64], sizes = [8, 32], strides = [1, 1]} : vector<8x96xf32> to vector<8x32xf32>
    %351 = arith.truncf %348 : vector<8x32xf32> to vector<8x32xbf16>
    %cst_84 = arith.constant 0.000000e+00 : f32
    %352 = vector.broadcast %cst_84 : f32 to vector<8x32xf32>
    %c0_i32 = arith.constant 0 : i32
    %353 = vector.broadcast %c0_i32 : i32 to vector<8x32xi32>
    %354 = arith.cmpi sge, %0, %353 : vector<8x32xi32>
    %c8_i32 = arith.constant 8 : i32
    %355 = vector.broadcast %c8_i32 : i32 to vector<8x32xi32>
    %356 = arith.cmpi slt, %0, %355 : vector<8x32xi32>
    %357 = arith.andi %354, %356 : vector<8x32xi1>
    %cst_85 = arith.constant 0.000000e+00 : f32
    %358 = vector.broadcast %cst_85 : f32 to vector<8x32xf32>
    %359 = arith.select %357, %349, %358 : vector<8x32xi1>, vector<8x32xf32>
    %360 = arith.truncf %359 : vector<8x32xf32> to vector<8x32xbf16>
    %cst_86 = arith.constant 0.000000e+00 : f32
    %361 = vector.broadcast %cst_86 : f32 to vector<8x32xf32>
    %362 = arith.select %357, %350, %361 : vector<8x32xi1>, vector<8x32xf32>
    %363 = arith.truncf %362 : vector<8x32xf32> to vector<8x32xbf16>
    %cst_87 = arith.constant dense<0.000000e+00> : vector<8x8xf32>
    %364 = tpu.matmul %351, %360, %cst_87 {dimension_numbers = #tpu.dot_dimension_numbers<[1], [1], [0], [0], [0, 0, 1, 0], [], []>} : vector<8x32xbf16>, vector<8x32xbf16>, vector<8x8xf32> -> vector<8x8xf32>
    %cst_88 = arith.constant 0.353553385 : f32
    %365 = vector.broadcast %cst_88 : f32 to vector<8x8xf32>
    %366 = arith.mulf %364, %365 : vector<8x8xf32>
    %cst_89 = arith.constant dense<0xFF800000> : vector<8xf32>
    %367 = vector.multi_reduction <maximumf>, %366, %cst_89 [1] : vector<8x8xf32> to vector<8xf32>
    %368 = vector.shape_cast %367 : vector<8xf32> to vector<8x1xf32>
    %369 = vector.broadcast %368 : vector<8x1xf32> to vector<8x8xf32>
    %370 = arith.subf %366, %369 : vector<8x8xf32>
    %371 = math.exp %370 : vector<8x8xf32>
    %cst_90 = arith.constant dense<0.000000e+00> : vector<8xf32>
    %372 = vector.multi_reduction <add>, %371, %cst_90 [1] : vector<8x8xf32> to vector<8xf32>
    %373 = vector.shape_cast %372 : vector<8xf32> to vector<8x1xf32>
    %374 = tpu.reciprocal %373 {approx = true} : vector<8x1xf32> -> vector<8x1xf32>
    %375 = vector.broadcast %374 : vector<8x1xf32> to vector<8x8xf32>
    %376 = arith.mulf %371, %375 : vector<8x8xf32>
    %377 = arith.truncf %376 : vector<8x8xf32> to vector<8x8xbf16>
    %cst_91 = arith.constant dense<0.000000e+00> : vector<8x32xf32>
    %378 = tpu.matmul %377, %363, %cst_91 {dimension_numbers = #tpu.dot_dimension_numbers<[1], [0], [0], [1], [0, 0, 1, 1], [], []>} : vector<8x8xbf16>, vector<8x32xbf16>, vector<8x32xf32> -> vector<8x32xf32>
    %379 = arith.addf %352, %378 : vector<8x32xf32>
    %c8_i32_92 = arith.constant 8 : i32
    %380 = vector.broadcast %c8_i32_92 : i32 to vector<8x32xi32>
    %381 = arith.cmpi sge, %0, %380 : vector<8x32xi32>
    %c16_i32 = arith.constant 16 : i32
    %382 = vector.broadcast %c16_i32 : i32 to vector<8x32xi32>
    %383 = arith.cmpi slt, %0, %382 : vector<8x32xi32>
    %384 = arith.andi %381, %383 : vector<8x32xi1>
    %cst_93 = arith.constant 0.000000e+00 : f32
    %385 = vector.broadcast %cst_93 : f32 to vector<8x32xf32>
    %386 = arith.select %384, %349, %385 : vector<8x32xi1>, vector<8x32xf32>
    %387 = arith.truncf %386 : vector<8x32xf32> to vector<8x32xbf16>
    %cst_94 = arith.constant 0.000000e+00 : f32
    %388 = vector.broadcast %cst_94 : f32 to vector<8x32xf32>
    %389 = arith.select %384, %350, %388 : vector<8x32xi1>, vector<8x32xf32>
    %390 = arith.truncf %389 : vector<8x32xf32> to vector<8x32xbf16>
    %cst_95 = arith.constant dense<0.000000e+00> : vector<8x8xf32>
    %391 = tpu.matmul %351, %387, %cst_95 {dimension_numbers = #tpu.dot_dimension_numbers<[1], [1], [0], [0], [0, 0, 1, 0], [], []>} : vector<8x32xbf16>, vector<8x32xbf16>, vector<8x8xf32> -> vector<8x8xf32>
    %cst_96 = arith.constant 0.353553385 : f32
    %392 = vector.broadcast %cst_96 : f32 to vector<8x8xf32>
    %393 = arith.mulf %391, %392 : vector<8x8xf32>
    %cst_97 = arith.constant dense<0xFF800000> : vector<8xf32>
    %394 = vector.multi_reduction <maximumf>, %393, %cst_97 [1] : vector<8x8xf32> to vector<8xf32>
    %395 = vector.shape_cast %394 : vector<8xf32> to vector<8x1xf32>
    %396 = vector.broadcast %395 : vector<8x1xf32> to vector<8x8xf32>
    %397 = arith.subf %393, %396 : vector<8x8xf32>
    %398 = math.exp %397 : vector<8x8xf32>
    %cst_98 = arith.constant dense<0.000000e+00> : vector<8xf32>
    %399 = vector.multi_reduction <add>, %398, %cst_98 [1] : vector<8x8xf32> to vector<8xf32>
    %400 = vector.shape_cast %399 : vector<8xf32> to vector<8x1xf32>
    %401 = tpu.reciprocal %400 {approx = true} : vector<8x1xf32> -> vector<8x1xf32>
    %402 = vector.broadcast %401 : vector<8x1xf32> to vector<8x8xf32>
    %403 = arith.mulf %398, %402 : vector<8x8xf32>
    %404 = arith.truncf %403 : vector<8x8xf32> to vector<8x8xbf16>
    %cst_99 = arith.constant dense<0.000000e+00> : vector<8x32xf32>
    %405 = tpu.matmul %404, %390, %cst_99 {dimension_numbers = #tpu.dot_dimension_numbers<[1], [0], [0], [1], [0, 0, 1, 1], [], []>} : vector<8x8xbf16>, vector<8x32xbf16>, vector<8x32xf32> -> vector<8x32xf32>
    %406 = arith.addf %379, %405 : vector<8x32xf32>
    %c16_i32_100 = arith.constant 16 : i32
    %407 = vector.broadcast %c16_i32_100 : i32 to vector<8x32xi32>
    %408 = arith.cmpi sge, %0, %407 : vector<8x32xi32>
    %c24_i32 = arith.constant 24 : i32
    %409 = vector.broadcast %c24_i32 : i32 to vector<8x32xi32>
    %410 = arith.cmpi slt, %0, %409 : vector<8x32xi32>
    %411 = arith.andi %408, %410 : vector<8x32xi1>
    %cst_101 = arith.constant 0.000000e+00 : f32
    %412 = vector.broadcast %cst_101 : f32 to vector<8x32xf32>
    %413 = arith.select %411, %349, %412 : vector<8x32xi1>, vector<8x32xf32>
    %414 = arith.truncf %413 : vector<8x32xf32> to vector<8x32xbf16>
    %cst_102 = arith.constant 0.000000e+00 : f32
    %415 = vector.broadcast %cst_102 : f32 to vector<8x32xf32>
    %416 = arith.select %411, %350, %415 : vector<8x32xi1>, vector<8x32xf32>
    %417 = arith.truncf %416 : vector<8x32xf32> to vector<8x32xbf16>
    %cst_103 = arith.constant dense<0.000000e+00> : vector<8x8xf32>
    %418 = tpu.matmul %351, %414, %cst_103 {dimension_numbers = #tpu.dot_dimension_numbers<[1], [1], [0], [0], [0, 0, 1, 0], [], []>} : vector<8x32xbf16>, vector<8x32xbf16>, vector<8x8xf32> -> vector<8x8xf32>
    %cst_104 = arith.constant 0.353553385 : f32
    %419 = vector.broadcast %cst_104 : f32 to vector<8x8xf32>
    %420 = arith.mulf %418, %419 : vector<8x8xf32>
    %cst_105 = arith.constant dense<0xFF800000> : vector<8xf32>
    %421 = vector.multi_reduction <maximumf>, %420, %cst_105 [1] : vector<8x8xf32> to vector<8xf32>
    %422 = vector.shape_cast %421 : vector<8xf32> to vector<8x1xf32>
    %423 = vector.broadcast %422 : vector<8x1xf32> to vector<8x8xf32>
    %424 = arith.subf %420, %423 : vector<8x8xf32>
    %425 = math.exp %424 : vector<8x8xf32>
    %cst_106 = arith.constant dense<0.000000e+00> : vector<8xf32>
    %426 = vector.multi_reduction <add>, %425, %cst_106 [1] : vector<8x8xf32> to vector<8xf32>
    %427 = vector.shape_cast %426 : vector<8xf32> to vector<8x1xf32>
    %428 = tpu.reciprocal %427 {approx = true} : vector<8x1xf32> -> vector<8x1xf32>
    %429 = vector.broadcast %428 : vector<8x1xf32> to vector<8x8xf32>
    %430 = arith.mulf %425, %429 : vector<8x8xf32>
    %431 = arith.truncf %430 : vector<8x8xf32> to vector<8x8xbf16>
    %cst_107 = arith.constant dense<0.000000e+00> : vector<8x32xf32>
    %432 = tpu.matmul %431, %417, %cst_107 {dimension_numbers = #tpu.dot_dimension_numbers<[1], [0], [0], [1], [0, 0, 1, 1], [], []>} : vector<8x8xbf16>, vector<8x32xbf16>, vector<8x32xf32> -> vector<8x32xf32>
    %433 = arith.addf %406, %432 : vector<8x32xf32>
    %c24_i32_108 = arith.constant 24 : i32
    %434 = vector.broadcast %c24_i32_108 : i32 to vector<8x32xi32>
    %435 = arith.cmpi sge, %0, %434 : vector<8x32xi32>
    %c32_i32 = arith.constant 32 : i32
    %436 = vector.broadcast %c32_i32 : i32 to vector<8x32xi32>
    %437 = arith.cmpi slt, %0, %436 : vector<8x32xi32>
    %438 = arith.andi %435, %437 : vector<8x32xi1>
    %cst_109 = arith.constant 0.000000e+00 : f32
    %439 = vector.broadcast %cst_109 : f32 to vector<8x32xf32>
    %440 = arith.select %438, %349, %439 : vector<8x32xi1>, vector<8x32xf32>
    %441 = arith.truncf %440 : vector<8x32xf32> to vector<8x32xbf16>
    %cst_110 = arith.constant 0.000000e+00 : f32
    %442 = vector.broadcast %cst_110 : f32 to vector<8x32xf32>
    %443 = arith.select %438, %350, %442 : vector<8x32xi1>, vector<8x32xf32>
    %444 = arith.truncf %443 : vector<8x32xf32> to vector<8x32xbf16>
    %cst_111 = arith.constant dense<0.000000e+00> : vector<8x8xf32>
    %445 = tpu.matmul %351, %441, %cst_111 {dimension_numbers = #tpu.dot_dimension_numbers<[1], [1], [0], [0], [0, 0, 1, 0], [], []>} : vector<8x32xbf16>, vector<8x32xbf16>, vector<8x8xf32> -> vector<8x8xf32>
    %cst_112 = arith.constant 0.353553385 : f32
    %446 = vector.broadcast %cst_112 : f32 to vector<8x8xf32>
    %447 = arith.mulf %445, %446 : vector<8x8xf32>
    %cst_113 = arith.constant dense<0xFF800000> : vector<8xf32>
    %448 = vector.multi_reduction <maximumf>, %447, %cst_113 [1] : vector<8x8xf32> to vector<8xf32>
    %449 = vector.shape_cast %448 : vector<8xf32> to vector<8x1xf32>
    %450 = vector.broadcast %449 : vector<8x1xf32> to vector<8x8xf32>
    %451 = arith.subf %447, %450 : vector<8x8xf32>
    %452 = math.exp %451 : vector<8x8xf32>
    %cst_114 = arith.constant dense<0.000000e+00> : vector<8xf32>
    %453 = vector.multi_reduction <add>, %452, %cst_114 [1] : vector<8x8xf32> to vector<8xf32>
    %454 = vector.shape_cast %453 : vector<8xf32> to vector<8x1xf32>
    %455 = tpu.reciprocal %454 {approx = true} : vector<8x1xf32> -> vector<8x1xf32>
    %456 = vector.broadcast %455 : vector<8x1xf32> to vector<8x8xf32>
    %457 = arith.mulf %452, %456 : vector<8x8xf32>
    %458 = arith.truncf %457 : vector<8x8xf32> to vector<8x8xbf16>
    %cst_115 = arith.constant dense<0.000000e+00> : vector<8x32xf32>
    %459 = tpu.matmul %458, %444, %cst_115 {dimension_numbers = #tpu.dot_dimension_numbers<[1], [0], [0], [1], [0, 0, 1, 1], [], []>} : vector<8x8xbf16>, vector<8x32xbf16>, vector<8x32xf32> -> vector<8x32xf32>
    %460 = arith.addf %433, %459 : vector<8x32xf32>
    %c0_116 = arith.constant 0 : index
    %c0_117 = arith.constant 0 : index
    %461 = vector.load %arg11[%c0_116, %c0_117] : memref<1x32xf32, #tpu.memory_space<vmem>>, vector<1x32xf32>
    %462 = arith.truncf %460 : vector<8x32xf32> to vector<8x32xbf16>
    %c0_118 = arith.constant 0 : index
    %c0_119 = arith.constant 0 : index
    %463 = vector.load %arg10[%c0_118, %c0_119] : memref<32x32xbf16, #tpu.memory_space<vmem>>, vector<32x32xbf16>
    %cst_120 = arith.constant dense<0.000000e+00> : vector<8x32xf32>
    %464 = tpu.matmul %462, %463, %cst_120 {dimension_numbers = #tpu.dot_dimension_numbers<[1], [0], [0], [1], [0, 0, 1, 1], [], []>} : vector<8x32xbf16>, vector<32x32xbf16>, vector<8x32xf32> -> vector<8x32xf32>
    %465 = vector.broadcast %461 : vector<1x32xf32> to vector<8x32xf32>
    %466 = arith.addf %464, %465 : vector<8x32xf32>
    %467 = arith.addf %341, %466 : vector<8x32xf32>
    %c0_121 = arith.constant 0 : index
    %c0_122 = arith.constant 0 : index
    %468 = vector.load %arg12[%c0_121, %c0_122] : memref<1x32xf32, #tpu.memory_space<vmem>>, vector<1x32xf32>
    %c0_123 = arith.constant 0 : index
    %c0_124 = arith.constant 0 : index
    %469 = vector.load %arg13[%c0_123, %c0_124] : memref<1x32xf32, #tpu.memory_space<vmem>>, vector<1x32xf32>
    %cst_125 = arith.constant dense<0.000000e+00> : vector<8xf32>
    %470 = vector.multi_reduction <add>, %467, %cst_125 [1] : vector<8x32xf32> to vector<8xf32>
    %471 = vector.shape_cast %470 : vector<8xf32> to vector<8x1xf32>
    %cst_126 = arith.constant 3.200000e+01 : f32
    %472 = vector.broadcast %cst_126 : f32 to vector<8x1xf32>
    %473 = arith.divf %471, %472 : vector<8x1xf32>
    %474 = vector.broadcast %473 : vector<8x1xf32> to vector<8x32xf32>
    %475 = arith.subf %467, %474 : vector<8x32xf32>
    %476 = arith.mulf %475, %475 : vector<8x32xf32>
    %cst_127 = arith.constant dense<0.000000e+00> : vector<8xf32>
    %477 = vector.multi_reduction <add>, %476, %cst_127 [1] : vector<8x32xf32> to vector<8xf32>
    %478 = vector.shape_cast %477 : vector<8xf32> to vector<8x1xf32>
    %cst_128 = arith.constant 3.200000e+01 : f32
    %479 = vector.broadcast %cst_128 : f32 to vector<8x1xf32>
    %480 = arith.divf %478, %479 : vector<8x1xf32>
    %481 = vector.broadcast %473 : vector<8x1xf32> to vector<8x32xf32>
    %482 = arith.subf %467, %481 : vector<8x32xf32>
    %cst_129 = arith.constant 9.99999974E-6 : f32
    %483 = vector.broadcast %cst_129 : f32 to vector<8x1xf32>
    %484 = arith.addf %480, %483 : vector<8x1xf32>
    %485 = math.rsqrt %484 : vector<8x1xf32>
    %486 = vector.broadcast %485 : vector<8x1xf32> to vector<8x32xf32>
    %487 = arith.mulf %482, %486 : vector<8x32xf32>
    %488 = vector.broadcast %468 : vector<1x32xf32> to vector<8x32xf32>
    %489 = arith.mulf %487, %488 : vector<8x32xf32>
    %490 = vector.broadcast %469 : vector<1x32xf32> to vector<8x32xf32>
    %491 = arith.addf %489, %490 : vector<8x32xf32>
    %c0_130 = arith.constant 0 : index
    %c0_131 = arith.constant 0 : index
    %492 = vector.load %arg15[%c0_130, %c0_131] : memref<1x128xf32, #tpu.memory_space<vmem>>, vector<1x128xf32>
    %493 = arith.truncf %491 : vector<8x32xf32> to vector<8x32xbf16>
    %c0_132 = arith.constant 0 : index
    %c0_133 = arith.constant 0 : index
    %494 = vector.load %arg14[%c0_132, %c0_133] : memref<32x128xbf16, #tpu.memory_space<vmem>>, vector<32x128xbf16>
    %cst_134 = arith.constant dense<0.000000e+00> : vector<8x128xf32>
    %495 = tpu.matmul %493, %494, %cst_134 {dimension_numbers = #tpu.dot_dimension_numbers<[1], [0], [0], [1], [0, 0, 1, 1], [], []>} : vector<8x32xbf16>, vector<32x128xbf16>, vector<8x128xf32> -> vector<8x128xf32>
    %496 = vector.broadcast %492 : vector<1x128xf32> to vector<8x128xf32>
    %497 = arith.addf %495, %496 : vector<8x128xf32>
    %cst_135 = arith.constant 0.000000e+00 : f32
    %498 = vector.broadcast %cst_135 : f32 to vector<8x128xf32>
    %499 = arith.maximumf %497, %498 : vector<8x128xf32>
    %c0_136 = arith.constant 0 : index
    %c0_137 = arith.constant 0 : index
    %500 = vector.load %arg17[%c0_136, %c0_137] : memref<1x32xf32, #tpu.memory_space<vmem>>, vector<1x32xf32>
    %501 = arith.truncf %499 : vector<8x128xf32> to vector<8x128xbf16>
    %c0_138 = arith.constant 0 : index
    %c0_139 = arith.constant 0 : index
    %502 = vector.load %arg16[%c0_138, %c0_139] : memref<128x32xbf16, #tpu.memory_space<vmem>>, vector<128x32xbf16>
    %cst_140 = arith.constant dense<0.000000e+00> : vector<8x32xf32>
    %503 = tpu.matmul %501, %502, %cst_140 {dimension_numbers = #tpu.dot_dimension_numbers<[1], [0], [0], [1], [0, 0, 1, 1], [], []>} : vector<8x128xbf16>, vector<128x32xbf16>, vector<8x32xf32> -> vector<8x32xf32>
    %504 = vector.broadcast %500 : vector<1x32xf32> to vector<8x32xf32>
    %505 = arith.addf %503, %504 : vector<8x32xf32>
    %506 = arith.addf %491, %505 : vector<8x32xf32>
    %c0_141 = arith.constant 0 : index
    %c0_142 = arith.constant 0 : index
    %507 = vector.load %arg18[%c0_141, %c0_142] : memref<1x32xf32, #tpu.memory_space<vmem>>, vector<1x32xf32>
    %c0_143 = arith.constant 0 : index
    %c0_144 = arith.constant 0 : index
    %508 = vector.load %arg19[%c0_143, %c0_144] : memref<1x32xf32, #tpu.memory_space<vmem>>, vector<1x32xf32>
    %cst_145 = arith.constant dense<0.000000e+00> : vector<8xf32>
    %509 = vector.multi_reduction <add>, %506, %cst_145 [1] : vector<8x32xf32> to vector<8xf32>
    %510 = vector.shape_cast %509 : vector<8xf32> to vector<8x1xf32>
    %cst_146 = arith.constant 3.200000e+01 : f32
    %511 = vector.broadcast %cst_146 : f32 to vector<8x1xf32>
    %512 = arith.divf %510, %511 : vector<8x1xf32>
    %513 = vector.broadcast %512 : vector<8x1xf32> to vector<8x32xf32>
    %514 = arith.subf %506, %513 : vector<8x32xf32>
    %515 = arith.mulf %514, %514 : vector<8x32xf32>
    %cst_147 = arith.constant dense<0.000000e+00> : vector<8xf32>
    %516 = vector.multi_reduction <add>, %515, %cst_147 [1] : vector<8x32xf32> to vector<8xf32>
    %517 = vector.shape_cast %516 : vector<8xf32> to vector<8x1xf32>
    %cst_148 = arith.constant 3.200000e+01 : f32
    %518 = vector.broadcast %cst_148 : f32 to vector<8x1xf32>
    %519 = arith.divf %517, %518 : vector<8x1xf32>
    %520 = vector.broadcast %512 : vector<8x1xf32> to vector<8x32xf32>
    %521 = arith.subf %506, %520 : vector<8x32xf32>
    %cst_149 = arith.constant 9.99999974E-6 : f32
    %522 = vector.broadcast %cst_149 : f32 to vector<8x1xf32>
    %523 = arith.addf %519, %522 : vector<8x1xf32>
    %524 = math.rsqrt %523 : vector<8x1xf32>
    %525 = vector.broadcast %524 : vector<8x1xf32> to vector<8x32xf32>
    %526 = arith.mulf %521, %525 : vector<8x32xf32>
    %527 = vector.broadcast %507 : vector<1x32xf32> to vector<8x32xf32>
    %528 = arith.mulf %526, %527 : vector<8x32xf32>
    %529 = vector.broadcast %508 : vector<1x32xf32> to vector<8x32xf32>
    %530 = arith.addf %528, %529 : vector<8x32xf32>
    %c0_150 = arith.constant 0 : index
    %c0_151 = arith.constant 0 : index
    %531 = vector.load %arg20[%c0_150, %c0_151] : memref<8x32xf32, #tpu.memory_space<vmem>>, vector<8x32xf32>
    tpu.vector_store %arg20[%c0_150, %c0_151], %530 {strides = array<i32>} : memref<8x32xf32, #tpu.memory_space<vmem>>, vector<8x32xf32>,
    return
  }
  func.func @transform_0(%arg0: i32) -> (i32, i32) {
    %c0_i32 = arith.constant 0 : i32
    %c0_i32_0 = arith.constant 0 : i32
    return %arg0, %c0_i32 : i32, i32
  }
  func.func @transform_1(%arg0: i32) -> (i32, i32) {
    %c0_i32 = arith.constant 0 : i32
    %c0_i32_0 = arith.constant 0 : i32
    %c0_i32_1 = arith.constant 0 : i32
    return %c0_i32, %c0_i32_0 : i32, i32
  }
  func.func @transform_2(%arg0: i32) -> (i32, i32) {
    %c0_i32 = arith.constant 0 : i32
    %c0_i32_0 = arith.constant 0 : i32
    %c0_i32_1 = arith.constant 0 : i32
    return %c0_i32, %c0_i32_0 : i32, i32
  }
  func.func @transform_3(%arg0: i32) -> (i32, i32) {
    %c0_i32 = arith.constant 0 : i32
    %c0_i32_0 = arith.constant 0 : i32
    %c0_i32_1 = arith.constant 0 : i32
    return %c0_i32, %c0_i32_0 : i32, i32
  }
  func.func @transform_4(%arg0: i32) -> (i32, i32) {
    %c0_i32 = arith.constant 0 : i32
    %c0_i32_0 = arith.constant 0 : i32
    %c0_i32_1 = arith.constant 0 : i32
    return %c0_i32, %c0_i32_0 : i32, i32
  }
  func.func @transform_5(%arg0: i32) -> (i32, i32) {
    %c0_i32 = arith.constant 0 : i32
    %c0_i32_0 = arith.constant 0 : i32
    %c0_i32_1 = arith.constant 0 : i32
    return %c0_i32, %c0_i32_0 : i32, i32
  }
  func.func @transform_6(%arg0: i32) -> (i32, i32) {
    %c0_i32 = arith.constant 0 : i32
    %c0_i32_0 = arith.constant 0 : i32
    %c0_i32_1 = arith.constant 0 : i32
    return %c0_i32, %c0_i32_0 : i32, i32
  }
  func.func @transform_7(%arg0: i32) -> (i32, i32) {
    %c0_i32 = arith.constant 0 : i32
    %c0_i32_0 = arith.constant 0 : i32
    %c0_i32_1 = arith.constant 0 : i32
    return %c0_i32, %c0_i32_0 : i32, i32
  }
  func.func @transform_8(%arg0: i32) -> (i32, i32) {
    %c0_i32 = arith.constant 0 : i32
    %c0_i32_0 = arith.constant 0 : i32
    %c0_i32_1 = arith.constant 0 : i32
    return %c0_i32, %c0_i32_0 : i32, i32
  }
  func.func @transform_9(%arg0: i32) -> (i32, i32) {
    %c0_i32 = arith.constant 0 : i32
    %c0_i32_0 = arith.constant 0 : i32
    %c0_i32_1 = arith.constant 0 : i32
    return %c0_i32, %c0_i32_0 : i32, i32
  }
  func.func @transform_10(%arg0: i32) -> (i32, i32) {
    %c0_i32 = arith.constant 0 : i32
    %c0_i32_0 = arith.constant 0 : i32
    %c0_i32_1 = arith.constant 0 : i32
    return %c0_i32, %c0_i32_0 : i32, i32
  }
  func.func @transform_11(%arg0: i32) -> (i32, i32) {
    %c0_i32 = arith.constant 0 : i32
    %c0_i32_0 = arith.constant 0 : i32
    %c0_i32_1 = arith.constant 0 : i32
    return %c0_i32, %c0_i32_0 : i32, i32
  }
  func.func @transform_12(%arg0: i32) -> (i32, i32) {
    %c0_i32 = arith.constant 0 : i32
    %c0_i32_0 = arith.constant 0 : i32
    %c0_i32_1 = arith.constant 0 : i32
    return %c0_i32, %c0_i32_0 : i32, i32
  }
  func.func @transform_13(%arg0: i32) -> (i32, i32) {
    %c0_i32 = arith.constant 0 : i32
    %c0_i32_0 = arith.constant 0 : i32
    %c0_i32_1 = arith.constant 0 : i32
    return %c0_i32, %c0_i32_0 : i32, i32
  }
  func.func @transform_14(%arg0: i32) -> (i32, i32) {
    %c0_i32 = arith.constant 0 : i32
    %c0_i32_0 = arith.constant 0 : i32
    %c0_i32_1 = arith.constant 0 : i32
    return %c0_i32, %c0_i32_0 : i32, i32
  }
  func.func @transform_15(%arg0: i32) -> (i32, i32) {
    %c0_i32 = arith.constant 0 : i32
    %c0_i32_0 = arith.constant 0 : i32
    %c0_i32_1 = arith.constant 0 : i32
    return %c0_i32, %c0_i32_0 : i32, i32
  }
  func.func @transform_16(%arg0: i32) -> (i32, i32) {
    %c0_i32 = arith.constant 0 : i32
    %c0_i32_0 = arith.constant 0 : i32
    %c0_i32_1 = arith.constant 0 : i32
    return %c0_i32, %c0_i32_0 : i32, i32
  }
  func.func @transform_17(%arg0: i32) -> (i32, i32) {
    %c0_i32 = arith.constant 0 : i32
    %c0_i32_0 = arith.constant 0 : i32
    %c0_i32_1 = arith.constant 0 : i32
    return %c0_i32, %c0_i32_0 : i32, i32
  }
  func.func @transform_18(%arg0: i32) -> (i32, i32) {
    %c0_i32 = arith.constant 0 : i32
    %c0_i32_0 = arith.constant 0 : i32
    %c0_i32_1 = arith.constant 0 : i32
    return %c0_i32, %c0_i32_0 : i32, i32
  }
  func.func @transform_19(%arg0: i32) -> (i32, i32) {
    %c0_i32 = arith.constant 0 : i32
    %c0_i32_0 = arith.constant 0 : i32
    return %arg0, %c0_i32 : i32, i32
  }
}

</mosaic_0001>

<bundles_post_ra>
// kernel: history_processor.1
= control target key start
LH: loop header
LB: loop body
LE: loop exit
PB: predicated region body
PF: predicated region fallthrough
CT: control target
= control target key end

     0   :  { %s5227_s0 = inlined_call_operand.vmem [shape: f32[16,32], index: 0, kind: input, shape index: {}]   ;;  %s5228_s1 = inlined_call_operand.vmem [shape: bf16[32,128], index: 1, kind: input, shape index: {}]   ;;  %s5229_s2 = inlined_call_operand.vmem [shape: bf16[32,128], index: 2, kind: input, shape index: {}]   ;;  %s5230_s3 = inlined_call_operand.hbm [shape: f32[1,128], index: 3, kind: input, shape index: {}]   ;;  %s5231_s4 = inlined_call_operand.vmem [shape: bf16[32,128], index: 4, kind: input, shape index: {}]   ;;  %s5232_s5 = inlined_call_operand.vmem [shape: bf16[32,128], index: 5, kind: input, shape index: {}]   ;;  %s5233_s6 = inlined_call_operand.hbm [shape: f32[1,128], index: 6, kind: input, shape index: {}]   ;;  %s5234_s7 = inlined_call_operand.vmem [shape: bf16[32,96], index: 7, kind: input, shape index: {}]   ;;  %s5235_s8 = inlined_call_operand.hbm [shape: f32[1,96], index: 8, kind: input, shape index: {}]   ;;  %s5236_s9 = inlined_call_operand.vmem [shape: bf16[32,32], index: 9, kind: input, shape index: {}]   ;;  %s5237_s10 = inlined_call_operand.hbm [shape: f32[1,32], index: 10, kind: input, shape index: {}]   ;;  %s5238_s11 = inlined_call_operand.hbm [shape: f32[1,32], index: 11, kind: input, shape index: {}]   ;;  %s5239_s12 = inlined_call_operand.hbm [shape: f32[1,32], index: 12, kind: input, shape index: {}]   ;;  %s5240_s13 = inlined_call_operand.hbm [shape: bf16[32,128], index: 13, kind: input, shape index: {}]   ;;  %s5241_s14 = inlined_call_operand.hbm [shape: f32[1,128], index: 14, kind: input, shape index: {}]   ;;  %s5242_s15 = inlined_call_operand.vmem [shape: bf16[128,32], index: 15, kind: input, shape index: {}]   ;;  %s5243_s16 = inlined_call_operand.hbm [shape: f32[1,32], index: 16, kind: input, shape index: {}]   ;;  %s5244_s17 = inlined_call_operand.hbm [shape: f32[1,32], index: 17, kind: input, shape index: {}]   ;;  %s5245_s18 = inlined_call_operand.hbm [shape: f32[1,32], index: 18, kind: input, shape index: {}]   ;;  %s5246_s19 = inlined_call_operand.hbm [shape: f32[16,32], index: 19, kind: output, shape index: {}]  }
   0x1   :  { %5258 = sst [smem:[#allocation36_spill]] %s5227_s0 }
   0x2   :  { %5259 = sst [smem:[#allocation37_spill]] %s5228_s1 }
   0x3   :  { %5260 = sst [smem:[#allocation38_spill]] %s5229_s2 }
   0x4   :  { %5261 = sst [smem:[#allocation39_spill]] %s5230_s3 }
   0x5   :  { %5262 = sst [smem:[#allocation40_spill]] %s5233_s6 }
   0x6   :  { %5263 = sst [smem:[#allocation41_spill]] %s5235_s8 }
   0x7   :  { %24 = vsyncpa [#allocation5], 0 }
   0x8   :  { %25 = vsyncpa [#allocation8], 0 }
   0x9   :  { %26 = vsyncpa [#allocation11], 0 }
   0xa   :  { %27 = vsyncpa [#allocation14], 0 }
   0xb   :  { %28 = vsyncpa [#allocation17], 0 }
   0xc   :  { %29 = vsyncpa [#allocation20], 0 }
   0xd   :  { %30 = vsyncpa [#allocation6], 0 }
   0xe   :  { %32 = vsyncpa [#allocation6 + $0x1], 0  ;;  %s4504_s0 = smov 0   ;;  %s4506_s30 = smov 0  }
   0xf   :  { %s4508_s20 = smov 0   ;;  %s4510_s21 = smov 0  }
  0x10 LB: > { %5264 = sst [smem:[#allocation30_spill]] %s4370_s0  ;;  %s4525_s1 = sadd.s32 4294967295, %s4382_s21   ;;  %s4382_s21 = sphi %s4510_s21, %s5305_s21   ;;  %s4378_s20 = sphi %s4508_s20, %s5307_s20   ;;  %s4374_s30 = sphi %s4506_s30, %s5309_s30   ;;  %s4370_s0 = sphi %s4504_s0, %s5308_s0  }
  0x11   : > { %5265 = sst [smem:[#allocation31_spill]] %s4378_s20  ;;  %s3253_s22 = sadd.s32 4294967294, %s4382_s21  }
  0x12   : > { %5266 = sst [smem:[#allocation32_spill]] %s4382_s21  ;;  %s4529_s2 = sadd.s32 1, %s4382_s21  }
  0x13   : > { %5267 = sst [smem:[#allocation33_spill]] %s4529_s2  ;;  %s449_s23 = sadd.s32 1, %s4378_s20 }
  0x14   : > { %s446_s24 = ssub.s32 %s4382_s21, %s4529_s2  ;;  %p459_p0 = scmp.ne.s32.totalorder %s4378_s20, %s4374_s30 }
  0x15   : > { %p447_p1 = scmp.eq.s32.totalorder %s446_s24, 0  ;;  %p460_p2 = scmp.eq.s32.totalorder %s4525_s1, 1 }
  0x16   : > { %p465_p3 = scmp.ne.s32.totalorder %s4374_s30, %s4370_s0  ;;  %p466_p4 = scmp.eq.s32.totalorder %s3253_s22, 1 }
  0x17   : > { %s4540_s25 = scalar_select %p447_p1, %s4378_s20, %s449_s23  }
  0x18   : > { %p4542_p5 = por %p460_p2, %p459_p0  ;;  %p4546_p6 = por %p466_p4, %p465_p3 }
  0x19   : > { %5268 = sst [smem:[#allocation34_spill]] %s4540_s25  ;;  %p3254_p7 = scmp.ge.s32.totalorder %s4382_s21, 1 }
  0x1a   : > { %s5269_s3 = scalar_select %p4542_p5, 1, 0 }
  0x1b   : > { %s5270_s26 = scalar_select %p4546_p6, 1, 0 }
  0x1c   : > { %p473_p8 = scmp.lt.s32.totalorder %s4382_s21, 3  ;;  %p5254_p9 = scmp.eq.s32.totalorder %s4525_s1, 0 }
  0x1d   : > { %5271 = sst [smem:[#allocation35_spill]] %s5270_s26  ;;  %s4384_s28 = smov [#allocation7]  }
  0x1e   : > { %p4553_p10 = pnand %p3254_p7, %p473_p8  ;;  %s509_s29 = sshll.u32 %s4384_s28, 4  ;;  %s510_s29 = int_to_ptr.vmem [resolvable:$true] %s509_s29 }
  0x1f   : > { %s4385_s22 = smov [#allocation10]   ;;  %s4386_s25 = smov [#allocation13]  }
  0x20   : > { %s5272_s27 = scalar_select %p4553_p10, 1, 0 }
  0x21   : > { %p3730_p11 = pneg %p4553_p10  ;;  %s537_s23 = sshll.u32 %s4385_s22, 4  ;;  %s538_s23 = int_to_ptr.vmem [resolvable:$true] %s537_s23 }
  0x22   : > { %s559_s20 = sshll.u32 %s4386_s25, 4  ;;  %s4023_s28 = scalar_lea.vmem %s510_s29, 16  ;;  %s4565_s20 = int_to_ptr.vmem [resolvable:$true] %s559_s20 }
  0x23   : > { %p4561_p12 = pnand %p5254_p9, %p3730_p11  ;;  %p4024_p0 = scmp.ne.s32.totalorder %s510_s29, %s4023_s28 }
  0x24   : > { %s4030_s22 = scalar_lea.vmem %s510_s29, 32  ;;  %p4031_p3 = scmp.lt.s32.totalorder %s510_s29, %s510_s29 }
  0x25   : > { %p4569_p13 = pneg %p4561_p12  ;;  %p4032_p4 = scmp.lt.s32.totalorder %s4030_s22, %s4023_s28 }
  0x27   : > { %p4026_p1 = pnand %p4024_p0, %p4569_p13  ;;  %p4033_p7 = por %p4032_p4, %p4031_p3 }
  0x29   : > { %p4027_p2 = pneg %p4026_p1 }
  0x2b   : > { %p4034_p8 = pnand %p4033_p7, %p4027_p2 }
  0x2d   : > { %4037 = shalt.err (!%p4034_p8)
}
  0x2e   : > { %s5275_s6 = sld [smem:[#allocation40_spill]]  ;;  %s4049_s0 = scalar_lea.vmem %s538_s23, 16 }
  0x2f   : > { %p4050_p11 = scmp.ne.s32.totalorder %s538_s23, %s4049_s0  ;;  %s4056_s21 = scalar_lea.vmem %s538_s23, 32 }
  0x30   : > { %p4057_p0 = scmp.lt.s32.totalorder %s538_s23, %s538_s23  ;;  %p4058_p1 = scmp.lt.s32.totalorder %s4056_s21, %s4049_s0 }
  0x31   : > { %p4052_p9 = pnand %p4050_p11, %p4569_p13 }
  0x32   : > { %p4059_p5 = por %p4058_p1, %p4057_p0 }
  0x33   : > { %p4053_p6 = pneg %p4052_p9 }
  0x34   : > { %3736 = dma.hbm_to_vmem [thread:$0]  (!%p4561_p12), %s5275_s6, 16, %s510_s29, [#allocation8]  }
  0x35   : > { %p4060_p10 = pnand %p4059_p5, %p4053_p6 }
  0x37   : > { %4063 = shalt.err (!%p4060_p10)
}
  0x38   : > { %3742 = dma.hbm_to_vmem [thread:$0]  (!%p4561_p12), %s5237_s10, 16, %s538_s23, [#allocation11]  }
  0x39   : > { %s4075_s26 = scalar_lea.vmem %s4565_s20, 16  ;;  %s4082_s0 = scalar_lea.vmem %s4565_s20, 32 }
  0x3a   : > { %p4076_p2 = scmp.ne.s32.totalorder %s4565_s20, %s4075_s26  ;;  %p4083_p5 = scmp.lt.s32.totalorder %s4565_s20, %s4565_s20 }
  0x3b   : > { %p4084_p6 = scmp.lt.s32.totalorder %s4082_s0, %s4075_s26 }
  0x3c   : > { %p4078_p9 = pnand %p4076_p2, %p4569_p13 }
  0x3d   : > { %p4085_p10 = por %p4084_p6, %p4083_p5 }
  0x3e   : > { %p4079_p3 = pneg %p4078_p9 }
  0x40   : > { %p4086_p4 = pnand %p4085_p10, %p4079_p3 }
  0x42   : > { %4089 = shalt.err (!%p4086_p4)
}
  0x43   : > { %3748 = dma.hbm_to_vmem [thread:$0]  (!%p4561_p12), %s5239_s12, 16, %s4565_s20, [#allocation14]  }
  0x44   : > { %s4387_s23 = smov [#allocation16]   ;;  %s4388_s28 = smov [#allocation19]  }
  0x45   : > { %s583_s25 = sshll.u32 %s4387_s23, 4  ;;  %s608_s22 = sshll.u32 %s4388_s28, 4  ;;  %s584_s25 = int_to_ptr.vmem [resolvable:$true] %s583_s25  ;;  %s609_s22 = int_to_ptr.vmem [resolvable:$true] %s608_s22 }
  0x46   : > { %s4101_s6 = scalar_lea.vmem %s584_s25, 16  ;;  %s4108_s26 = scalar_lea.vmem %s584_s25, 32 }
  0x47   : > { %p4102_p7 = scmp.ne.s32.totalorder %s584_s25, %s4101_s6  ;;  %p4109_p0 = scmp.lt.s32.totalorder %s584_s25, %s584_s25 }
  0x48   : > { %p4110_p1 = scmp.lt.s32.totalorder %s4108_s26, %s4101_s6 }
  0x49   : > { %p4104_p8 = pnand %p4102_p7, %p4569_p13 }
  0x4a   : > { %p4111_p2 = por %p4110_p1, %p4109_p0 }
  0x4b   : > { %p4105_p11 = pneg %p4104_p8 }
  0x4d   : > { %p4112_p9 = pnand %p4111_p2, %p4105_p11 }
  0x4f   : > { %4115 = shalt.err (!%p4112_p9)
}
  0x50   : > { %3754 = dma.hbm_to_vmem [thread:$0]  (!%p4561_p12), %s5241_s14, 16, %s584_s25, [#allocation17]  }
  0x51   : > { %s4127_s21 = scalar_lea.vmem %s609_s22, 16  ;;  %s4134_s29 = scalar_lea.vmem %s609_s22, 32 }
  0x52   : > { %p4128_p3 = scmp.ne.s32.totalorder %s609_s22, %s4127_s21  ;;  %p4135_p10 = scmp.lt.s32.totalorder %s609_s22, %s609_s22 }
  0x53   : > { %p4136_p4 = scmp.lt.s32.totalorder %s4134_s29, %s4127_s21 }
  0x54   : > { %p4130_p5 = pnand %p4128_p3, %p4569_p13 }
  0x55   : > { %p4137_p7 = por %p4136_p4, %p4135_p10 }
  0x56   : > { %p4131_p6 = pneg %p4130_p5 }
  0x58   : > { %p4138_p8 = pnand %p4137_p7, %p4131_p6 }
  0x5a   : > { %4141 = shalt.err (!%p4138_p8)
}
  0x5b   : > { %3760 = dma.hbm_to_vmem [thread:$0]  (!%p4561_p12), %s5244_s17, 16, %s609_s22, [#allocation20]  }
  0x5c   : > { %s4389_s25 = smov [#allocation4]   ;;  %s4390_s26 = smov [#allocation9]  }
  0x5d   : > { %s492_s28 = sshll.u32 %s4389_s25, 4  ;;  %s523_s0 = sshll.u32 %s4390_s26, 4  ;;  %s493_s28 = int_to_ptr.vmem [resolvable:$true] %s492_s28  ;;  %s524_s0 = int_to_ptr.vmem [resolvable:$true] %s523_s0 }
  0x5e   : > { %s4153_s20 = scalar_lea.vmem %s493_s28, 16  ;;  %s4160_s21 = scalar_lea.vmem %s493_s28, 32 }
  0x5f   : > { %p4154_p11 = scmp.ne.s32.totalorder %s493_s28, %s4153_s20  ;;  %p4161_p2 = scmp.lt.s32.totalorder %s493_s28, %s493_s28 }
  0x60   : > { %p4162_p9 = scmp.lt.s32.totalorder %s4160_s21, %s4153_s20 }
  0x61   : > { %p4156_p0 = pnand %p4154_p11, %p4569_p13 }
  0x62   : > { %p4163_p3 = por %p4162_p9, %p4161_p2 }
  0x63   : > { %p4157_p1 = pneg %p4156_p0 }
  0x65   : > { %p4164_p5 = pnand %p4163_p3, %p4157_p1 }
  0x67   : > { %4167 = shalt.err (!%p4164_p5)
}
  0x68   : > { %s5276_s6 = sld [smem:[#allocation39_spill]]  ;;  %s4179_s23 = scalar_lea.vmem %s524_s0, 16 }
  0x69   : > { %p4180_p6 = scmp.ne.s32.totalorder %s524_s0, %s4179_s23  ;;  %s4186_s25 = scalar_lea.vmem %s524_s0, 32 }
  0x6a   : > { %p4187_p7 = scmp.lt.s32.totalorder %s524_s0, %s524_s0  ;;  %p4188_p8 = scmp.lt.s32.totalorder %s4186_s25, %s4179_s23 }
  0x6b   : > { %p4182_p10 = pnand %p4180_p6, %p4569_p13 }
  0x6c   : > { %p4189_p11 = por %p4188_p8, %p4187_p7 }
  0x6d   : > { %p4183_p4 = pneg %p4182_p10 }
  0x6e   : > { %3733 = dma.hbm_to_vmem [thread:$0]  (!%p4561_p12), %s5276_s6, 16, %s493_s28, [#allocation5]  }
  0x6f   : > { %p4190_p0 = pnand %p4189_p11, %p4183_p4 }
  0x71   : > { %4193 = shalt.err (!%p4190_p0)
}
  0x72   : > { %s5277_s8 = sld [smem:[#allocation41_spill]]  ;;  %s4391_s28 = smov [#allocation12]  }
  0x73   : > { %s548_s21 = sshll.u32 %s4391_s28, 4  ;;  %s4392_s29 = smov [#allocation15]   ;;  %s549_s21 = int_to_ptr.vmem [resolvable:$true] %s548_s21 }
  0x74   : > { %s569_s22 = sshll.u32 %s4392_s29, 4  ;;  %s4205_s6 = scalar_lea.vmem %s549_s21, 16  ;;  %s570_s22 = int_to_ptr.vmem [resolvable:$true] %s569_s22 }
  0x75   : > { %p4206_p1 = scmp.ne.s32.totalorder %s549_s21, %s4205_s6  ;;  %s4212_s23 = scalar_lea.vmem %s549_s21, 32 }
  0x76   : > { %p4213_p3 = scmp.lt.s32.totalorder %s549_s21, %s549_s21  ;;  %p4214_p5 = scmp.lt.s32.totalorder %s4212_s23, %s4205_s6 }
  0x77   : > { %p4208_p2 = pnand %p4206_p1, %p4569_p13 }
  0x78   : > { %3739 = dma.hbm_to_vmem [thread:$0]  (!%p4561_p12), %s5277_s8, 16, %s524_s0, [#allocation8]  }
  0x79   : > { %p4209_p9 = pneg %p4208_p2  ;;  %p4215_p6 = por %p4214_p5, %p4213_p3 }
  0x7b   : > { %p4216_p10 = pnand %p4215_p6, %p4209_p9 }
  0x7d   : > { %4219 = shalt.err (!%p4216_p10)
}
  0x7e   : > { %3745 = dma.hbm_to_vmem [thread:$0]  (!%p4561_p12), %s5238_s11, 16, %s549_s21, [#allocation11]  }
  0x7f   : > { %s4231_s26 = scalar_lea.vmem %s570_s22, 256  ;;  %p4239_p11 = scmp.lt.s32.totalorder %s570_s22, %s570_s22 }
  0x80   : > { %p4232_p4 = scmp.ne.s32.totalorder %s570_s22, %s4231_s26  ;;  %p4240_p0 = scmp.lt.s32.totalorder %s4231_s26, %s4231_s26 }
  0x82   : > { %p4234_p7 = pnand %p4232_p4, %p4569_p13  ;;  %p4241_p1 = por %p4240_p0, %p4239_p11 }
  0x84   : > { %p4235_p8 = pneg %p4234_p7 }
  0x86   : > { %p4242_p2 = pnand %p4241_p1, %p4235_p8 }
  0x88   : > { %4245 = shalt.err (!%p4242_p2)
}
  0x89   : > { %s4393_s20 = smov 64   ;;  %s4394_s28 = smov 4  }
  0x8a   : > { %3751 = dma.hbm_to_vmem [thread:$0]  (!%p4561_p12), %s5240_s13, 256, %s570_s22, [#allocation14], %s4393_s20, %s4393_s20, %s4394_s28  }
  0x8b   : > { %s4395_s21 = smov [#allocation18]   ;;  %s4396_s25 = smov [#allocation21]  }
  0x8c   : > { %s597_s23 = sshll.u32 %s4395_s21, 4  ;;  %s619_s0 = sshll.u32 %s4396_s25, 4  ;;  %s598_s23 = int_to_ptr.vmem [resolvable:$true] %s597_s23  ;;  %s620_s0 = int_to_ptr.vmem [resolvable:$true] %s619_s0 }
  0x8d   : > { %s4257_s8 = scalar_lea.vmem %s598_s23, 16  ;;  %s4264_s26 = scalar_lea.vmem %s598_s23, 32 }
  0x8e   : > { %p4258_p9 = scmp.ne.s32.totalorder %s598_s23, %s4257_s8  ;;  %p4265_p6 = scmp.lt.s32.totalorder %s598_s23, %s598_s23 }
  0x8f   : > { %p4266_p10 = scmp.lt.s32.totalorder %s4264_s26, %s4257_s8 }
  0x90   : > { %p4260_p3 = pnand %p4258_p9, %p4569_p13 }
  0x91   : > { %p4267_p4 = por %p4266_p10, %p4265_p6 }
  0x92   : > { %p4261_p5 = pneg %p4260_p3 }
  0x94   : > { %p4268_p7 = pnand %p4267_p4, %p4261_p5 }
  0x96   : > { %4271 = shalt.err (!%p4268_p7)
}
  0x97   : > { %3757 = dma.hbm_to_vmem [thread:$0]  (!%p4561_p12), %s5243_s16, 16, %s598_s23, [#allocation17]  }
  0x98   : > { %s4283_s20 = scalar_lea.vmem %s620_s0, 16  ;;  %s4290_s28 = scalar_lea.vmem %s620_s0, 32 }
  0x99   : > { %p4284_p8 = scmp.ne.s32.totalorder %s620_s0, %s4283_s20  ;;  %p4291_p1 = scmp.lt.s32.totalorder %s620_s0, %s620_s0 }
  0x9a   : > { %p4292_p2 = scmp.lt.s32.totalorder %s4290_s28, %s4283_s20 }
  0x9b   : > { %p4286_p11 = pnand %p4284_p8, %p4569_p13 }
  0x9c   : > { %p4293_p9 = por %p4292_p2, %p4291_p1 }
  0x9d   : > { %p4287_p0 = pneg %p4286_p11 }
  0x9f   : > { %p4294_p3 = pnand %p4293_p9, %p4287_p0 }
  0xa1   : > { %4297 = shalt.err (!%p4294_p3)
}
  0xa2   : > { %3763 = dma.hbm_to_vmem [thread:$0]  (!%p4561_p12), %s5245_s18, 16, %s620_s0, [#allocation20]  }
  0xa3   : > { %p5278_p5 = scmp.ne.s32.totalorder %s5272_s27, 0 }
  0xa4   : > { %p5279_p6 = scmp.eq.s32.totalorder (!%p5278_p5), %s4525_s1, 0 }
  0xa5   : > { %639 = sbr.rel (%p5278_p5) target bundleno = 14120 (0x3728), region = 96 }
  0xaa   : > { %4341 = dma.done.wait (%p5279_p6), [#allocation5], 16   ;;  %p5280_p13 = pmov %p5279_p6 }
  0xab   : > { %p5281_p10 = pmov %p5279_p6 }
  0xac   : > { %4343 = vsyncadd (%p5280_p13), [#allocation5], 4294967280 }
  0xad   : > { %4345 = dma.done.wait (%p5281_p10), [#allocation8], 32   ;;  %p5282_p4 = pmov %p5279_p6 }
  0xaf   : > { %4347 = vsyncadd (%p5282_p4), [#allocation8], 4294967264  ;;  %p5283_p7 = pmov %p5282_p4 }
  0xb0   : > { %p5284_p12 = pmov %p5282_p4 }
  0xb1   : > { %4349 = dma.done.wait (%p5283_p7), [#allocation11], 32  }
  0xb2   : > { %4351 = vsyncadd (%p5284_p12), [#allocation11], 4294967264  ;;  %p5285_p8 = pmov %p5282_p4 }
  0xb3   : > { %p5286_p11 = pmov %p5282_p4 }
  0xb4   : > { %4353 = dma.done.wait (%p5285_p8), [#allocation14], 272  }
  0xb5   : > { %4355 = vsyncadd (%p5286_p11), [#allocation14], 4294967024  ;;  %p5287_p0 = pmov %p5282_p4 }
  0xb7   : > { %4357 = dma.done.wait (%p5287_p0), [#allocation17], 32   ;;  %p5288_p1 = pmov %p5287_p0 }
  0xb8   : > { %p5289_p2 = pmov %p5287_p0 }
  0xb9   : > { %4359 = vsyncadd (%p5288_p1), [#allocation17], 4294967264 }
  0xba   : > { %4361 = dma.done.wait (%p5289_p2), [#allocation20], 32   ;;  %p5290_p9 = pmov %p5287_p0 }
  0xbb   : > { %p734_p3 = scmp.lt.s32.totalorder %s4525_s1, 1  ;;  %v4397_v0 = vmov 0.0   ;;  %vm4398_vm0 = vmmov 0   ;;  %s5291_s23 = sld [smem:[#allocation36_spill]]  ;;  %vm766_vm1 = vcmask 261120   ;;  %v4399_v7 = vmov 0  }
  0xbc   : > { %4363 = vsyncadd (%p5290_p9), [#allocation20], 4294967264  ;;  %3448 = vmatprep.subr.bf16.mxu0 %v4397_v0  ;;  %3452 = vmatprep.mubr.msk.bf16.mxu0 %vm4398_vm0, %v4397_v0  ;;  %s5292_s29 = sld [smem:[#allocation37_spill]]  ;;  %v3281_v10 = vld [vmem:[#allocation4] ss:$0 sm:$0xff]  ;;  %s4400_s24 = smov 64  }
  0xbd   : > { %s735_s2 = scalar_select %p734_p3, %s4525_s1, 1  ;;  %3472 = vmatprep.subr.bf16.mxu1 %v4397_v0  ;;  %3476 = vmatprep.mubr.msk.bf16.mxu1 %vm4398_vm0, %v4397_v0  ;;  %vm898_vm2 = vcmask 253952   ;;  %vm1068_vm3 = vcmask 256002   ;;  %vm1240_vm4 = vcmask 258052   ;;  %vm1412_vm5 = vcmask 260102  }
  0xbe   : > { %s5293_s6 = sld [smem:[#allocation38_spill]]  ;;  %s4401_s21 = smov 32   ;;  %vm982_vm6 = vcmask 254977   ;;  %vm1153_vm7 = vcmask 257027   ;;  %vm1325_vm8 = vcmask 259077   ;;  %vm1497_vm9 = vcmask 261127  }
  0xbf   : > { %s3280_s27 = sshll.u32 %s735_s2, 3  ;;  %vm2375_vm14 = vcmask 64512   ;;  %vm2454_vm15 = vcmask 1043456   ;;  %p5300_p6 = scmp.ne.s32.totalorder %s5269_s3, 0 }
  0xc0   : > { %s4403_s8 = smov [#allocation22]  }
  0xc1   : > { %s737_s25 = scalar_lea.vmem %s5291_s23, %s3280_s27  ;;  %s731_s27 = sand.u32 1, %s4374_s30  }
  0xc2   : > { %v3842_v1 = vld [vmem:[%s5292_s29 + $0x8] sm:$0xff]   ;;  %v3843_v2 = vld [vmem:[%s5292_s29] sm:$0xff]   ;;  %s3279_s23 = sshll.u32 %s731_s27, 3  ;;  %s3074_s20 = scalar_lea.sflag [#allocation6], %s731_s27 }
  0xc3   : > { %3449 = vmatpush3.bf16.msra.mxu0 %v3842_v1  ;;  %v741_v3 = vld [vmem:[%s737_s25] sm:$0xff]  ;;  %s3357_s25 = sshll.u32 %s4525_s1, 7  ;;  %s4302_s2 = sshll.u32 %s4403_s8, 4  ;;  %s4303_s2 = int_to_ptr.vmem [resolvable:$false] %s4302_s2 }
  0xc4   : > { %3450 = vmatprep.subr.bf16.mxu0 %v4397_v0  ;;  %v4703_v4 = vld [vmem:[%s5293_s6 + $0x8] sm:$0xff]   ;;  %v743_v5 = vpack.c.bf16 %v741_v3, %v741_v3  ;;  %v4708_v6 = vld [vmem:[%s5293_s6] sm:$0xff]   ;;  %s3085_s22 = scalar_lea.hbm %s5246_s19, %s3357_s25  ;;  %s4304_s1 = scalar_lea.vmem %s4303_s2, 256 }
  0xc5   : > { %3473 = vmatpush3.bf16.msra.mxu1 %v4703_v4 }
  0xc6   : > { %3474 = vmatprep.subr.bf16.mxu1 %v4397_v0 }
  0xc7   : > { %3451 = vmatpush3.bf16.msra.mxu0 %v3843_v2 }
  0xc8   : > { %3456 = vmatprep.subr.bf16.mxu0 %v4397_v0 }
  0xc9   : > { %3475 = vmatpush3.bf16.msra.mxu1 %v4708_v6 }
  0xca   : > { %3453 = vmatmul.mubr.msk.bf16.vlgmr.msra.gmra.mxu0 %vm766_vm1, %v743_v5  ;;  %3488 = vmatprep.subr.bf16.mxu1 %v4397_v0 }
  0xcb   : > { %3457 = vmatpush3.bf16.msra.mxu0 %v4703_v4  ;;  %3460 = vmatprep.mubr.msk.bf16.mxu0 %vm4398_vm0, %v4397_v0 }
  0xcc   : > { %3458 = vmatprep.subr.bf16.mxu0 %v4397_v0 }
  0xcf   : > { %3459 = vmatpush3.bf16.msra.mxu0 %v4708_v6 }
  0xd0   : > { %3464 = vmatprep.subr.bf16.mxu0 %v4397_v0 }
  0xd2   : > { %3461 = vmatmul.mubr.bf16.vlgmr.msra.gmra.mxu0 %v4399_v7 }
  0xd3   : > { %3465 = vmatpush3.bf16.msra.mxu0 %v4703_v4  ;;  %3468 = vmatprep.mubr.msk.bf16.mxu0 %vm4398_vm0, %v4397_v0 }
  0xd4   : > { %3466 = vmatprep.subr.bf16.mxu0 %v4397_v0 }
  0xd7   : > { %3467 = vmatpush3.bf16.msra.mxu0 %v4708_v6 }
  0xd8   : > { %3480 = vmatprep.subr.bf16.mxu0 %v4397_v0 }
 0x18a   : > { %v804_v8 = vpop.f32.mrf.mxu0 }
 0x18b   : > { %v4729_v13 = vadd.f32 %v3281_v10, %v804_v8 }
 0x18c   : > { %v3454_v9 = vpop.f32.mrf.mxu0 }
 0x18e   : > { %v807_v11 = vpop.f32.mrf.mxu0 }
 0x190   : > { %v3455_v12 = vpop.f32.mrf.mxu0 }
 0x192   : > { %v863_v14 = vpop.f32.mrf.mxu0 }
 0x193   : > { %v869_v15 = vadd.f32 %v863_v14, %v4729_v13 }
 0x194   : > { %v3462_v16 = vpop.f32.mrf.mxu0 }
 0x195   : > { %3864 = vtanh.f32 %v869_v15  ;;  %v3287_v20 = vmul.f32 -1.442695, %v869_v15 }
 0x196   : > { %v866_v17 = vpop.f32.mrf.mxu0 }
 0x197   : > { %3866 = vpow2.f32 %v3287_v20 }
 0x198   : > { %v3463_v18 = vpop.f32.mrf.mxu0 }
 0x1a2   : > { %v3865_v19 = vpop.eup %3864 }
 0x1a3   : > { %879 = vrot.lane.b32.xlu0 %v3865_v19, %s4400_s24 }
 0x1a4   : > { %v3867_v21 = vpop.eup %3866 }
 0x1a5   : > { %v873_v22 = vadd.f32 1.0, %v3867_v21 }
 0x1a7   : > { %3868 = vrcp.f32 %v873_v22 }
 0x1b4   : > { %v3869_v23 = vpop.eup %3868 }
 0x1b5   : > { %v877_v26 = vmul.f32 0.0, %v3869_v23 }
 0x215   : > { %v880_v24 = vpop.permute.xlu0 %879 }
 0x216   : > { %v882_v25 = vmul.f32 %v3869_v23, %v880_v24 }
 0x218   : > { %884 = vrot.lane.b32.xlu0 %v882_v25, %s4401_s21 }
 0x28a   : > { %v885_v27 = vpop.permute.xlu0 %884 }
 0x28b   : > { %v887_v28 = vadd.f32 %v885_v27, %v877_v26 }
 0x28d   : > { %3870 = vtanh.f32 %v887_v28  ;;  %v959_v47 = vrot.slane %v887_v28, 7 }
 0x29a   : > { %v3871_v29 = vpop.eup %3870 }
 0x29b   : > { %890 = vrot.lane.b32.xlu1 %v3871_v29, %s4400_s24 }
 0x30d   : > { %v891_v30 = vpop.permute.xlu1 %890 }
 0x30e   : > { %v4735_v31 = vmul.f32 %v3869_v23, %v891_v30 }
 0x310   : > { %v900_v32 = vpack.c.bf16 %v4735_v31, %v4735_v31 }
 0x312   : > { %902 = vrot.lane.b32.xlu1 %v900_v32, %s4401_s21 }
 0x384   : > { %v903_v33 = vpop.permute.xlu1 %902 }
 0x385   : > { %3469 = vmatmul.mubr.msk.bf16.vlgmr.msra.gmra.mxu0 %vm766_vm1, %v903_v33 }
 0x386   : > { %3481 = vmatpush3.bf16.msra.mxu0 %v4703_v4  ;;  %3484 = vmatprep.mubr.msk.bf16.mxu0 %vm4398_vm0, %v4397_v0 }
 0x387   : > { %3482 = vmatprep.subr.bf16.mxu0 %v4397_v0 }
 0x38a   : > { %3483 = vmatpush3.bf16.msra.mxu0 %v4708_v6 }
 0x38b   : > { %3496 = vmatprep.subr.bf16.mxu0 %v4397_v0 }
 0x445   : > { %v941_v34 = vpop.f32.mrf.mxu0 }
 0x446   : > { %v948_v35 = vrot.slane %v941_v34, 7 }
 0x447   : > { %v3470_v36 = vpop.f32.mrf.mxu0 }
 0x448   : > { %v950_v37 = vadd.f32 %v948_v35, %v4729_v13 }
 0x449   : > { %v944_v38 = vpop.f32.mrf.mxu0 }
 0x44a   : > { %3872 = vtanh.f32 %v950_v37  ;;  %v3289_v41 = vmul.f32 -1.442695, %v950_v37 }
 0x44b   : > { %v3471_v39 = vpop.f32.mrf.mxu0 }
 0x44c   : > { %3874 = vpow2.f32 %v3289_v41 }
 0x457   : > { %v3873_v40 = vpop.eup %3872 }
 0x458   : > { %963 = vrot.lane.b32.xlu0 %v3873_v40, %s4400_s24 }
 0x459   : > { %v3875_v42 = vpop.eup %3874 }
 0x45a   : > { %v954_v43 = vadd.f32 1.0, %v3875_v42 }
 0x45c   : > { %3876 = vrcp.f32 %v954_v43 }
 0x469   : > { %v3877_v44 = vpop.eup %3876 }
 0x46a   : > { %v961_v48 = vmul.f32 %v3877_v44, %v959_v47 }
 0x4ca   : > { %v964_v45 = vpop.permute.xlu0 %963 }
 0x4cb   : > { %v966_v46 = vmul.f32 %v3877_v44, %v964_v45 }
 0x4cd   : > { %968 = vrot.lane.b32.xlu1 %v966_v46, %s4401_s21 }
 0x53f   : > { %v969_v49 = vpop.permute.xlu1 %968 }
 0x540   : > { %v971_v50 = vadd.f32 %v969_v49, %v961_v48 }
 0x542   : > { %3878 = vtanh.f32 %v971_v50  ;;  %v1045_v10 = vrot.slane %v971_v50, 7 }
 0x54f   : > { %v3879_v51 = vpop.eup %3878 }
 0x550   : > { %974 = vrot.lane.b32.xlu0 %v3879_v51, %s4400_s24 }
 0x5c2   : > { %v975_v52 = vpop.permute.xlu0 %974 }
 0x5c3   : > { %v4751_v53 = vmul.f32 %v3877_v44, %v975_v52 }
 0x5c5   : > { %v984_v54 = vpack.c.bf16 %v4751_v53, %v4751_v53 }
 0x5c7   : > { %v986_v55 = vshrl.u32 %v984_v54, 16 }
 0x5c9   : > { %988 = vrot.lane.b32.xlu1 %v986_v55, %s4401_s21 }
 0x63b   : > { %v989_v56 = vpop.permute.xlu1 %988 }
 0x63c   : > { %3477 = vmatmul.mubr.msk.bf16.vlgmr.msra.gmra.mxu1 %vm766_vm1, %v989_v56 }
 0x63d   : > { %3489 = vmatpush3.bf16.msra.mxu1 %v4703_v4  ;;  %3492 = vmatprep.mubr.msk.bf16.mxu1 %vm4398_vm0, %v4397_v0 }
 0x63e   : > { %3490 = vmatprep.subr.bf16.mxu1 %v4397_v0 }
 0x641   : > { %3491 = vmatpush3.bf16.msra.mxu1 %v4708_v6 }
 0x642   : > { %3504 = vmatprep.subr.bf16.mxu1 %v4397_v0 }
 0x6fc   : > { %v1027_v57 = vpop.f32.mrf.mxu1 }
 0x6fd   : > { %v1034_v58 = vrot.slane %v1027_v57, 6 }
 0x6fe   : > { %v3478_v59 = vpop.f32.mrf.mxu1 }
 0x6ff   : > { %v1036_v60 = vadd.f32 %v1034_v58, %v4729_v13 }
 0x700   : > { %v1030_v61 = vpop.f32.mrf.mxu1 }
 0x701   : > { %3880 = vtanh.f32 %v1036_v60  ;;  %v3291_v1 = vmul.f32 -1.442695, %v1036_v60 }
 0x702   : > { %v3479_v62 = vpop.f32.mrf.mxu1 }
 0x703   : > { %3882 = vpow2.f32 %v3291_v1 }
 0x70e   : > { %v3881_v63 = vpop.eup %3880 }
 0x70f   : > { %1049 = vrot.lane.b32.xlu0 %v3881_v63, %s4400_s24 }
 0x710   : > { %v3883_v2 = vpop.eup %3882 }
 0x711   : > { %v1040_v3 = vadd.f32 1.0, %v3883_v2 }
 0x713   : > { %3884 = vrcp.f32 %v1040_v3 }
 0x720   : > { %v3885_v5 = vpop.eup %3884 }
 0x721   : > { %v1047_v11 = vmul.f32 %v3885_v5, %v1045_v10 }
 0x781   : > { %v1050_v8 = vpop.permute.xlu0 %1049 }
 0x782   : > { %v1052_v9 = vmul.f32 %v3885_v5, %v1050_v8 }
 0x784   : > { %1054 = vrot.lane.b32.xlu1 %v1052_v9, %s4401_s21 }
 0x7f6   : > { %v1055_v12 = vpop.permute.xlu1 %1054 }
 0x7f7   : > { %v1057_v14 = vadd.f32 %v1055_v12, %v1047_v11 }
 0x7f9   : > { %3886 = vtanh.f32 %v1057_v14  ;;  %v1130_v35 = vrot.slane %v1057_v14, 7 }
 0x806   : > { %v3887_v15 = vpop.eup %3886 }
 0x807   : > { %1060 = vrot.lane.b32.xlu0 %v3887_v15, %s4400_s24 }
 0x879   : > { %v1061_v16 = vpop.permute.xlu0 %1060 }
 0x87a   : > { %v4767_v17 = vmul.f32 %v3885_v5, %v1061_v16 }
 0x87c   : > { %v1070_v18 = vpack.c.bf16 %v4767_v17, %v4767_v17 }
 0x87e   : > { %v1072_v19 = vrot.slane %v1070_v18, 1 }
 0x880   : > { %1073 = vrot.lane.b32.xlu1 %v1072_v19, %s4401_s21 }
 0x8f2   : > { %v1074_v20 = vpop.permute.xlu1 %1073 }
 0x8f3   : > { %3485 = vmatmul.mubr.msk.bf16.vlgmr.msra.gmra.mxu0 %vm766_vm1, %v1074_v20 }
 0x8f4   : > { %3497 = vmatpush3.bf16.msra.mxu0 %v4703_v4  ;;  %3500 = vmatprep.mubr.msk.bf16.mxu0 %vm4398_vm0, %v4397_v0 }
 0x8f5   : > { %3498 = vmatprep.subr.bf16.mxu0 %v4397_v0 }
 0x8f8   : > { %3499 = vmatpush3.bf16.msra.mxu0 %v4708_v6 }
 0x8f9   : > { %3512 = vmatprep.subr.bf16.mxu0 %v4397_v0 }
 0x9b3   : > { %v1112_v21 = vpop.f32.mrf.mxu0 }
 0x9b4   : > { %v1119_v22 = vrot.slane %v1112_v21, 5 }
 0x9b5   : > { %v3486_v23 = vpop.f32.mrf.mxu0 }
 0x9b6   : > { %v1121_v24 = vadd.f32 %v1119_v22, %v4729_v13 }
 0x9b7   : > { %v1115_v25 = vpop.f32.mrf.mxu0 }
 0x9b8   : > { %3888 = vtanh.f32 %v1121_v24  ;;  %v3293_v28 = vmul.f32 -1.442695, %v1121_v24 }
 0x9b9   : > { %v3487_v26 = vpop.f32.mrf.mxu0 }
 0x9ba   : > { %3890 = vpow2.f32 %v3293_v28 }
 0x9c5   : > { %v3889_v27 = vpop.eup %3888 }
 0x9c6   : > { %1134 = vrot.lane.b32.xlu0 %v3889_v27, %s4400_s24 }
 0x9c7   : > { %v3891_v29 = vpop.eup %3890 }
 0x9c8   : > { %v1125_v30 = vadd.f32 1.0, %v3891_v29 }
 0x9ca   : > { %3892 = vrcp.f32 %v1125_v30 }
 0x9d7   : > { %v3893_v32 = vpop.eup %3892 }
 0x9d8   : > { %v1132_v36 = vmul.f32 %v3893_v32, %v1130_v35 }
 0xa38   : > { %v1135_v33 = vpop.permute.xlu0 %1134 }
 0xa39   : > { %v1137_v34 = vmul.f32 %v3893_v32, %v1135_v33 }
 0xa3b   : > { %1139 = vrot.lane.b32.xlu1 %v1137_v34, %s4401_s21 }
 0xaad   : > { %v1140_v37 = vpop.permute.xlu1 %1139 }
 0xaae   : > { %v1142_v38 = vadd.f32 %v1140_v37, %v1132_v36 }
 0xab0   : > { %3894 = vtanh.f32 %v1142_v38  ;;  %v1217_v60 = vrot.slane %v1142_v38, 7 }
 0xabd   : > { %v3895_v39 = vpop.eup %3894 }
 0xabe   : > { %1145 = vrot.lane.b32.xlu0 %v3895_v39, %s4400_s24 }
 0xb30   : > { %v1146_v40 = vpop.permute.xlu0 %1145 }
 0xb31   : > { %v4783_v41 = vmul.f32 %v3893_v32, %v1146_v40 }
 0xb33   : > { %v1155_v42 = vpack.c.bf16 %v4783_v41, %v4783_v41 }
 0xb35   : > { %v1157_v43 = vshrl.u32 %v1155_v42, 16 }
 0xb37   : > { %v1159_v44 = vrot.slane %v1157_v43, 1 }
 0xb39   : > { %1160 = vrot.lane.b32.xlu1 %v1159_v44, %s4401_s21 }
 0xbab   : > { %v1161_v45 = vpop.permute.xlu1 %1160 }
 0xbac   : > { %3493 = vmatmul.mubr.msk.bf16.vlgmr.msra.gmra.mxu1 %vm766_vm1, %v1161_v45 }
 0xbad   : > { %3505 = vmatpush3.bf16.msra.mxu1 %v4703_v4  ;;  %3508 = vmatprep.mubr.msk.bf16.mxu1 %vm4398_vm0, %v4397_v0 }
 0xbae   : > { %3506 = vmatprep.subr.bf16.mxu1 %v4397_v0 }
 0xbb1   : > { %3507 = vmatpush3.bf16.msra.mxu1 %v4708_v6 }
 0xbb2   : > { %3520 = vmatprep.subr.bf16.mxu1 %v4397_v0 }
 0xc6c   : > { %v1199_v46 = vpop.f32.mrf.mxu1 }
 0xc6d   : > { %v1206_v47 = vrot.slane %v1199_v46, 4 }
 0xc6e   : > { %v3494_v48 = vpop.f32.mrf.mxu1 }
 0xc6f   : > { %v1208_v49 = vadd.f32 %v1206_v47, %v4729_v13 }
 0xc70   : > { %v1202_v50 = vpop.f32.mrf.mxu1 }
 0xc71   : > { %3896 = vtanh.f32 %v1208_v49  ;;  %v3295_v54 = vmul.f32 -1.442695, %v1208_v49 }
 0xc72   : > { %v3495_v51 = vpop.f32.mrf.mxu1 }
 0xc73   : > { %3898 = vpow2.f32 %v3295_v54 }
 0xc7e   : > { %v3897_v52 = vpop.eup %3896 }
 0xc7f   : > { %1221 = vrot.lane.b32.xlu0 %v3897_v52, %s4400_s24 }
 0xc80   : > { %v3899_v55 = vpop.eup %3898 }
 0xc81   : > { %v1212_v56 = vadd.f32 1.0, %v3899_v55 }
 0xc83   : > { %3900 = vrcp.f32 %v1212_v56 }
 0xc90   : > { %v3901_v57 = vpop.eup %3900 }
 0xc91   : > { %v1219_v61 = vmul.f32 %v3901_v57, %v1217_v60 }
 0xcf1   : > { %v1222_v58 = vpop.permute.xlu0 %1221 }
 0xcf2   : > { %v1224_v59 = vmul.f32 %v3901_v57, %v1222_v58 }
 0xcf4   : > { %1226 = vrot.lane.b32.xlu1 %v1224_v59, %s4401_s21 }
 0xd66   : > { %v1227_v62 = vpop.permute.xlu1 %1226 }
 0xd67   : > { %v1229_v63 = vadd.f32 %v1227_v62, %v1219_v61 }
 0xd69   : > { %3902 = vtanh.f32 %v1229_v63  ;;  %v1302_v23 = vrot.slane %v1229_v63, 7 }
 0xd76   : > { %v3903_v1 = vpop.eup %3902 }
 0xd77   : > { %1232 = vrot.lane.b32.xlu0 %v3903_v1, %s4400_s24 }
 0xde9   : > { %v1233_v2 = vpop.permute.xlu0 %1232 }
 0xdea   : > { %v4799_v3 = vmul.f32 %v3901_v57, %v1233_v2 }
 0xdec   : > { %v1242_v5 = vpack.c.bf16 %v4799_v3, %v4799_v3 }
 0xdee   : > { %v1244_v8 = vrot.slane %v1242_v5, 2 }
 0xdf0   : > { %1245 = vrot.lane.b32.xlu1 %v1244_v8, %s4401_s21 }
 0xe62   : > { %v1246_v9 = vpop.permute.xlu1 %1245 }
 0xe63   : > { %3501 = vmatmul.mubr.msk.bf16.vlgmr.msra.gmra.mxu0 %vm766_vm1, %v1246_v9 }
 0xe64   : > { %3513 = vmatpush3.bf16.msra.mxu0 %v4703_v4  ;;  %3516 = vmatprep.mubr.msk.bf16.mxu0 %vm4398_vm0, %v4397_v0 }
 0xe65   : > { %3514 = vmatprep.subr.bf16.mxu0 %v4397_v0 }
 0xe68   : > { %3515 = vmatpush3.bf16.msra.mxu0 %v4708_v6 }
 0xe69   : > { %3528 = vmatprep.subr.bf16.mxu0 %v4397_v0 }
 0xf23   : > { %v1284_v10 = vpop.f32.mrf.mxu0 }
 0xf24   : > { %v1291_v11 = vrot.slane %v1284_v10, 3 }
 0xf25   : > { %v3502_v12 = vpop.f32.mrf.mxu0 }
 0xf26   : > { %v1293_v14 = vadd.f32 %v1291_v11, %v4729_v13 }
 0xf27   : > { %v1287_v15 = vpop.f32.mrf.mxu0 }
 0xf28   : > { %3904 = vtanh.f32 %v1293_v14  ;;  %v3297_v4 = vmul.f32 -1.442695, %v1293_v14 }
 0xf29   : > { %v3503_v16 = vpop.f32.mrf.mxu0 }
 0xf2a   : > { %3906 = vpow2.f32 %v3297_v4 }
 0xf35   : > { %v3905_v18 = vpop.eup %3904 }
 0xf36   : > { %1306 = vrot.lane.b32.xlu0 %v3905_v18, %s4400_s24 }
 0xf37   : > { %v3907_v19 = vpop.eup %3906 }
 0xf38   : > { %v1297_v20 = vadd.f32 1.0, %v3907_v19 }
 0xf3a   : > { %3908 = vrcp.f32 %v1297_v20  ;;  %v4847_v20 = vld [vmem:[%s5232_s5 + $0x8] sm:$0xff]  }
 0xf47   : > { %v3909_v21 = vpop.eup %3908 }
 0xf48   : > { %v1304_v24 = vmul.f32 %v3909_v21, %v1302_v23 }
 0xfa8   : > { %v1307_v6 = vpop.permute.xlu0 %1306 }
 0xfa9   : > { %v1309_v22 = vmul.f32 %v3909_v21, %v1307_v6  ;;  %v4865_v6 = vld [vmem:[%s5232_s5] sm:$0xff]  }
 0xfab   : > { %1311 = vrot.lane.b32.xlu1 %v1309_v22, %s4401_s21 }
0x101d   : > { %v1312_v25 = vpop.permute.xlu1 %1311 }
0x101e   : > { %v1314_v26 = vadd.f32 %v1312_v25, %v1304_v24 }
0x1020   : > { %3910 = vtanh.f32 %v1314_v26  ;;  %v1389_v49 = vrot.slane %v1314_v26, 7 }
0x102d   : > { %v3911_v27 = vpop.eup %3910 }
0x102e   : > { %1317 = vrot.lane.b32.xlu0 %v3911_v27, %s4400_s24 }
0x10a0   : > { %v1318_v28 = vpop.permute.xlu0 %1317 }
0x10a1   : > { %v4815_v29 = vmul.f32 %v3909_v21, %v1318_v28  ;;  %v3847_v21 = vld [vmem:[%s5231_s4 + $0x8] sm:$0xff]  }
0x10a3   : > { %v1327_v30 = vpack.c.bf16 %v4815_v29, %v4815_v29 }
0x10a5   : > { %v1329_v32 = vshrl.u32 %v1327_v30, 16 }
0x10a7   : > { %v1331_v33 = vrot.slane %v1329_v32, 2 }
0x10a9   : > { %1332 = vrot.lane.b32.xlu1 %v1331_v33, %s4401_s21  ;;  %v3302_v33 = vld [vmem:[#allocation7] ss:$0 sm:$0xff] }
0x111b   : > { %v1333_v34 = vpop.permute.xlu1 %1332 }
0x111c   : > { %3509 = vmatmul.mubr.msk.bf16.vlgmr.msra.gmra.mxu1 %vm766_vm1, %v1333_v34 }
0x111d   : > { %3524 = vmatprep.mubr.msk.bf16.mxu1 %vm4398_vm0, %v4397_v0  ;;  %3521 = vmatpush3.bf16.msra.mxu1 %v3847_v21 }
0x111e   : > { %3522 = vmatprep.subr.bf16.mxu1 %v4397_v0 }
0x11dc   : > { %v1371_v35 = vpop.f32.mrf.mxu1 }
0x11dd   : > { %v1378_v36 = vrot.slane %v1371_v35, 2 }
0x11de   : > { %v3510_v37 = vpop.f32.mrf.mxu1 }
0x11df   : > { %v1380_v38 = vadd.f32 %v1378_v36, %v4729_v13 }
0x11e0   : > { %v1374_v39 = vpop.f32.mrf.mxu1 }
0x11e1   : > { %3912 = vtanh.f32 %v1380_v38  ;;  %v3299_v43 = vmul.f32 -1.442695, %v1380_v38 }
0x11e2   : > { %v3511_v40 = vpop.f32.mrf.mxu1 }
0x11e3   : > { %3914 = vpow2.f32 %v3299_v43 }
0x11ee   : > { %v3913_v42 = vpop.eup %3912 }
0x11ef   : > { %1393 = vrot.lane.b32.xlu0 %v3913_v42, %s4400_s24 }
0x11f0   : > { %v3915_v44 = vpop.eup %3914 }
0x11f1   : > { %v1384_v45 = vadd.f32 1.0, %v3915_v44 }
0x11f3   : > { %3916 = vrcp.f32 %v1384_v45 }
0x1200   : > { %v3917_v46 = vpop.eup %3916 }
0x1201   : > { %v1391_v50 = vmul.f32 %v3917_v46, %v1389_v49 }
0x1261   : > { %v1394_v47 = vpop.permute.xlu0 %1393 }
0x1262   : > { %v1396_v48 = vmul.f32 %v3917_v46, %v1394_v47 }
0x1264   : > { %1398 = vrot.lane.b32.xlu1 %v1396_v48, %s4401_s21 }
0x12d6   : > { %v1399_v51 = vpop.permute.xlu1 %1398 }
0x12d7   : > { %v1401_v52 = vadd.f32 %v1399_v51, %v1391_v50 }
0x12d9   : > { %3918 = vtanh.f32 %v1401_v52 }
0x12e6   : > { %v3919_v54 = vpop.eup %3918 }
0x12e7   : > { %1404 = vrot.lane.b32.xlu0 %v3919_v54, %s4400_s24 }
0x1359   : > { %v1405_v55 = vpop.permute.xlu0 %1404 }
0x135a   : > { %v1407_v56 = vmul.f32 %v3917_v46, %v1405_v55 }
0x135c   : > { %v1414_v57 = vpack.c.bf16 %v1407_v56, %v1407_v56 }
0x135e   : > { %v1416_v58 = vrot.slane %v1414_v57, 3 }
0x1360   : > { %1417 = vrot.lane.b32.xlu1 %v1416_v58, %s4401_s21 }
0x13d2   : > { %v1418_v59 = vpop.permute.xlu1 %1417 }
0x13d3   : > { %3517 = vmatmul.mubr.msk.bf16.vlgmr.msra.gmra.mxu0 %vm766_vm1, %v1418_v59 }
0x13d4   : > { %3532 = vmatprep.mubr.msk.bf16.mxu0 %vm4398_vm0, %v4397_v0  ;;  %3529 = vmatpush3.bf16.msra.mxu0 %v4847_v20 }
0x13d5   : > { %3530 = vmatprep.subr.bf16.mxu0 %v4397_v0 }
0x13d8   : > { %3531 = vmatpush3.bf16.msra.mxu0 %v4865_v6 }
0x13d9   : > { %3544 = vmatprep.subr.bf16.mxu0 %v4397_v0 }
0x13db   : > { %3533 = vmatmul.mubr.bf16.vlgmr.msra.gmra.mxu0 %v4399_v7 }
0x13dc   : > { %3545 = vmatpush3.bf16.msra.mxu0 %v4847_v20  ;;  %3548 = vmatprep.mubr.msk.bf16.mxu0 %vm4398_vm0, %v4397_v0 }
0x13dd   : > { %3546 = vmatprep.subr.bf16.mxu0 %v4397_v0 }
0x13e0   : > { %3547 = vmatpush3.bf16.msra.mxu0 %v4865_v6 }
0x13e1   : > { %3560 = vmatprep.subr.bf16.mxu0 %v4397_v0 }
0x1493   : > { %v1456_v60 = vpop.f32.mrf.mxu0 }
0x1494   : > { %v1463_v61 = vrot.slane %v1456_v60, 1 }
0x1495   : > { %v3518_v62 = vpop.f32.mrf.mxu0 }
0x1496   : > { %v1465_v63 = vadd.f32 %v1463_v61, %v4729_v13  ;;  %v1474_v13 = vrot.slane %v1401_v52, 7 }
0x1497   : > { %v1459_v1 = vpop.f32.mrf.mxu0 }
0x1498   : > { %3920 = vtanh.f32 %v1465_v63  ;;  %v3301_v8 = vmul.f32 -1.442695, %v1465_v63 }
0x1499   : > { %v3519_v2 = vpop.f32.mrf.mxu0 }
0x149a   : > { %3922 = vpow2.f32 %v3301_v8 }
0x149b   : > { %v1617_v28 = vpop.f32.mrf.mxu0 }
0x14a5   : > { %v3921_v5 = vpop.eup %3920 }
0x14a6   : > { %1478 = vrot.lane.b32.xlu0 %v3921_v5, %s4400_s24 }
0x14a7   : > { %v3923_v9 = vpop.eup %3922 }
0x14a8   : > { %v1469_v10 = vadd.f32 1.0, %v3923_v9 }
0x14aa   : > { %3924 = vrcp.f32 %v1469_v10 }
0x14b7   : > { %v3925_v11 = vpop.eup %3924 }
0x14b8   : > { %v1476_v15 = vmul.f32 %v3925_v11, %v1474_v13 }
0x1518   : > { %v1479_v12 = vpop.permute.xlu0 %1478 }
0x1519   : > { %v1481_v14 = vmul.f32 %v3925_v11, %v1479_v12 }
0x151b   : > { %1483 = vrot.lane.b32.xlu1 %v1481_v14, %s4401_s21 }
0x151f   : > { %895 = vrot.lane.b32.xlu1 %v4735_v31, %s4401_s21 }
0x1523   : > { %1065 = vrot.lane.b32.xlu1 %v4767_v17, %s4401_s21 }
0x1527   : > { %1237 = vrot.lane.b32.xlu1 %v4799_v3, %s4401_s21 }
0x152b   : > { %1409 = vrot.lane.b32.xlu1 %v1407_v56, %s4401_s21 }
0x158d   : > { %v1484_v16 = vpop.permute.xlu1 %1483 }
0x158e   : > { %v1486_v18 = vadd.f32 %v1484_v16, %v1476_v15 }
0x1590   : > { %3926 = vtanh.f32 %v1486_v18 }
0x1591   : > { %v896_v4 = vpop.permute.xlu1 %895 }
0x1592   : > { %899 = vst.msk [vmem:[#allocation2] sm:$0x1] %vm898_vm2, %v896_v4 }
0x1595   : > { %v1066_v19 = vpop.permute.xlu1 %1065 }
0x1596   : > { %1069 = vst.msk [vmem:[#allocation2] sm:$0x4] %vm1068_vm3, %v1066_v19 }
0x1599   : > { %v1238_v31 = vpop.permute.xlu1 %1237 }
0x159a   : > { %1241 = vst.msk [vmem:[#allocation2] sm:$0x10] %vm1240_vm4, %v1238_v31 }
0x159d   : > { %v3927_v17 = vpop.eup %3926  ;;  %v1410_v3 = vpop.permute.xlu1 %1409 }
0x159e   : > { %1413 = vst.msk [vmem:[#allocation2] sm:$0x40] %vm1412_vm5, %v1410_v3  ;;  %1489 = vrot.lane.b32.xlu0 %v3927_v17, %s4400_s24 }
0x15a2   : > { %979 = vrot.lane.b32.xlu0 %v4751_v53, %s4401_s21  ;;  %v3849_v53 = vld [vmem:[%s5231_s4] sm:$0xff]  }
0x15a3   : > { %3523 = vmatpush3.bf16.msra.mxu1 %v3849_v53 }
0x15a4   : > { %3536 = vmatprep.subr.bf16.mxu1 %v4397_v0 }
0x15a6   : > { %1150 = vrot.lane.b32.xlu0 %v4783_v41, %s4401_s21 }
0x15aa   : > { %1322 = vrot.lane.b32.xlu0 %v4815_v29, %s4401_s21  ;;  %v3534_v29 = vpop.f32.mrf.mxu0 }
0x15ac   : > { %v1620_v30 = vpop.f32.mrf.mxu0 }
0x15ae   : > { %v3535_v32 = vpop.f32.mrf.mxu0 }
0x1610   : > { %v1490_v41 = vpop.permute.xlu0 %1489 }
0x1611   : > { %v1492_v22 = vmul.f32 %v3925_v11, %v1490_v41 }
0x1613   : > { %1494 = vrot.lane.b32.xlu0 %v1492_v22, %s4401_s21 }
0x1614   : > { %v980_v7 = vpop.permute.xlu0 %979 }
0x1615   : > { %983 = vst.msk [vmem:[#allocation2] sm:$0x2] %vm982_vm6, %v980_v7 }
0x1618   : > { %v1151_v23 = vpop.permute.xlu0 %1150 }
0x1619   : > { %1154 = vst.msk [vmem:[#allocation2] sm:$0x8] %vm1153_vm7, %v1151_v23 }
0x161c   : > { %v1323_v24 = vpop.permute.xlu0 %1322 }
0x161d   : > { %1326 = vst.msk [vmem:[#allocation2] sm:$0x20] %vm1325_vm8, %v1323_v24 }
0x1685   : > { %v1495_v25 = vpop.permute.xlu0 %1494 }
0x1686   : > { %1498 = vst.msk [vmem:[#allocation2] sm:$0x80] %vm1497_vm9, %v1495_v25 }
0x168d   : > { %v1499_v26 = vld [vmem:[#allocation2] sm:$0xff] }
0x168e   : > { %v1501_v27 = vpack.c.bf16 %v1499_v26, %v1499_v26 }
0x1690   : > { %3525 = vmatmul.mubr.msk.bf16.vlgmr.msra.gmra.mxu1 %vm766_vm1, %v1501_v27 }
0x1691   : > { %3537 = vmatpush3.bf16.msra.mxu1 %v4847_v20  ;;  %3540 = vmatprep.mubr.msk.bf16.mxu1 %vm4398_vm0, %v4397_v0 }
0x1692   : > { %3538 = vmatprep.subr.bf16.mxu1 %v4397_v0 }
0x1695   : > { %3539 = vmatpush3.bf16.msra.mxu1 %v4865_v6 }
0x1696   : > { %3552 = vmatprep.subr.bf16.mxu1 %v4397_v0 }
0x1750   : > { %v1561_v34 = vpop.f32.mrf.mxu1 }
0x1751   : > { %v4893_v35 = vadd.f32 %v3302_v33, %v1561_v34 }
0x1752   : > { %v3526_v36 = vpop.f32.mrf.mxu1 }
0x1753   : > { %v1623_v37 = vadd.f32 %v1617_v28, %v4893_v35 }
0x1754   : > { %v1564_v38 = vpop.f32.mrf.mxu1 }
0x1755   : > { %3928 = vtanh.f32 %v1623_v37  ;;  %v3308_v42 = vmul.f32 -1.442695, %v1623_v37 }
0x1756   : > { %v3527_v39 = vpop.f32.mrf.mxu1 }
0x1757   : > { %3930 = vpow2.f32 %v3308_v42 }
0x1762   : > { %v3929_v40 = vpop.eup %3928 }
0x1763   : > { %1633 = vrot.lane.b32.xlu1 %v3929_v40, %s4400_s24 }
0x1764   : > { %v3931_v43 = vpop.eup %3930 }
0x1765   : > { %v1627_v44 = vadd.f32 1.0, %v3931_v43 }
0x1767   : > { %3932 = vrcp.f32 %v1627_v44 }
0x1774   : > { %v3933_v45 = vpop.eup %3932 }
0x1775   : > { %v1631_v48 = vmul.f32 0.0, %v3933_v45 }
0x17d5   : > { %v1634_v46 = vpop.permute.xlu1 %1633 }
0x17d6   : > { %v1636_v47 = vmul.f32 %v3933_v45, %v1634_v46 }
0x17d8   : > { %1638 = vrot.lane.b32.xlu0 %v1636_v47, %s4401_s21 }
0x184a   : > { %v1639_v49 = vpop.permute.xlu0 %1638 }
0x184b   : > { %v1641_v50 = vadd.f32 %v1639_v49, %v1631_v48 }
0x184d   : > { %3934 = vtanh.f32 %v1641_v50  ;;  %v1712_v11 = vrot.slane %v1641_v50, 7 }
0x185a   : > { %v3935_v51 = vpop.eup %3934 }
0x185b   : > { %1644 = vrot.lane.b32.xlu1 %v3935_v51, %s4400_s24 }
0x18cd   : > { %v1645_v52 = vpop.permute.xlu1 %1644 }
0x18ce   : > { %v4899_v54 = vmul.f32 %v3933_v45, %v1645_v52 }
0x18d0   : > { %v1653_v55 = vpack.c.bf16 %v4899_v54, %v4899_v54 }
0x18d2   : > { %1655 = vrot.lane.b32.xlu0 %v1653_v55, %s4401_s21 }
0x1944   : > { %v1656_v56 = vpop.permute.xlu0 %1655 }
0x1945   : > { %3541 = vmatmul.mubr.msk.bf16.vlgmr.msra.gmra.mxu1 %vm766_vm1, %v1656_v56 }
0x1946   : > { %3553 = vmatpush3.bf16.msra.mxu1 %v4847_v20  ;;  %3556 = vmatprep.mubr.msk.bf16.mxu1 %vm4398_vm0, %v4397_v0 }
0x1947   : > { %3554 = vmatprep.subr.bf16.mxu1 %v4397_v0 }
0x194a   : > { %3555 = vmatpush3.bf16.msra.mxu1 %v4865_v6 }
0x194b   : > { %3568 = vmatprep.subr.bf16.mxu1 %v4397_v0 }
0x1a05   : > { %v1694_v57 = vpop.f32.mrf.mxu1 }
0x1a06   : > { %v1701_v58 = vrot.slane %v1694_v57, 7 }
0x1a07   : > { %v3542_v59 = vpop.f32.mrf.mxu1 }
0x1a08   : > { %v1703_v60 = vadd.f32 %v1701_v58, %v4893_v35 }
0x1a09   : > { %v1697_v61 = vpop.f32.mrf.mxu1 }
0x1a0a   : > { %3936 = vtanh.f32 %v1703_v60  ;;  %v3310_v1 = vmul.f32 -1.442695, %v1703_v60 }
0x1a0b   : > { %v3543_v62 = vpop.f32.mrf.mxu1 }
0x1a0c   : > { %3938 = vpow2.f32 %v3310_v1 }
0x1a17   : > { %v3937_v63 = vpop.eup %3936 }
0x1a18   : > { %1716 = vrot.lane.b32.xlu1 %v3937_v63, %s4400_s24 }
0x1a19   : > { %v3939_v2 = vpop.eup %3938 }
0x1a1a   : > { %v1707_v5 = vadd.f32 1.0, %v3939_v2 }
0x1a1c   : > { %3940 = vrcp.f32 %v1707_v5 }
0x1a29   : > { %v3941_v8 = vpop.eup %3940 }
0x1a2a   : > { %v1714_v12 = vmul.f32 %v3941_v8, %v1712_v11 }
0x1a8a   : > { %v1717_v9 = vpop.permute.xlu1 %1716 }
0x1a8b   : > { %v1719_v10 = vmul.f32 %v3941_v8, %v1717_v9 }
0x1a8d   : > { %1721 = vrot.lane.b32.xlu0 %v1719_v10, %s4401_s21 }
0x1aff   : > { %v1722_v14 = vpop.permute.xlu0 %1721 }
0x1b00   : > { %v1724_v13 = vadd.f32 %v1722_v14, %v1714_v12 }
0x1b02   : > { %3942 = vtanh.f32 %v1724_v13  ;;  %v1797_v29 = vrot.slane %v1724_v13, 7 }
0x1b0f   : > { %v3943_v15 = vpop.eup %3942 }
0x1b10   : > { %1727 = vrot.lane.b32.xlu1 %v3943_v15, %s4400_s24 }
0x1b82   : > { %v1728_v16 = vpop.permute.xlu1 %1727 }
0x1b83   : > { %v4915_v18 = vmul.f32 %v3941_v8, %v1728_v16 }
0x1b85   : > { %v1736_v4 = vpack.c.bf16 %v4915_v18, %v4915_v18 }
0x1b87   : > { %v1738_v19 = vshrl.u32 %v1736_v4, 16 }
0x1b89   : > { %1740 = vrot.lane.b32.xlu0 %v1738_v19, %s4401_s21 }
0x1bfb   : > { %v1741_v31 = vpop.permute.xlu0 %1740 }
0x1bfc   : > { %3549 = vmatmul.mubr.msk.bf16.vlgmr.msra.gmra.mxu0 %vm766_vm1, %v1741_v31 }
0x1bfd   : > { %3561 = vmatpush3.bf16.msra.mxu0 %v4847_v20  ;;  %3564 = vmatprep.mubr.msk.bf16.mxu0 %vm4398_vm0, %v4397_v0 }
0x1bfe   : > { %3562 = vmatprep.subr.bf16.mxu0 %v4397_v0 }
0x1c01   : > { %3563 = vmatpush3.bf16.msra.mxu0 %v4865_v6 }
0x1c02   : > { %3576 = vmatprep.subr.bf16.mxu0 %v4397_v0 }
0x1cbc   : > { %v1779_v17 = vpop.f32.mrf.mxu0 }
0x1cbd   : > { %v1786_v3 = vrot.slane %v1779_v17, 6 }
0x1cbe   : > { %v3550_v21 = vpop.f32.mrf.mxu0 }
0x1cbf   : > { %v1788_v53 = vadd.f32 %v1786_v3, %v4893_v35 }
0x1cc0   : > { %v1782_v41 = vpop.f32.mrf.mxu0 }
0x1cc1   : > { %3944 = vtanh.f32 %v1788_v53  ;;  %v3312_v23 = vmul.f32 -1.442695, %v1788_v53 }
0x1cc2   : > { %v3551_v22 = vpop.f32.mrf.mxu0 }
0x1cc3   : > { %3946 = vpow2.f32 %v3312_v23 }
0x1cce   : > { %v3945_v7 = vpop.eup %3944 }
0x1ccf   : > { %1801 = vrot.lane.b32.xlu1 %v3945_v7, %s4400_s24 }
0x1cd0   : > { %v3947_v24 = vpop.eup %3946 }
0x1cd1   : > { %v1792_v25 = vadd.f32 1.0, %v3947_v24 }
0x1cd3   : > { %3948 = vrcp.f32 %v1792_v25 }
0x1ce0   : > { %v3949_v26 = vpop.eup %3948 }
0x1ce1   : > { %v1799_v30 = vmul.f32 %v3949_v26, %v1797_v29 }
0x1d41   : > { %v1802_v27 = vpop.permute.xlu1 %1801 }
0x1d42   : > { %v1804_v28 = vmul.f32 %v3949_v26, %v1802_v27 }
0x1d44   : > { %1806 = vrot.lane.b32.xlu0 %v1804_v28, %s4401_s21 }
0x1db6   : > { %v1807_v32 = vpop.permute.xlu0 %1806 }
0x1db7   : > { %v1809_v33 = vadd.f32 %v1807_v32, %v1799_v30 }
0x1db9   : > { %3950 = vtanh.f32 %v1809_v33  ;;  %v1881_v57 = vrot.slane %v1809_v33, 7 }
0x1dc6   : > { %v3951_v34 = vpop.eup %3950 }
0x1dc7   : > { %1812 = vrot.lane.b32.xlu1 %v3951_v34, %s4400_s24 }
0x1e39   : > { %v1813_v36 = vpop.permute.xlu1 %1812 }
0x1e3a   : > { %v4931_v37 = vmul.f32 %v3949_v26, %v1813_v36 }
0x1e3c   : > { %v1821_v38 = vpack.c.bf16 %v4931_v37, %v4931_v37 }
0x1e3e   : > { %v1823_v39 = vrot.slane %v1821_v38, 1 }
0x1e40   : > { %1824 = vrot.lane.b32.xlu0 %v1823_v39, %s4401_s21 }
0x1eb2   : > { %v1825_v40 = vpop.permute.xlu0 %1824 }
0x1eb3   : > { %3557 = vmatmul.mubr.msk.bf16.vlgmr.msra.gmra.mxu1 %vm766_vm1, %v1825_v40 }
0x1eb4   : > { %3569 = vmatpush3.bf16.msra.mxu1 %v4847_v20  ;;  %3572 = vmatprep.mubr.msk.bf16.mxu1 %vm4398_vm0, %v4397_v0 }
0x1eb5   : > { %3570 = vmatprep.subr.bf16.mxu1 %v4397_v0 }
0x1eb8   : > { %3571 = vmatpush3.bf16.msra.mxu1 %v4865_v6 }
0x1eb9   : > { %3584 = vmatprep.subr.bf16.mxu1 %v4397_v0 }
0x1f73   : > { %v1863_v42 = vpop.f32.mrf.mxu1 }
0x1f74   : > { %v1870_v43 = vrot.slane %v1863_v42, 5 }
0x1f75   : > { %v3558_v44 = vpop.f32.mrf.mxu1 }
0x1f76   : > { %v1872_v45 = vadd.f32 %v1870_v43, %v4893_v35 }
0x1f77   : > { %v1866_v46 = vpop.f32.mrf.mxu1 }
0x1f78   : > { %3952 = vtanh.f32 %v1872_v45  ;;  %v3314_v49 = vmul.f32 -1.442695, %v1872_v45 }
0x1f79   : > { %v3559_v47 = vpop.f32.mrf.mxu1 }
0x1f7a   : > { %3954 = vpow2.f32 %v3314_v49 }
0x1f85   : > { %v3953_v48 = vpop.eup %3952 }
0x1f86   : > { %1885 = vrot.lane.b32.xlu1 %v3953_v48, %s4400_s24 }
0x1f87   : > { %v3955_v50 = vpop.eup %3954 }
0x1f88   : > { %v1876_v51 = vadd.f32 1.0, %v3955_v50 }
0x1f8a   : > { %3956 = vrcp.f32 %v1876_v51 }
0x1f97   : > { %v3957_v52 = vpop.eup %3956 }
0x1f98   : > { %v1883_v58 = vmul.f32 %v3957_v52, %v1881_v57 }
0x1ff8   : > { %v1886_v55 = vpop.permute.xlu1 %1885 }
0x1ff9   : > { %v1888_v56 = vmul.f32 %v3957_v52, %v1886_v55 }
0x1ffb   : > { %1890 = vrot.lane.b32.xlu0 %v1888_v56, %s4401_s21 }
0x206d   : > { %v1891_v59 = vpop.permute.xlu0 %1890 }
0x206e   : > { %v1893_v60 = vadd.f32 %v1891_v59, %v1883_v58 }
0x2070   : > { %3958 = vtanh.f32 %v1893_v60  ;;  %v1967_v21 = vrot.slane %v1893_v60, 7 }
0x207d   : > { %v3959_v61 = vpop.eup %3958 }
0x207e   : > { %1896 = vrot.lane.b32.xlu1 %v3959_v61, %s4400_s24 }
0x20f0   : > { %v1897_v62 = vpop.permute.xlu1 %1896 }
0x20f1   : > { %v4947_v63 = vmul.f32 %v3957_v52, %v1897_v62 }
0x20f3   : > { %v1905_v1 = vpack.c.bf16 %v4947_v63, %v4947_v63 }
0x20f5   : > { %v1907_v2 = vshrl.u32 %v1905_v1, 16 }
0x20f7   : > { %v1909_v5 = vrot.slane %v1907_v2, 1 }
0x20f9   : > { %1910 = vrot.lane.b32.xlu0 %v1909_v5, %s4401_s21 }
0x216b   : > { %v1911_v8 = vpop.permute.xlu0 %1910 }
0x216c   : > { %3565 = vmatmul.mubr.msk.bf16.vlgmr.msra.gmra.mxu0 %vm766_vm1, %v1911_v8 }
0x216d   : > { %3577 = vmatpush3.bf16.msra.mxu0 %v4847_v20  ;;  %3580 = vmatprep.mubr.msk.bf16.mxu0 %vm4398_vm0, %v4397_v0 }
0x216e   : > { %3578 = vmatprep.subr.bf16.mxu0 %v4397_v0 }
0x2171   : > { %3579 = vmatpush3.bf16.msra.mxu0 %v4865_v6 }
0x2172   : > { %3592 = vmatprep.subr.bf16.mxu0 %v4397_v0 }
0x222c   : > { %v1949_v9 = vpop.f32.mrf.mxu0 }
0x222d   : > { %v1956_v10 = vrot.slane %v1949_v9, 4 }
0x222e   : > { %v3566_v11 = vpop.f32.mrf.mxu0 }
0x222f   : > { %v1958_v12 = vadd.f32 %v1956_v10, %v4893_v35 }
0x2230   : > { %v1952_v14 = vpop.f32.mrf.mxu0 }
0x2231   : > { %3960 = vtanh.f32 %v1958_v12  ;;  %v3316_v16 = vmul.f32 -1.442695, %v1958_v12 }
0x2232   : > { %v3567_v13 = vpop.f32.mrf.mxu0 }
0x2233   : > { %3962 = vpow2.f32 %v3316_v16 }
0x223e   : > { %v3961_v15 = vpop.eup %3960 }
0x223f   : > { %1971 = vrot.lane.b32.xlu1 %v3961_v15, %s4400_s24 }
0x2240   : > { %v3963_v4 = vpop.eup %3962 }
0x2241   : > { %v1962_v19 = vadd.f32 1.0, %v3963_v4 }
0x2243   : > { %3964 = vrcp.f32 %v1962_v19 }
0x2250   : > { %v3965_v31 = vpop.eup %3964 }
0x2251   : > { %v1969_v53 = vmul.f32 %v3965_v31, %v1967_v21 }
0x22b1   : > { %v1972_v17 = vpop.permute.xlu1 %1971 }
0x22b2   : > { %v1974_v3 = vmul.f32 %v3965_v31, %v1972_v17 }
0x22b4   : > { %1976 = vrot.lane.b32.xlu0 %v1974_v3, %s4401_s21 }
0x2326   : > { %v1977_v41 = vpop.permute.xlu0 %1976 }
0x2327   : > { %v1979_v22 = vadd.f32 %v1977_v41, %v1969_v53 }
0x2329   : > { %3966 = vtanh.f32 %v1979_v22  ;;  %v2051_v43 = vrot.slane %v1979_v22, 7 }
0x2336   : > { %v3967_v7 = vpop.eup %3966 }
0x2337   : > { %1982 = vrot.lane.b32.xlu1 %v3967_v7, %s4400_s24 }
0x23a9   : > { %v1983_v23 = vpop.permute.xlu1 %1982 }
0x23aa   : > { %v4963_v24 = vmul.f32 %v3965_v31, %v1983_v23 }
0x23ac   : > { %v1991_v25 = vpack.c.bf16 %v4963_v24, %v4963_v24 }
0x23ae   : > { %v1993_v26 = vrot.slane %v1991_v25, 2 }
0x23b0   : > { %1994 = vrot.lane.b32.xlu0 %v1993_v26, %s4401_s21 }
0x2422   : > { %v1995_v27 = vpop.permute.xlu0 %1994 }
0x2423   : > { %3573 = vmatmul.mubr.msk.bf16.vlgmr.msra.gmra.mxu1 %vm766_vm1, %v1995_v27 }
0x2424   : > { %3585 = vmatpush3.bf16.msra.mxu1 %v4847_v20  ;;  %3588 = vmatprep.mubr.msk.bf16.mxu1 %vm4398_vm0, %v4397_v0 }
0x2425   : > { %3586 = vmatprep.subr.bf16.mxu1 %v4397_v0 }
0x2428   : > { %3587 = vmatpush3.bf16.msra.mxu1 %v4865_v6 }
0x2429   : > { %3600 = vmatprep.subr.bf16.mxu1 %v4397_v0 }
0x24e3   : > { %v2033_v28 = vpop.f32.mrf.mxu1 }
0x24e4   : > { %v2040_v29 = vrot.slane %v2033_v28, 3 }
0x24e5   : > { %v3574_v30 = vpop.f32.mrf.mxu1 }
0x24e6   : > { %v2042_v32 = vadd.f32 %v2040_v29, %v4893_v35 }
0x24e7   : > { %v2036_v33 = vpop.f32.mrf.mxu1 }
0x24e8   : > { %3968 = vtanh.f32 %v2042_v32  ;;  %v3318_v20 = vmul.f32 -1.442695, %v2042_v32 }
0x24e9   : > { %v3575_v34 = vpop.f32.mrf.mxu1 }
0x24ea   : > { %3970 = vpow2.f32 %v3318_v20 }
0x24f5   : > { %v3969_v36 = vpop.eup %3968 }
0x24f6   : > { %2055 = vrot.lane.b32.xlu1 %v3969_v36, %s4400_s24 }
0x24f7   : > { %v3971_v38 = vpop.eup %3970 }
0x24f8   : > { %v2046_v39 = vadd.f32 1.0, %v3971_v38 }
0x24fa   : > { %3972 = vrcp.f32 %v2046_v39  ;;  %v3851_v39 = vld [vmem:[%s5234_s7] sm:$0xff]  }
0x2507   : > { %v3973_v40 = vpop.eup %3972 }
0x2508   : > { %v2053_v44 = vmul.f32 %v3973_v40, %v2051_v43 }
0x2568   : > { %v2056_v6 = vpop.permute.xlu1 %2055 }
0x2569   : > { %v2058_v42 = vmul.f32 %v3973_v40, %v2056_v6 }
0x256b   : > { %2060 = vrot.lane.b32.xlu0 %v2058_v42, %s4401_s21 }
0x25dd   : > { %v2061_v45 = vpop.permute.xlu0 %2060 }
0x25de   : > { %v2063_v46 = vadd.f32 %v2061_v45, %v2053_v44 }
0x25e0   : > { %3974 = vtanh.f32 %v2063_v46  ;;  %v2137_v11 = vrot.slane %v2063_v46, 7  ;;  %v3323_v46 = vld [vmem:[#allocation9] ss:$0 sm:$0xff] }
0x25ed   : > { %v3975_v47 = vpop.eup %3974 }
0x25ee   : > { %2066 = vrot.lane.b32.xlu1 %v3975_v47, %s4400_s24 }
0x2660   : > { %v2067_v48 = vpop.permute.xlu1 %2066 }
0x2661   : > { %v4979_v49 = vmul.f32 %v3973_v40, %v2067_v48 }
0x2663   : > { %v2075_v50 = vpack.c.bf16 %v4979_v49, %v4979_v49 }
0x2665   : > { %v2077_v51 = vshrl.u32 %v2075_v50, 16 }
0x2667   : > { %v2079_v52 = vrot.slane %v2077_v51, 2 }
0x2669   : > { %2080 = vrot.lane.b32.xlu0 %v2079_v52, %s4401_s21  ;;  %v739_v52 = vlaneseq }
0x26db   : > { %v2081_v55 = vpop.permute.xlu0 %2080 }
0x26dc   : > { %3581 = vmatmul.mubr.msk.bf16.vlgmr.msra.gmra.mxu0 %vm766_vm1, %v2081_v55  ;;  %v5036_v55 = vand.u32 127, %v739_v52 }
0x26dd   : > { %3596 = vmatprep.mubr.msk.bf16.mxu0 %vm4398_vm0, %v4397_v0 }
0x26de   : > { %vm2388_vm10 = vcmp.ge.s32.totalorder %v5036_v55, 8  ;;  %vm2389_vm11 = vcmp.lt.s32.totalorder %v5036_v55, 16  ;;  %vm2315_vm12 = vcmp.lt.s32.totalorder %v5036_v55, 8 }
0x26df   : > { %vm5041_vm13 = vmand %vm2388_vm10, %vm2389_vm11 }
0x279c   : > { %v2119_v56 = vpop.f32.mrf.mxu0 }
0x279d   : > { %v2126_v57 = vrot.slane %v2119_v56, 2 }
0x279e   : > { %v3582_v58 = vpop.f32.mrf.mxu0 }
0x279f   : > { %v2128_v59 = vadd.f32 %v2126_v57, %v4893_v35 }
0x27a0   : > { %v2122_v60 = vpop.f32.mrf.mxu0 }
0x27a1   : > { %3976 = vtanh.f32 %v2128_v59  ;;  %v3320_v1 = vmul.f32 -1.442695, %v2128_v59 }
0x27a2   : > { %v3583_v61 = vpop.f32.mrf.mxu0 }
0x27a3   : > { %3978 = vpow2.f32 %v3320_v1 }
0x27ae   : > { %v3977_v62 = vpop.eup %3976 }
0x27af   : > { %2141 = vrot.lane.b32.xlu1 %v3977_v62, %s4400_s24 }
0x27b0   : > { %v3979_v2 = vpop.eup %3978 }
0x27b1   : > { %v2132_v5 = vadd.f32 1.0, %v3979_v2 }
0x27b3   : > { %3980 = vrcp.f32 %v2132_v5 }
0x27c0   : > { %v3981_v8 = vpop.eup %3980 }
0x27c1   : > { %v2139_v12 = vmul.f32 %v3981_v8, %v2137_v11 }
0x2821   : > { %v2142_v9 = vpop.permute.xlu1 %2141 }
0x2822   : > { %v2144_v10 = vmul.f32 %v3981_v8, %v2142_v9 }
0x2824   : > { %2146 = vrot.lane.b32.xlu0 %v2144_v10, %s4401_s21 }
0x2896   : > { %v2147_v14 = vpop.permute.xlu0 %2146 }
0x2897   : > { %v2149_v13 = vadd.f32 %v2147_v14, %v2139_v12 }
0x2899   : > { %3982 = vtanh.f32 %v2149_v13 }
0x28a6   : > { %v3983_v15 = vpop.eup %3982 }
0x28a7   : > { %2152 = vrot.lane.b32.xlu1 %v3983_v15, %s4400_s24 }
0x2919   : > { %v2153_v16 = vpop.permute.xlu1 %2152 }
0x291a   : > { %v2155_v4 = vmul.f32 %v3981_v8, %v2153_v16 }
0x291c   : > { %v2161_v19 = vpack.c.bf16 %v2155_v4, %v2155_v4 }
0x291e   : > { %v2163_v31 = vrot.slane %v2161_v19, 3 }
0x2920   : > { %2164 = vrot.lane.b32.xlu0 %v2163_v31, %s4401_s21 }
0x2992   : > { %v2165_v17 = vpop.permute.xlu0 %2164 }
0x2993   : > { %3589 = vmatmul.mubr.msk.bf16.vlgmr.msra.gmra.mxu1 %vm766_vm1, %v2165_v17 }
0x2994   : > { %3602 = vmatprep.mubr.msk.bf16.mxu1 %vm4398_vm0, %v4397_v0 }
0x2a53   : > { %v2203_v3 = vpop.f32.mrf.mxu1 }
0x2a54   : > { %v2210_v21 = vrot.slane %v2203_v3, 1 }
0x2a55   : > { %v3590_v53 = vpop.f32.mrf.mxu1 }
0x2a56   : > { %v2212_v41 = vadd.f32 %v2210_v21, %v4893_v35  ;;  %v2221_v35 = vrot.slane %v2149_v13, 7 }
0x2a57   : > { %v2206_v22 = vpop.f32.mrf.mxu1 }
0x2a58   : > { %3984 = vtanh.f32 %v2212_v41  ;;  %v3322_v25 = vmul.f32 -1.442695, %v2212_v41 }
0x2a59   : > { %v3591_v7 = vpop.f32.mrf.mxu1 }
0x2a5a   : > { %3986 = vpow2.f32 %v3322_v25 }
0x2a65   : > { %v3985_v23 = vpop.eup %3984 }
0x2a66   : > { %2225 = vrot.lane.b32.xlu1 %v3985_v23, %s4400_s24 }
0x2a67   : > { %v3987_v26 = vpop.eup %3986 }
0x2a68   : > { %v2216_v27 = vadd.f32 1.0, %v3987_v26 }
0x2a6a   : > { %3988 = vrcp.f32 %v2216_v27 }
0x2a77   : > { %v3989_v28 = vpop.eup %3988 }
0x2a78   : > { %v2223_v32 = vmul.f32 %v3989_v28, %v2221_v35 }
0x2ad8   : > { %v2226_v29 = vpop.permute.xlu1 %2225 }
0x2ad9   : > { %v2228_v30 = vmul.f32 %v3989_v28, %v2226_v29 }
0x2adb   : > { %2230 = vrot.lane.b32.xlu0 %v2228_v30, %s4401_s21 }
0x2adf   : > { %1649 = vrot.lane.b32.xlu0 %v4899_v54, %s4401_s21 }
0x2ae3   : > { %1817 = vrot.lane.b32.xlu0 %v4931_v37, %s4401_s21 }
0x2ae7   : > { %1987 = vrot.lane.b32.xlu0 %v4963_v24, %s4401_s21  ;;  %v3850_v24 = vld [vmem:[%s5234_s7 + $0x8] sm:$0xff]  }
0x2ae8   : > { %3593 = vmatpush3.bf16.msra.mxu0 %v3850_v24 }
0x2ae9   : > { %3594 = vmatprep.subr.bf16.mxu0 %v4397_v0 }
0x2aeb   : > { %2157 = vrot.lane.b32.xlu0 %v2155_v4, %s4401_s21 }
0x2aec   : > { %3595 = vmatpush3.bf16.msra.mxu0 %v3851_v39 }
0x2aed   : > { %3606 = vmatprep.subr.bf16.mxu0 %v4397_v0 }
0x2b4d   : > { %v2231_v33 = vpop.permute.xlu0 %2230 }
0x2b4e   : > { %v2233_v34 = vadd.f32 %v2231_v33, %v2223_v32 }
0x2b50   : > { %3990 = vtanh.f32 %v2233_v34 }
0x2b51   : > { %v1650_v36 = vpop.permute.xlu0 %1649 }
0x2b52   : > { %1652 = vst.msk [vmem:[#allocation3] sm:$0x1] %vm898_vm2, %v1650_v36  ;;  %vm2544_vm2 = vcmp.ge.s32.totalorder %v5036_v55, 16 }
0x2b55   : > { %v1818_v20 = vpop.permute.xlu0 %1817 }
0x2b56   : > { %1820 = vst.msk [vmem:[#allocation3] sm:$0x4] %vm1068_vm3, %v1818_v20  ;;  %vm2545_vm3 = vcmp.lt.s32.totalorder %v5036_v55, 24 }
0x2b59   : > { %v1988_v54 = vpop.permute.xlu0 %1987 }
0x2b5a   : > { %1990 = vst.msk [vmem:[#allocation3] sm:$0x10] %vm1240_vm4, %v1988_v54  ;;  %vm5083_vm4 = vmand %vm2544_vm2, %vm2545_vm3 }
0x2b5d   : > { %v3991_v37 = vpop.eup %3990  ;;  %v2158_v38 = vpop.permute.xlu0 %2157 }
0x2b5e   : > { %2160 = vst.msk [vmem:[#allocation3] sm:$0x40] %vm1412_vm5, %v2158_v38  ;;  %2236 = vrot.lane.b32.xlu1 %v3991_v37, %s4400_s24  ;;  %vm2654_vm5 = vcmp.ge.s32.totalorder %v5036_v55, 24 }
0x2b62   : > { %1732 = vrot.lane.b32.xlu1 %v4915_v18, %s4401_s21 }
0x2b66   : > { %1901 = vrot.lane.b32.xlu1 %v4947_v63, %s4401_s21 }
0x2b6a   : > { %2071 = vrot.lane.b32.xlu1 %v4979_v49, %s4401_s21 }
0x2bd0   : > { %v2237_v18 = vpop.permute.xlu1 %2236 }
0x2bd1   : > { %v2239_v40 = vmul.f32 %v3989_v28, %v2237_v18 }
0x2bd3   : > { %2241 = vrot.lane.b32.xlu1 %v2239_v40, %s4401_s21  ;;  %s4402_s21 = smov 96  }
0x2bd4   : > { %v1733_v63 = vpop.permute.xlu1 %1732 }
0x2bd5   : > { %1735 = vst.msk [vmem:[#allocation3] sm:$0x2] %vm982_vm6, %v1733_v63  ;;  %vm2655_vm6 = vcmp.lt.s32.totalorder %v5036_v55, 32 }
0x2bd8   : > { %v1902_v6 = vpop.permute.xlu1 %1901 }
0x2bd9   : > { %1904 = vst.msk [vmem:[#allocation3] sm:$0x8] %vm1153_vm7, %v1902_v6  ;;  %vm5094_vm7 = vmand %vm2654_vm5, %vm2655_vm6 }
0x2bdc   : > { %v2072_v42 = vpop.permute.xlu1 %2071 }
0x2bdd   : > { %2074 = vst.msk [vmem:[#allocation3] sm:$0x20] %vm1325_vm8, %v2072_v42 }
0x2c45   : > { %v2242_v43 = vpop.permute.xlu1 %2241 }
0x2c46   : > { %2244 = vst.msk [vmem:[#allocation3] sm:$0x80] %vm1497_vm9, %v2242_v43 }
0x2c4d   : > { %v5029_v44 = vld [vmem:[#allocation3] sm:$0xff] }
0x2c4e   : > { %v2247_v45 = vpack.c.bf16 %v5029_v44, %v5029_v44 }
0x2c50   : > { %3597 = vmatmul.mubr.msk.bf16.vlgmr.msra.gmra.mxu0 %vm766_vm1, %v2247_v45 }
0x2c51   : > { %3608 = vmatprep.mubr.msk.bf16.mxu0 %vm4398_vm0, %v4397_v0 }
0x2d10   : > { %v2307_v47 = vpop.f32.mrf.mxu0 }
0x2d11   : > { %v2308_v48 = vadd.f32 %v3323_v46, %v2307_v47 }
0x2d12   : > { %v3598_v49 = vpop.f32.mrf.mxu0 }
0x2d13   : > { %2318 = vrot.lane.b32.xlu0 %v2308_v48, %s4402_s21  ;;  %v5057_v2 = vpack.c.bf16 %v2308_v48, %v2308_v48  ;;  %s733_s21 = scalar_lea.vmem [#allocation22], %s3279_s23 }
0x2d14   : > { %v2310_v50 = vpop.f32.mrf.mxu0 }
0x2d16   : > { %v3599_v51 = vpop.f32.mrf.mxu0 }
0x2d85   : > { %v5045_v57 = vpop.permute.xlu0 %2318 }
0x2d86   : > { %v2321_v58 = vsel %vm2315_vm12, %v5045_v57, 0.0  ;;  %v2391_v59 = vsel %vm5041_vm13, %v5045_v57, 0.0  ;;  %v2547_v30 = vsel %vm5083_vm4, %v5045_v57, 0.0  ;;  %v2657_v54 = vsel %vm5094_vm7, %v5045_v57, 0.0 }
0x2d87   : > { %v2322_v60 = vpack.c.bf16 %v2321_v58, %v2321_v58  ;;  %v2392_v61 = vpack.c.bf16 %v2391_v59, %v2391_v59  ;;  %v2548_v33 = vpack.c.bf16 %v2547_v30, %v2547_v30  ;;  %v2658_v37 = vpack.c.bf16 %v2657_v54, %v2657_v54 }
0x2d89   : > { %v2332_v62 = vsel %vm766_vm1, %v2322_v60, 0  ;;  %v2396_v1 = vsel %vm766_vm1, %v2392_v61, 0  ;;  %v2552_v20 = vsel %vm766_vm1, %v2548_v33, 0  ;;  %v2662_v38 = vsel %vm766_vm1, %v2658_v37, 0 }
0x2d8a   : > { %3601 = vmatpush3.bf16.xpose.msra.mxu1 %v2332_v62  ;;  %3607 = vmatpush3.bf16.xpose.msra.mxu0 %v2396_v1 }
0x2d8b   : > { %3612 = vmatprep.subr.bf16.mxu1 %v4397_v0  ;;  %3618 = vmatprep.subr.bf16.mxu0 %v4397_v0 }
0x2d91   : > { %3603 = vmatmul.mubr.msk.bf16.vlgmr.msra.gmra.mxu1 %vm766_vm1, %v5057_v2  ;;  %3609 = vmatmul.mubr.msk.bf16.vlgmr.msra.gmra.mxu0 %vm766_vm1, %v5057_v2 }
0x2d92   : > { %3614 = vmatprep.mubr.msk.bf16.mxu1 %vm4398_vm0, %v4397_v0  ;;  %3620 = vmatprep.mubr.msk.bf16.mxu0 %vm4398_vm0, %v4397_v0 }
0x2e51   : > { %v2368_v5 = vpop.f32.mrf.mxu1  ;;  %v2432_v8 = vpop.f32.mrf.mxu0 }
0x2e52   : > { %v2438_v9 = vmul.f32 0.35355338, %v2432_v8  ;;  %v2374_v12 = vmul.f32 0.35355338, %v2368_v5 }
0x2e53   : > { %v3604_v10 = vpop.f32.mrf.mxu1  ;;  %v3610_v11 = vpop.f32.mrf.mxu0 }
0x2e54   : > { %v2439_v14 = vsel %vm2375_vm14, %v2438_v9, -inf  ;;  %v2376_v19 = vsel %vm2375_vm14, %v2374_v12, -inf }
0x2e55   : > { %v2371_v13 = vpop.f32.mrf.mxu1  ;;  %2440 = vmax.xlane.f32.xlu1 %v2439_v14  ;;  %v2435_v15 = vpop.f32.mrf.mxu0 }
0x2e57   : > { %v3605_v16 = vpop.f32.mrf.mxu1  ;;  %v3611_v4 = vpop.f32.mrf.mxu0 }
0x2e59   : > { %2377 = vmax.xlane.f32.xlu1 %v2376_v19 }
0x2ede   : > { %v2441_v31 = vpop.xlane.xlu1 %2440 }
0x2edf   : > { %v2442_v17 = vsub.f32 %v2438_v9, %v2441_v31 }
0x2ee1   : > { %v2443_v3 = vmul.f32 1.442695, %v2442_v17 }
0x2ee2   : > { %v2378_v24 = vpop.xlane.xlu1 %2377 }
0x2ee3   : > { %3992 = vpow2.f32 %v2443_v3  ;;  %v2379_v39 = vsub.f32 %v2374_v12, %v2378_v24 }
0x2ee5   : > { %v2380_v63 = vmul.f32 1.442695, %v2379_v39 }
0x2ef0   : > { %v3993_v21 = vpop.eup %3992 }
0x2ef1   : > { %v2445_v53 = vsel %vm2375_vm14, %v3993_v21, 0.0 }
0x2ef2   : > { %2446 = vadd.xlane.f32.xlu0 %v2445_v53 }
0x2f08   : > { %2323 = vrot.lane.b32.xlu0 %v2308_v48, %s4400_s24  ;;  %s3087_s24 = sshll.u32 %s733_s21, 4  ;;  %s3088_s24 = int_to_ptr.vmem [resolvable:$true] %s3087_s24 }
0x2f09   : > { %s4298_s28 = scalar_lea.vmem %s3088_s24, 128  ;;  %p4305_p4 = scmp.lt.s32.totalorder %s3088_s24, %s4303_s2 }
0x2f0a   : > { %p4299_p5 = scmp.ne.s32.totalorder %s3088_s24, %s4298_s28  ;;  %p4306_p7 = scmp.lt.s32.totalorder %s4304_s1, %s4298_s28 }
0x2f0c   : > { %p4300_p13 = pnand %p4299_p5, %p5300_p6  ;;  %p4307_p12 = por %p4306_p7, %p4305_p4 }
0x2f0e   : > { %p4301_p10 = pneg %p4300_p13 }
0x2f10   : > { %p4308_p8 = pnand %p4307_p12, %p4301_p10 }
0x2f7b   : > { %v2447_v41 = vpop.xlane.xlu0 %2446 }
0x2f7c   : > { %3994 = vrcp.f32 %v2447_v41 }
0x2f7d   : > { %3996 = vpow2.f32 %v2380_v63 }
0x2f7f   : > { %v5071_v22 = vpop.permute.xlu0 %2323 }
0x2f80   : > { %v2393_v7 = vsel %vm5041_vm13, %v5071_v22, 0.0  ;;  %v2326_v23 = vsel %vm2315_vm12, %v5071_v22, 0.0  ;;  %v2549_v11 = vsel %vm5083_vm4, %v5071_v22, 0.0  ;;  %v2659_v3 = vsel %vm5094_vm7, %v5071_v22, 0.0 }
0x2f81   : > { %v2394_v25 = vpack.c.bf16 %v2393_v7, %v2393_v7  ;;  %v2327_v26 = vpack.c.bf16 %v2326_v23, %v2326_v23  ;;  %v2550_v16 = vpack.c.bf16 %v2549_v11, %v2549_v11  ;;  %v2660_v41 = vpack.c.bf16 %v2659_v3, %v2659_v3 }
0x2f83   : > { %v2456_v27 = vsel %vm2454_vm15, %v2394_v25, 0  ;;  %v2502_v28 = vsel %vm2454_vm15, %v2327_v26, 0  ;;  %v2611_v19 = vsel %vm2454_vm15, %v2550_v16, 0  ;;  %v2721_v23 = vsel %vm2454_vm15, %v2660_v41, 0  ;;  %v3862_v16 = vld [vmem:[%s5242_s15 + $0x8] sm:$0xff]  }
0x2f84   : > { %3613 = vmatpush3.bf16.msra.mxu1 %v2456_v27  ;;  %3619 = vmatpush3.bf16.msra.mxu0 %v2502_v28 }
0x2f85   : > { %3624 = vmatprep.subr.bf16.mxu1 %v4397_v0  ;;  %3630 = vmatprep.subr.bf16.mxu0 %v4397_v0 }
0x2f89   : > { %v3995_v35 = vpop.eup %3994 }
0x2f8a   : > { %v2449_v32 = vmul.f32 %v3995_v35, %v3993_v21  ;;  %v3997_v56 = vpop.eup %3996  ;;  %v3852_v35 = vld [vmem:[%s5236_s9 + $0x8] sm:$0xff]  }
0x2f8b   : > { %v2382_v59 = vsel %vm2375_vm14, %v3997_v56, 0.0 }
0x2f8c   : > { %v2450_v34 = vpack.c.bf16 %v2449_v32, %v2449_v32  ;;  %v3853_v32 = vld [vmem:[%s5236_s9] sm:$0xff]  }
0x2f8e   : > { %3615 = vmatmul.mubr.msk.bf16.vlgmr.msra.gmra.mxu1 %vm2375_vm14, %v2450_v34 }
0x2f8f   : > { %3625 = vmatpush3.bf16.xpose.msra.mxu1 %v2552_v20  ;;  %3626 = vmatprep.mubr.msk.bf16.mxu1 %vm4398_vm0, %v4397_v0 }
0x2f90   : > { %3636 = vmatprep.subr.bf16.mxu1 %v4397_v0 }
0x2f96   : > { %3627 = vmatmul.mubr.msk.bf16.vlgmr.msra.gmra.mxu1 %vm766_vm1, %v5057_v2 }
0x2f97   : > { %3637 = vmatpush3.bf16.xpose.msra.mxu1 %v2662_v38  ;;  %3638 = vmatprep.mubr.msk.bf16.mxu1 %vm4398_vm0, %v4397_v0 }
0x2f98   : > { %3648 = vmatprep.subr.bf16.mxu1 %v4397_v0 }
0x2f9e   : > { %3639 = vmatmul.mubr.msk.bf16.vlgmr.msra.gmra.mxu1 %vm766_vm1, %v5057_v2 }
0x2f9f   : > { %3652 = vmatprep.mubr.msk.bf16.mxu1 %vm4398_vm0, %v4397_v0  ;;  %3649 = vmatpush3.bf16.msra.mxu1 %v3852_v35 }
0x2fa0   : > { %3650 = vmatprep.subr.bf16.mxu1 %v4397_v0 }
0x2fa3   : > { %3651 = vmatpush3.bf16.msra.mxu1 %v3853_v32 }
0x2fa4   : > { %3664 = vmatprep.subr.bf16.mxu1 %v4397_v0 }
0x304e   : > { %v5116_v18 = vpop.f32.mrf.mxu1 }
0x3050   : > { %v3616_v40 = vpop.f32.mrf.mxu1 }
0x3052   : > { %v2495_v6 = vpop.f32.mrf.mxu1 }
0x3054   : > { %v3617_v42 = vpop.f32.mrf.mxu1 }
0x3055   : > { %v3335_v42 = vld [vmem:[#allocation10] ss:$0 sm:$0xff] }
0x3056   : > { %v2588_v43 = vpop.f32.mrf.mxu1 }
0x3057   : > { %v2594_v45 = vmul.f32 0.35355338, %v2588_v43 }
0x3058   : > { %v3628_v46 = vpop.f32.mrf.mxu1 }
0x3059   : > { %v2595_v47 = vsel %vm2375_vm14, %v2594_v45, -inf }
0x305a   : > { %2596 = vmax.xlane.f32.xlu1 %v2595_v47  ;;  %v2591_v48 = vpop.f32.mrf.mxu1 }
0x305c   : > { %v3629_v49 = vpop.f32.mrf.mxu1 }
0x305e   : > { %v2698_v50 = vpop.f32.mrf.mxu1 }
0x305f   : > { %v2704_v51 = vmul.f32 0.35355338, %v2698_v50 }
0x3060   : > { %v3640_v52 = vpop.f32.mrf.mxu1 }
0x3061   : > { %v2705_v55 = vsel %vm2375_vm14, %v2704_v51, -inf }
0x3062   : > { %2706 = vmax.xlane.f32.xlu1 %v2705_v55  ;;  %v2701_v57 = vpop.f32.mrf.mxu1 }
0x3063   : > { %v3854_v57 = vld [vmem:[#allocation15 + $0x8] sm:$0xff]  }
0x3064   : > { %v3641_v58 = vpop.f32.mrf.mxu1 }
0x3065   : > { %v3855_v58 = vld [vmem:[#allocation15] sm:$0xff]  }
0x3066   : > { %2383 = vadd.xlane.f32.xlu1 %v2382_v59  ;;  %v3857_v59 = vld [vmem:[%s5242_s15 + $0x30] sm:$0xff]  }
0x30e3   : > { %v2597_v60 = vpop.xlane.xlu1 %2596 }
0x30e4   : > { %v2598_v61 = vsub.f32 %v2594_v45, %v2597_v60  ;;  %v3858_v60 = vld [vmem:[%s5242_s15 + $0x28] sm:$0xff]  }
0x30e6   : > { %v2599_v62 = vmul.f32 1.442695, %v2598_v61  ;;  %v3859_v61 = vld [vmem:[%s5242_s15 + $0x20] sm:$0xff]  }
0x30e8   : > { %3998 = vpow2.f32 %v2599_v62  ;;  %v3860_v62 = vld [vmem:[%s5242_s15 + $0x18] sm:$0xff]  }
0x30eb   : > { %v2707_v1 = vpop.xlane.xlu1 %2706 }
0x30ec   : > { %v2708_v2 = vsub.f32 %v2704_v51, %v2707_v1  ;;  %v3861_v1 = vld [vmem:[%s5242_s15 + $0x10] sm:$0xff]  }
0x30ee   : > { %v2709_v5 = vmul.f32 1.442695, %v2708_v2 }
0x30ef   : > { %v2384_v8 = vpop.xlane.xlu1 %2383 }
0x30f0   : > { %4000 = vpow2.f32 %v2709_v5 }
0x30f1   : > { %4002 = vrcp.f32 %v2384_v8 }
0x30f5   : > { %v3999_v9 = vpop.eup %3998 }
0x30f6   : > { %v2601_v10 = vsel %vm2375_vm14, %v3999_v9, 0.0 }
0x30f7   : > { %2602 = vadd.xlane.f32.xlu1 %v2601_v10  ;;  %v3339_v10 = vld [vmem:[#allocation12] ss:$0 sm:$0xff] }
0x30fd   : > { %v4001_v12 = vpop.eup %4000 }
0x30fe   : > { %v4003_v14 = vpop.eup %4002  ;;  %v2711_v13 = vsel %vm2375_vm14, %v4001_v12, 0.0 }
0x30ff   : > { %2712 = vadd.xlane.f32.xlu1 %v2711_v13  ;;  %v2386_v15 = vmul.f32 %v4003_v14, %v3997_v56 }
0x3101   : > { %v2387_v4 = vpack.c.bf16 %v2386_v15, %v2386_v15 }
0x3103   : > { %3621 = vmatmul.mubr.msk.bf16.vlgmr.msra.gmra.mxu0 %vm2375_vm14, %v2387_v4  ;;  %v3863_v4 = vld [vmem:[%s5242_s15] sm:$0xff]  }
0x3104   : > { %3631 = vmatpush3.bf16.msra.mxu0 %v2611_v19  ;;  %3632 = vmatprep.mubr.msk.bf16.mxu0 %vm4398_vm0, %v4397_v0  ;;  %v3341_v19 = vld [vmem:[#allocation16] ss:$0 sm:$0xff] }
0x3105   : > { %3642 = vmatprep.subr.bf16.mxu0 %v4397_v0 }
0x3180   : > { %v2603_v31 = vpop.xlane.xlu1 %2602 }
0x3181   : > { %4004 = vrcp.f32 %v2603_v31 }
0x3188   : > { %v2713_v17 = vpop.xlane.xlu1 %2712 }
0x3189   : > { %4006 = vrcp.f32 %v2713_v17 }
0x318e   : > { %v4005_v21 = vpop.eup %4004 }
0x318f   : > { %v2605_v53 = vmul.f32 %v4005_v21, %v3999_v9 }
0x3191   : > { %v2606_v7 = vpack.c.bf16 %v2605_v53, %v2605_v53 }
0x3193   : > { %3633 = vmatmul.mubr.msk.bf16.vlgmr.msra.gmra.mxu0 %vm2375_vm14, %v2606_v7 }
0x3194   : > { %3643 = vmatpush3.bf16.msra.mxu0 %v2721_v23  ;;  %3644 = vmatprep.mubr.msk.bf16.mxu0 %vm4398_vm0, %v4397_v0  ;;  %v3345_v23 = vld [vmem:[#allocation18] ss:$0 sm:$0xff] }
0x3195   : > { %3656 = vmatprep.subr.bf16.mxu0 %v4397_v0 }
0x3196   : > { %v4007_v25 = vpop.eup %4006 }
0x3197   : > { %v2715_v26 = vmul.f32 %v4007_v25, %v4001_v12  ;;  %v3340_v12 = vld [vmem:[#allocation13] ss:$0 sm:$0xff] }
0x3199   : > { %v2716_v27 = vpack.c.bf16 %v2715_v26, %v2715_v26 }
0x319b   : > { %3645 = vmatmul.mubr.msk.bf16.vlgmr.msra.gmra.mxu0 %vm2375_vm14, %v2716_v27 }
0x319c   : > { %3660 = vmatprep.mubr.msk.bf16.mxu0 %vm4398_vm0, %v4397_v0  ;;  %3657 = vmatpush3.bf16.msra.mxu0 %v3854_v57 }
0x319d   : > { %3658 = vmatprep.subr.bf16.mxu0 %v4397_v0 }
0x31a0   : > { %3659 = vmatpush3.bf16.msra.mxu0 %v3855_v58 }
0x31c3   : > { %v2538_v22 = vpop.f32.mrf.mxu0 }
0x31c4   : > { %v2539_v20 = vadd.f32 %v2538_v22, %v5116_v18 }
0x31c5   : > { %v3622_v28 = vpop.f32.mrf.mxu0 }
0x31c7   : > { %v2541_v29 = vpop.f32.mrf.mxu0 }
0x31c9   : > { %v3623_v30 = vpop.f32.mrf.mxu0 }
0x3253   : > { %v2647_v33 = vpop.f32.mrf.mxu0 }
0x3254   : > { %v2653_v37 = vadd.f32 %v2647_v33, %v2539_v20 }
0x3255   : > { %v3634_v34 = vpop.f32.mrf.mxu0 }
0x3257   : > { %v2650_v36 = vpop.f32.mrf.mxu0 }
0x3259   : > { %v3635_v54 = vpop.f32.mrf.mxu0 }
0x325b   : > { %v2757_v38 = vpop.f32.mrf.mxu0 }
0x325c   : > { %v2763_v24 = vadd.f32 %v2757_v38, %v2653_v37  ;;  %v3354_v38 = vld [vmem:[#allocation19] ss:$0 sm:$0xff] }
0x325d   : > { %v3646_v39 = vpop.f32.mrf.mxu0 }
0x325e   : > { %v2765_v40 = vpack.c.bf16 %v2763_v24, %v2763_v24  ;;  %v3355_v39 = vld [vmem:[#allocation21] ss:$0 sm:$0xff] }
0x325f   : > { %v2760_v63 = vpop.f32.mrf.mxu0 }
0x3260   : > { %3653 = vmatmul.mubr.msk.bf16.vlgmr.msra.gmra.mxu1 %vm766_vm1, %v2765_v40 }
0x3261   : > { %v3647_v6 = vpop.f32.mrf.mxu0  ;;  %3680 = vmatprep.mubr.msk.bf16.mxu1 %vm4398_vm0, %v4397_v0 }
0x3320   : > { %v2825_v43 = vpop.f32.mrf.mxu1 }
0x3321   : > { %v2826_v45 = vadd.f32 %v3335_v42, %v2825_v43 }
0x3322   : > { %v3654_v46 = vpop.f32.mrf.mxu1 }
0x3323   : > { %v2831_v47 = vadd.f32 %v2826_v45, %v5029_v44  ;;  %v3856_v44 = vld [vmem:[%s5242_s15 + $0x38] sm:$0xff]  }
0x3324   : > { %v2828_v18 = vpop.f32.mrf.mxu1  ;;  %3665 = vmatpush3.bf16.msra.mxu1 %v3856_v44 }
0x3325   : > { %v2834_v48 = vsel %vm766_vm1, %v2831_v47, 0.0  ;;  %3666 = vmatprep.subr.bf16.mxu1 %v4397_v0 }
0x3326   : > { %2835 = vadd.xlane.f32.xlu0 %v2834_v48  ;;  %v3655_v49 = vpop.f32.mrf.mxu1 }
0x3328   : > { %3667 = vmatpush3.bf16.msra.mxu1 %v3857_v59 }
0x3329   : > { %3668 = vmatprep.subr.bf16.mxu1 %v4397_v0 }
0x332c   : > { %3669 = vmatpush3.bf16.msra.mxu1 %v3858_v60 }
0x332d   : > { %3670 = vmatprep.subr.bf16.mxu1 %v4397_v0 }
0x3330   : > { %3671 = vmatpush3.bf16.msra.mxu1 %v3859_v61 }
0x3331   : > { %3672 = vmatprep.subr.bf16.mxu1 %v4397_v0 }
0x3334   : > { %3673 = vmatpush3.bf16.msra.mxu1 %v3860_v62 }
0x3335   : > { %3674 = vmatprep.subr.bf16.mxu1 %v4397_v0 }
0x3338   : > { %3675 = vmatpush3.bf16.msra.mxu1 %v3861_v1 }
0x3339   : > { %3676 = vmatprep.subr.bf16.mxu1 %v4397_v0 }
0x333c   : > { %3677 = vmatpush3.bf16.msra.mxu1 %v3862_v16 }
0x333d   : > { %3678 = vmatprep.subr.bf16.mxu1 %v4397_v0 }
0x3340   : > { %3679 = vmatpush3.bf16.msra.mxu1 %v3863_v4 }
0x33af   : > { %v2836_v50 = vpop.xlane.xlu0 %2835 }
0x33b0   : > { %v2838_v51 = vmul.f32 0.03125, %v2836_v50 }
0x33b2   : > { %v2839_v52 = vsub.f32 %v2831_v47, %v2838_v51 }
0x33b4   : > { %v2840_v55 = vmul.f32 %v2839_v52, %v2839_v52 }
0x33b6   : > { %v2841_v56 = vsel %vm766_vm1, %v2840_v55, 0.0 }
0x33b7   : > { %2842 = vadd.xlane.f32.xlu1 %v2841_v56 }
0x3440   : > { %v2843_v2 = vpop.xlane.xlu1 %2842 }
0x3441   : > { %v2844_v5 = vmul.f32 0.03125, %v2843_v2 }
0x3443   : > { %v2845_v8 = vadd.f32 1e-05, %v2844_v5 }
0x3445   : > { %4008 = vrsqrt.f32 %v2845_v8 }
0x3452   : > { %v4009_v9 = vpop.eup %4008 }
0x3453   : > { %v2847_v11 = vmul.f32 %v4009_v9, %v2839_v52 }
0x3455   : > { %v2854_v14 = vmul.f32 %v3339_v10, %v2847_v11 }
0x3457   : > { %v2861_v13 = vadd.f32 %v3340_v12, %v2854_v14 }
0x3459   : > { %v2863_v15 = vpack.c.bf16 %v2861_v13, %v2861_v13 }
0x345b   : > { %3661 = vmatmul.mubr.msk.bf16.vlgmr.msra.gmra.mxu0 %vm766_vm1, %v2863_v15 }
0x351b   : > { %v2923_v31 = vpop.f32.mrf.mxu0 }
0x351c   : > { %v2924_v17 = vadd.f32 %v3341_v19, %v2923_v31 }
0x351d   : > { %v3662_v3 = vpop.f32.mrf.mxu0 }
0x351e   : > { %v2929_v21 = vmax.f32 %v2924_v17, 0.0 }
0x351f   : > { %v2926_v53 = vpop.f32.mrf.mxu0 }
0x3520   : > { %v2931_v41 = vpack.c.bf16 %v2929_v21, %v2929_v21 }
0x3521   : > { %v3663_v7 = vpop.f32.mrf.mxu0 }
0x3522   : > { %3681 = vmatmul.mubr.bf16.vlgmr.msra.gmra.mxu1 %v2931_v41 }
0x35e2   : > { %v3036_v25 = vpop.f32.mrf.mxu1 }
0x35e3   : > { %v3037_v26 = vadd.f32 %v3345_v23, %v3036_v25 }
0x35e4   : > { %v3682_v27 = vpop.f32.mrf.mxu1 }
0x35e5   : > { %v3042_v0 = vadd.f32 %v3037_v26, %v2861_v13 }
0x35e6   : > { %v3039_v22 = vpop.f32.mrf.mxu1 }
0x35e7   : > { %v3045_v28 = vsel %vm766_vm1, %v3042_v0, 0.0 }
0x35e8   : > { %3046 = vadd.xlane.f32.xlu1 %v3045_v28  ;;  %v3683_v29 = vpop.f32.mrf.mxu1 }
0x3671   : > { %v3047_v30 = vpop.xlane.xlu1 %3046 }
0x3672   : > { %v3048_v35 = vmul.f32 0.03125, %v3047_v30 }
0x3674   : > { %v3049_v32 = vsub.f32 %v3042_v0, %v3048_v35 }
0x3676   : > { %v3050_v33 = vmul.f32 %v3049_v32, %v3049_v32 }
0x3678   : > { %v3051_v34 = vsel %vm766_vm1, %v3050_v33, 0.0 }
0x3679   : > { %3052 = vadd.xlane.f32.xlu1 %v3051_v34 }
0x3702   : > { %v3053_v36 = vpop.xlane.xlu1 %3052 }
0x3703   : > { %v3054_v20 = vmul.f32 0.03125, %v3053_v36 }
0x3705   : > { %v3055_v54 = vadd.f32 1e-05, %v3054_v20 }
0x3707   : > { %4010 = vrsqrt.f32 %v3055_v54 }
0x3714   : > { %v4011_v37 = vpop.eup %4010 }
0x3715   : > { %v3057_v24 = vmul.f32 %v4011_v37, %v3049_v32 }
0x3717   : > { %v3064_v40 = vmul.f32 %v3354_v38, %v3057_v24 }
0x3719   : > { %v3071_v63 = vadd.f32 %v3355_v39, %v3064_v40 }
0x371b   : > { %3072 = vst.msk [vmem:[%s733_s21] sm:$0xff] %vm766_vm1, %v3071_v63 }
0x371c   : > { %4311 = shalt.err (!%p4308_p8)
}
0x371d   : > { %s4312_s23 = scalar_lea.hbm %s3085_s22, 128  ;;  %s4316_s21 = scalar_lea.hbm %s5246_s19, 256 }
0x371e   : > { %p4313_p11 = scmp.ne.s32.totalorder %s3085_s22, %s4312_s23  ;;  %p4317_p2 = scmp.lt.s32.totalorder %s3085_s22, %s5246_s19 }
0x371f   : > { %p4318_p9 = scmp.lt.s32.totalorder %s4316_s21, %s4312_s23 }
0x3720   : > { %p4314_p0 = pnand %p4313_p11, %p5300_p6 }
0x3721   : > { %p4319_p3 = por %p4318_p9, %p4317_p2 }
0x3722   : > { %p4315_p1 = pneg %p4314_p0 }
0x3724   : > { %p4320_p5 = pnand %p4319_p3, %p4315_p1 }
0x3726   : > { %4323 = shalt.err (!%p4320_p5)
}
0x3727   : > { %3728 = dma.vmem_to_hbm [thread:$0]  (%p5300_p6), %s3088_s24, 128, %s3085_s22, %s3074_s20  }
0x3728 PF: > { %s5301_s28 = sld [smem:[#allocation32_spill]] }
0x3729   : > { %s5302_s8 = sld [smem:[#allocation30_spill]] }
0x372a   : > { %s5303_s2 = sld [smem:[#allocation35_spill]] }
0x372e   : > { %p3790_p13 = scmp.ge.s32.totalorder %s5301_s28, 2 }
0x372f   : > { %s3099_s1 = sand.u32 1, %s5302_s8  }
0x3730   : > { %p5304_p10 = scmp.ne.s32.totalorder %s5303_s2, 0  ;;  %s3100_s27 = scalar_lea.sflag [#allocation6], %s3099_s1 }
0x3732   : > { %p3765_p4 = pnand %p3790_p13, %p5304_p10 }
0x3734   : > { %p3766_p7 = pneg %p3765_p4 }
0x3736   : > { %4365 = dma.done.wait (%p3766_p7), %s3100_s27, 128  }
0x3737   : > { %4367 = vsyncadd (%p3766_p7), %s3100_s27, 4294967168  ;;  %s5305_s21 = sld [smem:[#allocation33_spill]]  ;;  %s5308_s0 = smov %s4374_s30 }
0x3738   : > { %s5306_s23 = sld [smem:[#allocation31_spill]] }
0x3739   : > { %s5307_s20 = sld [smem:[#allocation34_spill]] }
0x373d   : > { %p35_p12 = scmp.ge.s32.totalorder %s5305_s21, 4  }
0x373e   : > { %s5309_s30 = smov %s5306_s23 }
0x373f   :  { %37 = sbr.rel (!%p35_p12) target bundleno = 16 (0x10), region = 176 }
0x3744   :  { %3105 = vsyncpa [#allocation5], 1 }
0x3745   :  { %3107 = vsyncpa [#allocation5 + $0x1], 1 }
0x3746   :  { %3108 = vsyncpa [#allocation8], 1 }
0x3747   :  { %3109 = vsyncpa [#allocation11], 1 }
0x3748   :  { %3110 = vsyncpa [#allocation14], 1 }
0x3749   :  { %3111 = vsyncpa [#allocation17], 1 }
0x374a   :  { %3112 = vsyncpa [#allocation20], 1 }
0x374b   :  { %3113 = vsyncpa [#allocation6], 1 }
0x374c   :  { %3115 = vsyncpa [#allocation6 + $0x1], 1 }

</bundles_post_ra>
